<compile_context>
chip_gen: v7x
topology: tpu7x:2x2x1
jax: 0.10.0
libtpu: 0.0.40
codegen_flags: <defaults>
</compile_context>

<pallas_src>
import functools

import numpy as np

import jax
import jax.numpy as jnp
from jax.experimental import pallas as pl
from jax.experimental.pallas import tpu as pltpu

NODE_FEAT = 20
OUT_DIM = 64
HEADS = 8
H1, H2, H3 = 128, 64, 32
NUM_CLASSES = 3
NEG_SLOPE_GAT = 0.2   # PyG GATConv default LeakyReLU slope
NEG_SLOPE_MLP = 0.1   # nn.LeakyReLU(0.1) in the module

NP = 128              # lane-dense source-node axis (and W-x contraction dim)
FP = 128              # padded node-feature dim
BP = 8                # padded graph count (output rows); last row carries MSE
HF = HEADS * OUT_DIM  # 512
MASK_VAL = -1e30


def _leaky(x, slope):
    return jnp.where(x > 0, x, slope * x)


def tsch_kernel(x_ref, xt_ref, adjm_ref, pool_ref, wg_ref, adst_ref, asrc_ref,
                wff_ref, wh1_ref, ws_ref, bias_ref, out_ref, h_scr, agg_scr,
                *, mp, inv_bn):
    # ---- GAT node projection h = W x (both branches), staged as bf16 in VMEM.
    #      Chunked over 128-lane column blocks so no [128,1024] f32 is live.
    x_bf = x_ref[...]
    for c in range(0, 2 * HF, FP):
        h_scr[:, c:c + FP] = jnp.dot(
            x_bf, wg_ref[:, c:c + FP],
            preferred_element_type=jnp.float32).astype(jnp.bfloat16)

    # ---- Per-head attention projections (a . W folded host-side):
    #      s_dst[i,h]  = a_dst_h . (W x_i)  -> only the mp real dst rows
    #      s_srcT[h,j] = a_src_h . (W x_j)  -> lane-dense over the 128 src axis
    s_dst = jnp.dot(x_ref[0:mp, :], adst_ref[...],
                    preferred_element_type=jnp.float32)        # [mp, 16]
    s_srcT = jnp.dot(asrc_ref[...], xt_ref[...],
                     preferred_element_type=jnp.float32)       # [16, 128]

    # ---- Attention + aggregation per branch / head.  Aggregated head features
    #      go into agg_scr at their head lane offset so feature_fusion of BOTH
    #      branches is one block-diagonal matmul afterwards.
    for br in range(2):                                        # 0 = ipv6, 1 = tsch
        off = br * HF
        soff = br * HEADS
        mask_add = adjm_ref[:, br * NP:(br + 1) * NP]          # [mp,128] additive mask
        for hd in range(HEADS):
            c = soff + hd
            sc = s_dst[:, c:c + 1] + s_srcT[c:c + 1, :]        # [mp, 128]
            sc = _leaky(sc, NEG_SLOPE_GAT) + mask_add
            m = jnp.max(sc, axis=-1, keepdims=True)
            p = jnp.exp(sc - m)
            denom = jnp.sum(p, axis=-1, keepdims=True)
            ls = off + hd * OUT_DIM
            # TODO(synk): GATConv attention dropout omitted (eval-mode identity).
            agg = jnp.dot(p.astype(jnp.bfloat16), h_scr[:, ls:ls + OUT_DIM],
                          preferred_element_type=jnp.float32)  # [mp, 64]
            agg = agg * pl.reciprocal(denom, approx=True)      # normalize after agg
            agg_scr[:, ls:ls + OUT_DIM] = agg.astype(jnp.bfloat16)

    # ---- feature_fusion (both branches) as ONE [mp,1024]@[1024,256] matmul;
    #      GAT output biases folded into bias row 0 host-side.  Then the MLP.
    ff = jnp.dot(agg_scr[...], wff_ref[...], preferred_element_type=jnp.float32)
    a = _leaky(ff + bias_ref[0:1, :], NEG_SLOPE_MLP).astype(jnp.bfloat16)   # [mp,256]
    h1 = _leaky(jnp.dot(a, wh1_ref[...], preferred_element_type=jnp.float32)
                + bias_ref[1:2, 0:H2], NEG_SLOPE_MLP).astype(jnp.bfloat16)  # [mp,64]
    # nn.Dropout: eval-mode identity.
    h2 = _leaky(jnp.dot(h1, ws_ref[0:H2, 0:H3], preferred_element_type=jnp.float32)
                + bias_ref[2:3, 0:H3], NEG_SLOPE_MLP).astype(jnp.bfloat16)  # [mp,32]
    h3 = _leaky(jnp.dot(h2, ws_ref[H2:H2 + H3, 0:H3],
                        preferred_element_type=jnp.float32)
                + bias_ref[3:4, 0:H3], NEG_SLOPE_MLP)                       # [mp,32] f32

    # ---- global_mean_pool as a matmul (padded rows/cols of pool are zero, so
    #      padded-node bias activations never reach graph_features), then both
    #      classifiers in one matmul into the lane-padded [BP,128] block.
    gf = jnp.dot(pool_ref[...], h3, preferred_element_type=jnp.float32)     # [BP,32]
    logits = jnp.dot(gf.astype(jnp.bfloat16), ws_ref[H2 + H3:H2 + 2 * H3, :],
                     preferred_element_type=jnp.float32) + bias_ref[4:5, 0:128]

    # ---- MSE(graph_features, 0): padded gf rows are exactly zero.
    sq = gf * gf
    l2 = jnp.sum(jnp.sum(sq, axis=1, keepdims=True), axis=0, keepdims=True) * inv_bn

    # Merge the scalar into the (never-real) last output row -> one dense store.
    row = jax.lax.broadcasted_iota(jnp.int32, (BP, 128), 0)
    out_ref[...] = jnp.where(row == BP - 1,
                             jnp.broadcast_to(l2, (BP, 128)), logits)


# ----------------------------------------------------------------------------
# Host-side (run ONCE): parameter packing and input padding in numpy.
# ----------------------------------------------------------------------------
def pack_params(params):
    """Pack the 22 parameters (already [in, out] layout) into 7 dense slabs."""
    pf = [np.asarray(p, np.float32) for p in params]
    (wg_i, asrc_i, adst_i, bg_i,
     wg_t, asrc_t, adst_t, bg_t,
     wff_i, bff_i, wff_t, bff_t,
     wh1, bh1, wh2, bh2, wh3, bh3,
     wce, bce, wcv, bcv) = pf

    # W-x projection for both branches: [FP, 2*HF].
    wg = np.zeros((FP, 2 * HF), np.float32)
    wg[:NODE_FEAT, :HF] = wg_i
    wg[:NODE_FEAT, HF:] = wg_t

    # Attention vectors composed with W:  (W x) . a  ==  x . (W @ a).
    adst = np.zeros((FP, 2 * HEADS), np.float32)
    asrcT = np.zeros((2 * HEADS, FP), np.float32)
    for hd in range(HEADS):
        cols = slice(hd * OUT_DIM, (hd + 1) * OUT_DIM)
        adst[:NODE_FEAT, hd] = wg_i[:, cols] @ adst_i[hd]
        adst[:NODE_FEAT, HEADS + hd] = wg_t[:, cols] @ adst_t[hd]
        asrcT[hd, :NODE_FEAT] = wg_i[:, cols] @ asrc_i[hd]
        asrcT[HEADS + hd, :NODE_FEAT] = wg_t[:, cols] @ asrc_t[hd]

    # Block-diagonal feature_fusion slab: [wff_i (+) wff_t] -> [1024, 256].
    wff = np.zeros((2 * HF, 2 * H1), np.float32)
    wff[:HF, :H1] = wff_i
    wff[HF:, H1:] = wff_t

    wh1_p = wh1                                   # [256, 64], rows = [ipv6 | tsch]

    ws = np.zeros((128, 128), np.float32)         # hidden2 / hidden3 / classifiers
    ws[:H2, :H3] = wh2
    ws[H2:H2 + H3, :H3] = wh3
    ws[H2 + H3:H2 + 2 * H3, :NUM_CLASSES] = wce
    ws[H2 + H3:H2 + 2 * H3, NUM_CLASSES:2 * NUM_CLASSES] = wcv

    # GAT output bias folded into the feature_fusion bias:
    #   (gat + bg) @ wff + bff == gat @ wff + (bg @ wff + bff)
    bias = np.zeros((BP, 2 * H1), np.float32)
    bias[0, :H1] = (bff_i + bg_i @ wff_i)[0]
    bias[0, H1:] = (bff_t + bg_t @ wff_t)[0]
    bias[1, :H2] = bh1[0]
    bias[2, :H3] = bh2[0]
    bias[3, :H3] = bh3[0]
    bias[4, :NUM_CLASSES] = bce[0]
    bias[4, NUM_CLASSES:2 * NUM_CLASSES] = bcv[0]

    bf = lambda a: jnp.asarray(a, jnp.bfloat16)
    return (bf(wg), bf(adst), bf(asrcT), bf(wff), bf(wh1_p), bf(ws),
            jnp.asarray(bias, jnp.float32))


def prepare_inputs(x, adj_ipv6, adj_tsch, pool, mp):
    """Pad/convert per-graph inputs once (numpy).  adj[i, j] = 1 iff edge j->i."""
    n = x.shape[0]
    b = pool.shape[0]
    assert n <= mp <= NP and b <= BP - 1   # last output row is reserved for MSE

    x_pad = np.zeros((NP, FP), np.float32)
    x_pad[:n, :NODE_FEAT] = x
    xt_pad = np.ascontiguousarray(x_pad.T)

    # Additive attention mask (0 on edges/self-loops, -1e30 elsewhere).
    adjm = np.full((mp, 2 * NP), MASK_VAL, np.float32)
    adjm[:n, :n] = np.where(adj_ipv6 > 0, 0.0, MASK_VAL)
    adjm[:n, NP:NP + n] = np.where(adj_tsch > 0, 0.0, MASK_VAL)
    idx = np.arange(mp)
    adjm[idx, idx] = 0.0            # self loops (incl. padded dst rows)
    adjm[idx, NP + idx] = 0.0

    pool_pad = np.zeros((BP, mp), np.float32)
    pool_pad[:b, :n] = pool         # zero cols for padded nodes, zero padded rows

    return (jnp.asarray(x_pad, jnp.bfloat16), jnp.asarray(xt_pad, jnp.bfloat16),
            jnp.asarray(adjm, jnp.float32), jnp.asarray(pool_pad, jnp.float32))


def build_forward(mp, n_graphs):
    kernel = functools.partial(tsch_kernel, mp=mp,
                               inv_bn=1.0 / float(n_graphs * H3))
    vmem = pl.BlockSpec(memory_space=pltpu.MemorySpace.VMEM)
    call = pl.pallas_call(
        kernel,
        out_shape=jax.ShapeDtypeStruct((BP, 128), jnp.float32),
        in_specs=[vmem] * 11,
        out_specs=vmem,
        scratch_shapes=[pltpu.VMEM((NP, 2 * HF), jnp.bfloat16),   # W x (both branches)
                        pltpu.VMEM((mp, 2 * HF), jnp.bfloat16)],  # per-head agg
    )

    @jax.jit
    def fwd(x_pad, xt_pad, adjm, pool_pad, wg, adst, asrcT, wff, wh1, ws, bias):
        out = call(x_pad, xt_pad, adjm, pool_pad, wg, adst, asrcT, wff, wh1,
                   ws, bias)
        return (out[:n_graphs, 0:NUM_CLASSES],
                out[:n_graphs, NUM_CLASSES:2 * NUM_CLASSES],
                out[BP - 1, 0])
    return fwd


# ----------------------------------------------------------------------------
# Synthetic params / data and a pure-JAX f32 reference for a loose sanity check.
# ----------------------------------------------------------------------------
def init_params(key):
    """Deterministic synthetic parameters ([in, out] layout) matching TSCH_NN."""
    def lin(k, fan_in, fan_out):
        k1, k2 = jax.random.split(k)
        s = 1.0 / jnp.sqrt(float(fan_in))
        w = jax.random.uniform(k1, (fan_in, fan_out), jnp.float32, -s, s)
        b = jax.random.uniform(k2, (1, fan_out), jnp.float32, -s, s)
        return w, b

    def gat(k, fan_in):
        k1, k2, k3, k4 = jax.random.split(k, 4)
        w = jax.random.normal(k1, (fan_in, HEADS * OUT_DIM), jnp.float32) * 0.1
        a_src = jax.random.normal(k2, (HEADS, OUT_DIM), jnp.float32) * 0.1
        a_dst = jax.random.normal(k3, (HEADS, OUT_DIM), jnp.float32) * 0.1
        b = jax.random.normal(k4, (1, HEADS * OUT_DIM), jnp.float32) * 0.01
        return w, a_src, a_dst, b

    ks = jax.random.split(key, 9)
    params = []
    params += list(gat(ks[0], NODE_FEAT))                 # GAT_ipv6
    params += list(gat(ks[1], NODE_FEAT))                 # GAT_tsch
    # GAT_extra exists in __init__ but is unused in forward -> omitted.
    params += list(lin(ks[2], HEADS * OUT_DIM, H1))       # feature_fusion_ipv6
    params += list(lin(ks[3], HEADS * OUT_DIM, H1))       # feature_fusion_tsch
    params += list(lin(ks[4], H1 * 2, H2))                # hidden1
    params += list(lin(ks[5], H2, H3))                    # hidden2
    params += list(lin(ks[6], H3, H3))                    # hidden3
    params += list(lin(ks[7], H3, NUM_CLASSES))           # classifier_event
    params += list(lin(ks[8], H3, NUM_CLASSES))           # classifier_env
    return params


def edges_to_adj(edge_index, n):
    """edge_index: [2, E], row0 = source, row1 = target.  Self loops added."""
    src, dst = edge_index[0], edge_index[1]
    adj = np.zeros((n, n), np.float32)
    adj[dst, src] = 1.0
    np.fill_diagonal(adj, 1.0)
    return adj


def reference_forward(params, x, adj_i, adj_t, pool):
    (wg_i, asrc_i, adst_i, bg_i,
     wg_t, asrc_t, adst_t, bg_t,
     wff_i, bff_i, wff_t, bff_t,
     wh1, bh1, wh2, bh2, wh3, bh3,
     wce, bce, wcv, bcv) = params

    def gat(adj, wg, a_src, a_dst, bg):
        n = x.shape[0]
        h = (x @ wg).reshape(n, HEADS, OUT_DIM)
        sdst = jnp.einsum('nhf,hf->nh', h, a_dst)
        ssrc = jnp.einsum('nhf,hf->nh', h, a_src)
        e = _leaky(sdst[:, None, :] + ssrc[None, :, :], NEG_SLOPE_GAT)
        e = jnp.where((adj > 0)[:, :, None], e, MASK_VAL)
        alpha = jax.nn.softmax(e, axis=1)
        out = jnp.einsum('ijh,jhf->ihf', alpha, h).reshape(n, HEADS * OUT_DIM)
        return out + bg

    ni = gat(adj_i, wg_i, asrc_i, adst_i, bg_i) @ wff_i + bff_i
    nt = gat(adj_t, wg_t, asrc_t, adst_t, bg_t) @ wff_t + bff_t
    nf = _leaky(jnp.concatenate([ni, nt], axis=-1), NEG_SLOPE_MLP)
    nf = _leaky(nf @ wh1 + bh1, NEG_SLOPE_MLP)
    nf = _leaky(nf @ wh2 + bh2, NEG_SLOPE_MLP)
    nf = _leaky(nf @ wh3 + bh3, NEG_SLOPE_MLP)
    gf = pool @ nf
    return gf @ wce + bce, gf @ wcv + bcv, jnp.mean(gf * gf)


if __name__ == "__main__":
    key = jax.random.PRNGKey(0)
    k_x, k_e1, k_e2, k_p = jax.random.split(key, 4)

    N, B, E = 16, 2, 32
    x = jax.random.normal(k_x, (N, NODE_FEAT), jnp.float32)
    edge_index_ipv6 = np.asarray(jax.random.randint(k_e1, (2, E), 0, N))
    edge_index_tsch = np.asarray(jax.random.randint(k_e2, (2, E), 0, N))

    adj_ipv6 = edges_to_adj(edge_index_ipv6, N)
    adj_tsch = edges_to_adj(edge_index_tsch, N)

    batch = np.repeat(np.arange(B), N // B)                        # graph assignment
    onehot = (batch[None, :] == np.arange(B)[:, None]).astype(np.float32)
    pool = onehot / onehot.sum(axis=1, keepdims=True)              # global_mean_pool

    params = init_params(k_p)

    # Host-side packing / padding: done ONCE, outside the per-call path.
    packed = pack_params(params)
    MP = max(16, ((N + 15) // 16) * 16)                            # padded dst rows
    inputs = prepare_inputs(np.asarray(x), adj_ipv6, adj_tsch, pool, MP)

    fwd = build_forward(MP, B)
    out_event, out_env, l2 = fwd(*inputs, *packed)
    jax.block_until_ready((out_event, out_env, l2))

    assert out_event.shape == (B, NUM_CLASSES)
    assert out_env.shape == (B, NUM_CLASSES)
    assert l2.shape == ()
    assert bool(jnp.all(jnp.isfinite(out_event)))
    assert bool(jnp.all(jnp.isfinite(out_env)))
    assert bool(jnp.isfinite(l2))

    # Loose sanity check against a pure-JAX f32 reference (kernel runs bf16 MXU
    # with f32 accumulation + approx reciprocal -> expect ~1e-2 level deviation).
    ref_ev, ref_en, ref_l2 = reference_forward(
        params, x, jnp.asarray(adj_ipv6), jnp.asarray(adj_tsch), jnp.asarray(pool))
    ev_err = float(jnp.max(jnp.abs(out_event - ref_ev)))
    en_err = float(jnp.max(jnp.abs(out_env - ref_en)))
    l2_err = float(jnp.abs(l2 - ref_l2))
    assert ev_err < 0.1 and en_err < 0.1, (ev_err, en_err)
    assert l2_err < 0.1 * float(jnp.abs(ref_l2)) + 1e-3, l2_err

    print("KERNEL_OK")
</pallas_src>

<mosaic_0001>
module attributes {stable_mosaic.version = 11 : i64} {
  func.func @tsch_kernel(%arg0: memref<128x128xbf16, #tpu.memory_space<vmem>>, %arg1: memref<128x128xbf16, #tpu.memory_space<vmem>>, %arg2: memref<16x256xf32, #tpu.memory_space<vmem>>, %arg3: memref<8x16xf32, #tpu.memory_space<vmem>>, %arg4: memref<128x1024xbf16, #tpu.memory_space<vmem>>, %arg5: memref<128x16xbf16, #tpu.memory_space<vmem>>, %arg6: memref<16x128xbf16, #tpu.memory_space<vmem>>, %arg7: memref<1024x256xbf16, #tpu.memory_space<vmem>>, %arg8: memref<256x64xbf16, #tpu.memory_space<vmem>>, %arg9: memref<128x128xbf16, #tpu.memory_space<vmem>>, %arg10: memref<8x256xf32, #tpu.memory_space<vmem>>, %arg11: memref<8x128xf32, #tpu.memory_space<vmem>>, %arg12: memref<128x1024xbf16, #tpu.memory_space<vmem>>, %arg13: memref<16x1024xbf16, #tpu.memory_space<vmem>>) attributes {dimension_semantics = [], scalar_prefetch = 0 : i64, scratch_operands = 2 : i64, tpu.core_type = #tpu.core_type<tc>} {
    %c0 = arith.constant 0 : index
    %c0_0 = arith.constant 0 : index
    %0 = vector.load %arg0[%c0, %c0_0] : memref<128x128xbf16, #tpu.memory_space<vmem>>, vector<128x128xbf16>
    %c0_1 = arith.constant 0 : index
    %c0_2 = arith.constant 0 : index
    %1 = vector.load %arg4[%c0_1, %c0_2] : memref<128x1024xbf16, #tpu.memory_space<vmem>>, vector<128x128xbf16>
    %cst = arith.constant dense<0.000000e+00> : vector<128x128xf32>
    %2 = tpu.matmul %0, %1, %cst {dimension_numbers = #tpu.dot_dimension_numbers<[1], [0], [0], [1], [0, 0, 1, 1], [], []>} : vector<128x128xbf16>, vector<128x128xbf16>, vector<128x128xf32> -> vector<128x128xf32>
    %3 = arith.truncf %2 : vector<128x128xf32> to vector<128x128xbf16>
    %c0_3 = arith.constant 0 : index
    %c0_4 = arith.constant 0 : index
    %4 = vector.load %arg12[%c0_3, %c0_4] : memref<128x1024xbf16, #tpu.memory_space<vmem>>, vector<128x128xbf16>
    tpu.vector_store %arg12[%c0_3, %c0_4], %3 {strides = array<i32>} : memref<128x1024xbf16, #tpu.memory_space<vmem>>, vector<128x128xbf16>,
    %c0_5 = arith.constant 0 : index
    %c128 = arith.constant 128 : index
    %5 = vector.load %arg4[%c0_5, %c128] : memref<128x1024xbf16, #tpu.memory_space<vmem>>, vector<128x128xbf16>
    %cst_6 = arith.constant dense<0.000000e+00> : vector<128x128xf32>
    %6 = tpu.matmul %0, %5, %cst_6 {dimension_numbers = #tpu.dot_dimension_numbers<[1], [0], [0], [1], [0, 0, 1, 1], [], []>} : vector<128x128xbf16>, vector<128x128xbf16>, vector<128x128xf32> -> vector<128x128xf32>
    %7 = arith.truncf %6 : vector<128x128xf32> to vector<128x128xbf16>
    %c0_7 = arith.constant 0 : index
    %c128_8 = arith.constant 128 : index
    %8 = vector.load %arg12[%c0_7, %c128_8] : memref<128x1024xbf16, #tpu.memory_space<vmem>>, vector<128x128xbf16>
    tpu.vector_store %arg12[%c0_7, %c128_8], %7 {strides = array<i32>} : memref<128x1024xbf16, #tpu.memory_space<vmem>>, vector<128x128xbf16>,
    %c0_9 = arith.constant 0 : index
    %c256 = arith.constant 256 : index
    %9 = vector.load %arg4[%c0_9, %c256] : memref<128x1024xbf16, #tpu.memory_space<vmem>>, vector<128x128xbf16>
    %cst_10 = arith.constant dense<0.000000e+00> : vector<128x128xf32>
    %10 = tpu.matmul %0, %9, %cst_10 {dimension_numbers = #tpu.dot_dimension_numbers<[1], [0], [0], [1], [0, 0, 1, 1], [], []>} : vector<128x128xbf16>, vector<128x128xbf16>, vector<128x128xf32> -> vector<128x128xf32>
    %11 = arith.truncf %10 : vector<128x128xf32> to vector<128x128xbf16>
    %c0_11 = arith.constant 0 : index
    %c256_12 = arith.constant 256 : index
    %12 = vector.load %arg12[%c0_11, %c256_12] : memref<128x1024xbf16, #tpu.memory_space<vmem>>, vector<128x128xbf16>
    tpu.vector_store %arg12[%c0_11, %c256_12], %11 {strides = array<i32>} : memref<128x1024xbf16, #tpu.memory_space<vmem>>, vector<128x128xbf16>,
    %c0_13 = arith.constant 0 : index
    %c384 = arith.constant 384 : index
    %13 = vector.load %arg4[%c0_13, %c384] : memref<128x1024xbf16, #tpu.memory_space<vmem>>, vector<128x128xbf16>
    %cst_14 = arith.constant dense<0.000000e+00> : vector<128x128xf32>
    %14 = tpu.matmul %0, %13, %cst_14 {dimension_numbers = #tpu.dot_dimension_numbers<[1], [0], [0], [1], [0, 0, 1, 1], [], []>} : vector<128x128xbf16>, vector<128x128xbf16>, vector<128x128xf32> -> vector<128x128xf32>
    %15 = arith.truncf %14 : vector<128x128xf32> to vector<128x128xbf16>
    %c0_15 = arith.constant 0 : index
    %c384_16 = arith.constant 384 : index
    %16 = vector.load %arg12[%c0_15, %c384_16] : memref<128x1024xbf16, #tpu.memory_space<vmem>>, vector<128x128xbf16>
    tpu.vector_store %arg12[%c0_15, %c384_16], %15 {strides = array<i32>} : memref<128x1024xbf16, #tpu.memory_space<vmem>>, vector<128x128xbf16>,
    %c0_17 = arith.constant 0 : index
    %c512 = arith.constant 512 : index
    %17 = vector.load %arg4[%c0_17, %c512] : memref<128x1024xbf16, #tpu.memory_space<vmem>>, vector<128x128xbf16>
    %cst_18 = arith.constant dense<0.000000e+00> : vector<128x128xf32>
    %18 = tpu.matmul %0, %17, %cst_18 {dimension_numbers = #tpu.dot_dimension_numbers<[1], [0], [0], [1], [0, 0, 1, 1], [], []>} : vector<128x128xbf16>, vector<128x128xbf16>, vector<128x128xf32> -> vector<128x128xf32>
    %19 = arith.truncf %18 : vector<128x128xf32> to vector<128x128xbf16>
    %c0_19 = arith.constant 0 : index
    %c512_20 = arith.constant 512 : index
    %20 = vector.load %arg12[%c0_19, %c512_20] : memref<128x1024xbf16, #tpu.memory_space<vmem>>, vector<128x128xbf16>
    tpu.vector_store %arg12[%c0_19, %c512_20], %19 {strides = array<i32>} : memref<128x1024xbf16, #tpu.memory_space<vmem>>, vector<128x128xbf16>,
    %c0_21 = arith.constant 0 : index
    %c640 = arith.constant 640 : index
    %21 = vector.load %arg4[%c0_21, %c640] : memref<128x1024xbf16, #tpu.memory_space<vmem>>, vector<128x128xbf16>
    %cst_22 = arith.constant dense<0.000000e+00> : vector<128x128xf32>
    %22 = tpu.matmul %0, %21, %cst_22 {dimension_numbers = #tpu.dot_dimension_numbers<[1], [0], [0], [1], [0, 0, 1, 1], [], []>} : vector<128x128xbf16>, vector<128x128xbf16>, vector<128x128xf32> -> vector<128x128xf32>
    %23 = arith.truncf %22 : vector<128x128xf32> to vector<128x128xbf16>
    %c0_23 = arith.constant 0 : index
    %c640_24 = arith.constant 640 : index
    %24 = vector.load %arg12[%c0_23, %c640_24] : memref<128x1024xbf16, #tpu.memory_space<vmem>>, vector<128x128xbf16>
    tpu.vector_store %arg12[%c0_23, %c640_24], %23 {strides = array<i32>} : memref<128x1024xbf16, #tpu.memory_space<vmem>>, vector<128x128xbf16>,
    %c0_25 = arith.constant 0 : index
    %c768 = arith.constant 768 : index
    %25 = vector.load %arg4[%c0_25, %c768] : memref<128x1024xbf16, #tpu.memory_space<vmem>>, vector<128x128xbf16>
    %cst_26 = arith.constant dense<0.000000e+00> : vector<128x128xf32>
    %26 = tpu.matmul %0, %25, %cst_26 {dimension_numbers = #tpu.dot_dimension_numbers<[1], [0], [0], [1], [0, 0, 1, 1], [], []>} : vector<128x128xbf16>, vector<128x128xbf16>, vector<128x128xf32> -> vector<128x128xf32>
    %27 = arith.truncf %26 : vector<128x128xf32> to vector<128x128xbf16>
    %c0_27 = arith.constant 0 : index
    %c768_28 = arith.constant 768 : index
    %28 = vector.load %arg12[%c0_27, %c768_28] : memref<128x1024xbf16, #tpu.memory_space<vmem>>, vector<128x128xbf16>
    tpu.vector_store %arg12[%c0_27, %c768_28], %27 {strides = array<i32>} : memref<128x1024xbf16, #tpu.memory_space<vmem>>, vector<128x128xbf16>,
    %c0_29 = arith.constant 0 : index
    %c896 = arith.constant 896 : index
    %29 = vector.load %arg4[%c0_29, %c896] : memref<128x1024xbf16, #tpu.memory_space<vmem>>, vector<128x128xbf16>
    %cst_30 = arith.constant dense<0.000000e+00> : vector<128x128xf32>
    %30 = tpu.matmul %0, %29, %cst_30 {dimension_numbers = #tpu.dot_dimension_numbers<[1], [0], [0], [1], [0, 0, 1, 1], [], []>} : vector<128x128xbf16>, vector<128x128xbf16>, vector<128x128xf32> -> vector<128x128xf32>
    %31 = arith.truncf %30 : vector<128x128xf32> to vector<128x128xbf16>
    %c0_31 = arith.constant 0 : index
    %c896_32 = arith.constant 896 : index
    %32 = vector.load %arg12[%c0_31, %c896_32] : memref<128x1024xbf16, #tpu.memory_space<vmem>>, vector<128x128xbf16>
    tpu.vector_store %arg12[%c0_31, %c896_32], %31 {strides = array<i32>} : memref<128x1024xbf16, #tpu.memory_space<vmem>>, vector<128x128xbf16>,
    %c0_33 = arith.constant 0 : index
    %c0_34 = arith.constant 0 : index
    %33 = vector.load %arg0[%c0_33, %c0_34] : memref<128x128xbf16, #tpu.memory_space<vmem>>, vector<16x128xbf16>
    %c0_35 = arith.constant 0 : index
    %c0_36 = arith.constant 0 : index
    %34 = vector.load %arg5[%c0_35, %c0_36] : memref<128x16xbf16, #tpu.memory_space<vmem>>, vector<128x16xbf16>
    %cst_37 = arith.constant dense<0.000000e+00> : vector<16x16xf32>
    %35 = tpu.matmul %33, %34, %cst_37 {dimension_numbers = #tpu.dot_dimension_numbers<[1], [0], [0], [1], [0, 0, 1, 1], [], []>} : vector<16x128xbf16>, vector<128x16xbf16>, vector<16x16xf32> -> vector<16x16xf32>
    %c0_38 = arith.constant 0 : index
    %c0_39 = arith.constant 0 : index
    %36 = vector.load %arg6[%c0_38, %c0_39] : memref<16x128xbf16, #tpu.memory_space<vmem>>, vector<16x128xbf16>
    %c0_40 = arith.constant 0 : index
    %c0_41 = arith.constant 0 : index
    %37 = vector.load %arg1[%c0_40, %c0_41] : memref<128x128xbf16, #tpu.memory_space<vmem>>, vector<128x128xbf16>
    %cst_42 = arith.constant dense<0.000000e+00> : vector<16x128xf32>
    %38 = tpu.matmul %36, %37, %cst_42 {dimension_numbers = #tpu.dot_dimension_numbers<[1], [0], [0], [1], [0, 0, 1, 1], [], []>} : vector<16x128xbf16>, vector<128x128xbf16>, vector<16x128xf32> -> vector<16x128xf32>
    %c0_43 = arith.constant 0 : index
    %c0_44 = arith.constant 0 : index
    %39 = vector.load %arg2[%c0_43, %c0_44] : memref<16x256xf32, #tpu.memory_space<vmem>>, vector<16x128xf32>
    %40 = vector.extract_strided_slice %35 {offsets = [0, 0], sizes = [16, 1], strides = [1, 1]} : vector<16x16xf32> to vector<16x1xf32>
    %41 = vector.extract_strided_slice %38 {offsets = [0, 0], sizes = [1, 128], strides = [1, 1]} : vector<16x128xf32> to vector<1x128xf32>
    %42 = vector.broadcast %40 : vector<16x1xf32> to vector<16x128xf32>
    %43 = vector.broadcast %41 : vector<1x128xf32> to vector<16x128xf32>
    %44 = arith.addf %42, %43 : vector<16x128xf32>
    %cst_45 = arith.constant 0.000000e+00 : f32
    %45 = vector.broadcast %cst_45 : f32 to vector<16x128xf32>
    %46 = arith.cmpf ogt, %44, %45 : vector<16x128xf32>
    %cst_46 = arith.constant 2.000000e-01 : f32
    %47 = vector.broadcast %cst_46 : f32 to vector<16x128xf32>
    %48 = arith.mulf %47, %44 : vector<16x128xf32>
    %49 = arith.select %46, %44, %48 : vector<16x128xi1>, vector<16x128xf32>
    %50 = arith.addf %49, %39 : vector<16x128xf32>
    %cst_47 = arith.constant dense<0xFF800000> : vector<16xf32>
    %51 = vector.multi_reduction <maximumf>, %50, %cst_47 [1] : vector<16x128xf32> to vector<16xf32>
    %52 = vector.shape_cast %51 : vector<16xf32> to vector<16x1xf32>
    %53 = vector.broadcast %52 : vector<16x1xf32> to vector<16x128xf32>
    %54 = arith.subf %50, %53 : vector<16x128xf32>
    %55 = math.exp %54 : vector<16x128xf32>
    %cst_48 = arith.constant dense<0.000000e+00> : vector<16xf32>
    %56 = vector.multi_reduction <add>, %55, %cst_48 [1] : vector<16x128xf32> to vector<16xf32>
    %57 = vector.shape_cast %56 : vector<16xf32> to vector<16x1xf32>
    %58 = arith.truncf %55 : vector<16x128xf32> to vector<16x128xbf16>
    %c0_49 = arith.constant 0 : index
    %c0_50 = arith.constant 0 : index
    %59 = vector.load %arg12[%c0_49, %c0_50] : memref<128x1024xbf16, #tpu.memory_space<vmem>>, vector<128x64xbf16>
    %cst_51 = arith.constant dense<0.000000e+00> : vector<16x64xf32>
    %60 = tpu.matmul %58, %59, %cst_51 {dimension_numbers = #tpu.dot_dimension_numbers<[1], [0], [0], [1], [0, 0, 1, 1], [], []>} : vector<16x128xbf16>, vector<128x64xbf16>, vector<16x64xf32> -> vector<16x64xf32>
    %61 = tpu.reciprocal %57 {approx = true} : vector<16x1xf32> -> vector<16x1xf32>
    %62 = vector.broadcast %61 : vector<16x1xf32> to vector<16x64xf32>
    %63 = arith.mulf %60, %62 : vector<16x64xf32>
    %64 = arith.truncf %63 : vector<16x64xf32> to vector<16x64xbf16>
    %c0_52 = arith.constant 0 : index
    %c0_53 = arith.constant 0 : index
    %65 = vector.load %arg13[%c0_52, %c0_53] : memref<16x1024xbf16, #tpu.memory_space<vmem>>, vector<16x64xbf16>
    tpu.vector_store %arg13[%c0_52, %c0_53], %64 {strides = array<i32>} : memref<16x1024xbf16, #tpu.memory_space<vmem>>, vector<16x64xbf16>,
    %66 = vector.extract_strided_slice %35 {offsets = [0, 1], sizes = [16, 1], strides = [1, 1]} : vector<16x16xf32> to vector<16x1xf32>
    %67 = vector.extract_strided_slice %38 {offsets = [1, 0], sizes = [1, 128], strides = [1, 1]} : vector<16x128xf32> to vector<1x128xf32>
    %68 = vector.broadcast %66 : vector<16x1xf32> to vector<16x128xf32>
    %69 = vector.broadcast %67 : vector<1x128xf32> to vector<16x128xf32>
    %70 = arith.addf %68, %69 : vector<16x128xf32>
    %cst_54 = arith.constant 0.000000e+00 : f32
    %71 = vector.broadcast %cst_54 : f32 to vector<16x128xf32>
    %72 = arith.cmpf ogt, %70, %71 : vector<16x128xf32>
    %cst_55 = arith.constant 2.000000e-01 : f32
    %73 = vector.broadcast %cst_55 : f32 to vector<16x128xf32>
    %74 = arith.mulf %73, %70 : vector<16x128xf32>
    %75 = arith.select %72, %70, %74 : vector<16x128xi1>, vector<16x128xf32>
    %76 = arith.addf %75, %39 : vector<16x128xf32>
    %cst_56 = arith.constant dense<0xFF800000> : vector<16xf32>
    %77 = vector.multi_reduction <maximumf>, %76, %cst_56 [1] : vector<16x128xf32> to vector<16xf32>
    %78 = vector.shape_cast %77 : vector<16xf32> to vector<16x1xf32>
    %79 = vector.broadcast %78 : vector<16x1xf32> to vector<16x128xf32>
    %80 = arith.subf %76, %79 : vector<16x128xf32>
    %81 = math.exp %80 : vector<16x128xf32>
    %cst_57 = arith.constant dense<0.000000e+00> : vector<16xf32>
    %82 = vector.multi_reduction <add>, %81, %cst_57 [1] : vector<16x128xf32> to vector<16xf32>
    %83 = vector.shape_cast %82 : vector<16xf32> to vector<16x1xf32>
    %84 = arith.truncf %81 : vector<16x128xf32> to vector<16x128xbf16>
    %c0_58 = arith.constant 0 : index
    %c64 = arith.constant 64 : index
    %85 = vector.load %arg12[%c0_58, %c64] : memref<128x1024xbf16, #tpu.memory_space<vmem>>, vector<128x64xbf16>
    %cst_59 = arith.constant dense<0.000000e+00> : vector<16x64xf32>
    %86 = tpu.matmul %84, %85, %cst_59 {dimension_numbers = #tpu.dot_dimension_numbers<[1], [0], [0], [1], [0, 0, 1, 1], [], []>} : vector<16x128xbf16>, vector<128x64xbf16>, vector<16x64xf32> -> vector<16x64xf32>
    %87 = tpu.reciprocal %83 {approx = true} : vector<16x1xf32> -> vector<16x1xf32>
    %88 = vector.broadcast %87 : vector<16x1xf32> to vector<16x64xf32>
    %89 = arith.mulf %86, %88 : vector<16x64xf32>
    %90 = arith.truncf %89 : vector<16x64xf32> to vector<16x64xbf16>
    %c0_60 = arith.constant 0 : index
    %c64_61 = arith.constant 64 : index
    %91 = vector.load %arg13[%c0_60, %c64_61] : memref<16x1024xbf16, #tpu.memory_space<vmem>>, vector<16x64xbf16>
    tpu.vector_store %arg13[%c0_60, %c64_61], %90 {strides = array<i32>} : memref<16x1024xbf16, #tpu.memory_space<vmem>>, vector<16x64xbf16>,
    %92 = vector.extract_strided_slice %35 {offsets = [0, 2], sizes = [16, 1], strides = [1, 1]} : vector<16x16xf32> to vector<16x1xf32>
    %93 = vector.extract_strided_slice %38 {offsets = [2, 0], sizes = [1, 128], strides = [1, 1]} : vector<16x128xf32> to vector<1x128xf32>
    %94 = vector.broadcast %92 : vector<16x1xf32> to vector<16x128xf32>
    %95 = vector.broadcast %93 : vector<1x128xf32> to vector<16x128xf32>
    %96 = arith.addf %94, %95 : vector<16x128xf32>
    %cst_62 = arith.constant 0.000000e+00 : f32
    %97 = vector.broadcast %cst_62 : f32 to vector<16x128xf32>
    %98 = arith.cmpf ogt, %96, %97 : vector<16x128xf32>
    %cst_63 = arith.constant 2.000000e-01 : f32
    %99 = vector.broadcast %cst_63 : f32 to vector<16x128xf32>
    %100 = arith.mulf %99, %96 : vector<16x128xf32>
    %101 = arith.select %98, %96, %100 : vector<16x128xi1>, vector<16x128xf32>
    %102 = arith.addf %101, %39 : vector<16x128xf32>
    %cst_64 = arith.constant dense<0xFF800000> : vector<16xf32>
    %103 = vector.multi_reduction <maximumf>, %102, %cst_64 [1] : vector<16x128xf32> to vector<16xf32>
    %104 = vector.shape_cast %103 : vector<16xf32> to vector<16x1xf32>
    %105 = vector.broadcast %104 : vector<16x1xf32> to vector<16x128xf32>
    %106 = arith.subf %102, %105 : vector<16x128xf32>
    %107 = math.exp %106 : vector<16x128xf32>
    %cst_65 = arith.constant dense<0.000000e+00> : vector<16xf32>
    %108 = vector.multi_reduction <add>, %107, %cst_65 [1] : vector<16x128xf32> to vector<16xf32>
    %109 = vector.shape_cast %108 : vector<16xf32> to vector<16x1xf32>
    %110 = arith.truncf %107 : vector<16x128xf32> to vector<16x128xbf16>
    %c0_66 = arith.constant 0 : index
    %c128_67 = arith.constant 128 : index
    %111 = vector.load %arg12[%c0_66, %c128_67] : memref<128x1024xbf16, #tpu.memory_space<vmem>>, vector<128x64xbf16>
    %cst_68 = arith.constant dense<0.000000e+00> : vector<16x64xf32>
    %112 = tpu.matmul %110, %111, %cst_68 {dimension_numbers = #tpu.dot_dimension_numbers<[1], [0], [0], [1], [0, 0, 1, 1], [], []>} : vector<16x128xbf16>, vector<128x64xbf16>, vector<16x64xf32> -> vector<16x64xf32>
    %113 = tpu.reciprocal %109 {approx = true} : vector<16x1xf32> -> vector<16x1xf32>
    %114 = vector.broadcast %113 : vector<16x1xf32> to vector<16x64xf32>
    %115 = arith.mulf %112, %114 : vector<16x64xf32>
    %116 = arith.truncf %115 : vector<16x64xf32> to vector<16x64xbf16>
    %c0_69 = arith.constant 0 : index
    %c128_70 = arith.constant 128 : index
    %117 = vector.load %arg13[%c0_69, %c128_70] : memref<16x1024xbf16, #tpu.memory_space<vmem>>, vector<16x64xbf16>
    tpu.vector_store %arg13[%c0_69, %c128_70], %116 {strides = array<i32>} : memref<16x1024xbf16, #tpu.memory_space<vmem>>, vector<16x64xbf16>,
    %118 = vector.extract_strided_slice %35 {offsets = [0, 3], sizes = [16, 1], strides = [1, 1]} : vector<16x16xf32> to vector<16x1xf32>
    %119 = vector.extract_strided_slice %38 {offsets = [3, 0], sizes = [1, 128], strides = [1, 1]} : vector<16x128xf32> to vector<1x128xf32>
    %120 = vector.broadcast %118 : vector<16x1xf32> to vector<16x128xf32>
    %121 = vector.broadcast %119 : vector<1x128xf32> to vector<16x128xf32>
    %122 = arith.addf %120, %121 : vector<16x128xf32>
    %cst_71 = arith.constant 0.000000e+00 : f32
    %123 = vector.broadcast %cst_71 : f32 to vector<16x128xf32>
    %124 = arith.cmpf ogt, %122, %123 : vector<16x128xf32>
    %cst_72 = arith.constant 2.000000e-01 : f32
    %125 = vector.broadcast %cst_72 : f32 to vector<16x128xf32>
    %126 = arith.mulf %125, %122 : vector<16x128xf32>
    %127 = arith.select %124, %122, %126 : vector<16x128xi1>, vector<16x128xf32>
    %128 = arith.addf %127, %39 : vector<16x128xf32>
    %cst_73 = arith.constant dense<0xFF800000> : vector<16xf32>
    %129 = vector.multi_reduction <maximumf>, %128, %cst_73 [1] : vector<16x128xf32> to vector<16xf32>
    %130 = vector.shape_cast %129 : vector<16xf32> to vector<16x1xf32>
    %131 = vector.broadcast %130 : vector<16x1xf32> to vector<16x128xf32>
    %132 = arith.subf %128, %131 : vector<16x128xf32>
    %133 = math.exp %132 : vector<16x128xf32>
    %cst_74 = arith.constant dense<0.000000e+00> : vector<16xf32>
    %134 = vector.multi_reduction <add>, %133, %cst_74 [1] : vector<16x128xf32> to vector<16xf32>
    %135 = vector.shape_cast %134 : vector<16xf32> to vector<16x1xf32>
    %136 = arith.truncf %133 : vector<16x128xf32> to vector<16x128xbf16>
    %c0_75 = arith.constant 0 : index
    %c192 = arith.constant 192 : index
    %137 = vector.load %arg12[%c0_75, %c192] : memref<128x1024xbf16, #tpu.memory_space<vmem>>, vector<128x64xbf16>
    %cst_76 = arith.constant dense<0.000000e+00> : vector<16x64xf32>
    %138 = tpu.matmul %136, %137, %cst_76 {dimension_numbers = #tpu.dot_dimension_numbers<[1], [0], [0], [1], [0, 0, 1, 1], [], []>} : vector<16x128xbf16>, vector<128x64xbf16>, vector<16x64xf32> -> vector<16x64xf32>
    %139 = tpu.reciprocal %135 {approx = true} : vector<16x1xf32> -> vector<16x1xf32>
    %140 = vector.broadcast %139 : vector<16x1xf32> to vector<16x64xf32>
    %141 = arith.mulf %138, %140 : vector<16x64xf32>
    %142 = arith.truncf %141 : vector<16x64xf32> to vector<16x64xbf16>
    %c0_77 = arith.constant 0 : index
    %c192_78 = arith.constant 192 : index
    %143 = vector.load %arg13[%c0_77, %c192_78] : memref<16x1024xbf16, #tpu.memory_space<vmem>>, vector<16x64xbf16>
    tpu.vector_store %arg13[%c0_77, %c192_78], %142 {strides = array<i32>} : memref<16x1024xbf16, #tpu.memory_space<vmem>>, vector<16x64xbf16>,
    %144 = vector.extract_strided_slice %35 {offsets = [0, 4], sizes = [16, 1], strides = [1, 1]} : vector<16x16xf32> to vector<16x1xf32>
    %145 = vector.extract_strided_slice %38 {offsets = [4, 0], sizes = [1, 128], strides = [1, 1]} : vector<16x128xf32> to vector<1x128xf32>
    %146 = vector.broadcast %144 : vector<16x1xf32> to vector<16x128xf32>
    %147 = vector.broadcast %145 : vector<1x128xf32> to vector<16x128xf32>
    %148 = arith.addf %146, %147 : vector<16x128xf32>
    %cst_79 = arith.constant 0.000000e+00 : f32
    %149 = vector.broadcast %cst_79 : f32 to vector<16x128xf32>
    %150 = arith.cmpf ogt, %148, %149 : vector<16x128xf32>
    %cst_80 = arith.constant 2.000000e-01 : f32
    %151 = vector.broadcast %cst_80 : f32 to vector<16x128xf32>
    %152 = arith.mulf %151, %148 : vector<16x128xf32>
    %153 = arith.select %150, %148, %152 : vector<16x128xi1>, vector<16x128xf32>
    %154 = arith.addf %153, %39 : vector<16x128xf32>
    %cst_81 = arith.constant dense<0xFF800000> : vector<16xf32>
    %155 = vector.multi_reduction <maximumf>, %154, %cst_81 [1] : vector<16x128xf32> to vector<16xf32>
    %156 = vector.shape_cast %155 : vector<16xf32> to vector<16x1xf32>
    %157 = vector.broadcast %156 : vector<16x1xf32> to vector<16x128xf32>
    %158 = arith.subf %154, %157 : vector<16x128xf32>
    %159 = math.exp %158 : vector<16x128xf32>
    %cst_82 = arith.constant dense<0.000000e+00> : vector<16xf32>
    %160 = vector.multi_reduction <add>, %159, %cst_82 [1] : vector<16x128xf32> to vector<16xf32>
    %161 = vector.shape_cast %160 : vector<16xf32> to vector<16x1xf32>
    %162 = arith.truncf %159 : vector<16x128xf32> to vector<16x128xbf16>
    %c0_83 = arith.constant 0 : index
    %c256_84 = arith.constant 256 : index
    %163 = vector.load %arg12[%c0_83, %c256_84] : memref<128x1024xbf16, #tpu.memory_space<vmem>>, vector<128x64xbf16>
    %cst_85 = arith.constant dense<0.000000e+00> : vector<16x64xf32>
    %164 = tpu.matmul %162, %163, %cst_85 {dimension_numbers = #tpu.dot_dimension_numbers<[1], [0], [0], [1], [0, 0, 1, 1], [], []>} : vector<16x128xbf16>, vector<128x64xbf16>, vector<16x64xf32> -> vector<16x64xf32>
    %165 = tpu.reciprocal %161 {approx = true} : vector<16x1xf32> -> vector<16x1xf32>
    %166 = vector.broadcast %165 : vector<16x1xf32> to vector<16x64xf32>
    %167 = arith.mulf %164, %166 : vector<16x64xf32>
    %168 = arith.truncf %167 : vector<16x64xf32> to vector<16x64xbf16>
    %c0_86 = arith.constant 0 : index
    %c256_87 = arith.constant 256 : index
    %169 = vector.load %arg13[%c0_86, %c256_87] : memref<16x1024xbf16, #tpu.memory_space<vmem>>, vector<16x64xbf16>
    tpu.vector_store %arg13[%c0_86, %c256_87], %168 {strides = array<i32>} : memref<16x1024xbf16, #tpu.memory_space<vmem>>, vector<16x64xbf16>,
    %170 = vector.extract_strided_slice %35 {offsets = [0, 5], sizes = [16, 1], strides = [1, 1]} : vector<16x16xf32> to vector<16x1xf32>
    %171 = vector.extract_strided_slice %38 {offsets = [5, 0], sizes = [1, 128], strides = [1, 1]} : vector<16x128xf32> to vector<1x128xf32>
    %172 = vector.broadcast %170 : vector<16x1xf32> to vector<16x128xf32>
    %173 = vector.broadcast %171 : vector<1x128xf32> to vector<16x128xf32>
    %174 = arith.addf %172, %173 : vector<16x128xf32>
    %cst_88 = arith.constant 0.000000e+00 : f32
    %175 = vector.broadcast %cst_88 : f32 to vector<16x128xf32>
    %176 = arith.cmpf ogt, %174, %175 : vector<16x128xf32>
    %cst_89 = arith.constant 2.000000e-01 : f32
    %177 = vector.broadcast %cst_89 : f32 to vector<16x128xf32>
    %178 = arith.mulf %177, %174 : vector<16x128xf32>
    %179 = arith.select %176, %174, %178 : vector<16x128xi1>, vector<16x128xf32>
    %180 = arith.addf %179, %39 : vector<16x128xf32>
    %cst_90 = arith.constant dense<0xFF800000> : vector<16xf32>
    %181 = vector.multi_reduction <maximumf>, %180, %cst_90 [1] : vector<16x128xf32> to vector<16xf32>
    %182 = vector.shape_cast %181 : vector<16xf32> to vector<16x1xf32>
    %183 = vector.broadcast %182 : vector<16x1xf32> to vector<16x128xf32>
    %184 = arith.subf %180, %183 : vector<16x128xf32>
    %185 = math.exp %184 : vector<16x128xf32>
    %cst_91 = arith.constant dense<0.000000e+00> : vector<16xf32>
    %186 = vector.multi_reduction <add>, %185, %cst_91 [1] : vector<16x128xf32> to vector<16xf32>
    %187 = vector.shape_cast %186 : vector<16xf32> to vector<16x1xf32>
    %188 = arith.truncf %185 : vector<16x128xf32> to vector<16x128xbf16>
    %c0_92 = arith.constant 0 : index
    %c320 = arith.constant 320 : index
    %189 = vector.load %arg12[%c0_92, %c320] : memref<128x1024xbf16, #tpu.memory_space<vmem>>, vector<128x64xbf16>
    %cst_93 = arith.constant dense<0.000000e+00> : vector<16x64xf32>
    %190 = tpu.matmul %188, %189, %cst_93 {dimension_numbers = #tpu.dot_dimension_numbers<[1], [0], [0], [1], [0, 0, 1, 1], [], []>} : vector<16x128xbf16>, vector<128x64xbf16>, vector<16x64xf32> -> vector<16x64xf32>
    %191 = tpu.reciprocal %187 {approx = true} : vector<16x1xf32> -> vector<16x1xf32>
    %192 = vector.broadcast %191 : vector<16x1xf32> to vector<16x64xf32>
    %193 = arith.mulf %190, %192 : vector<16x64xf32>
    %194 = arith.truncf %193 : vector<16x64xf32> to vector<16x64xbf16>
    %c0_94 = arith.constant 0 : index
    %c320_95 = arith.constant 320 : index
    %195 = vector.load %arg13[%c0_94, %c320_95] : memref<16x1024xbf16, #tpu.memory_space<vmem>>, vector<16x64xbf16>
    tpu.vector_store %arg13[%c0_94, %c320_95], %194 {strides = array<i32>} : memref<16x1024xbf16, #tpu.memory_space<vmem>>, vector<16x64xbf16>,
    %196 = vector.extract_strided_slice %35 {offsets = [0, 6], sizes = [16, 1], strides = [1, 1]} : vector<16x16xf32> to vector<16x1xf32>
    %197 = vector.extract_strided_slice %38 {offsets = [6, 0], sizes = [1, 128], strides = [1, 1]} : vector<16x128xf32> to vector<1x128xf32>
    %198 = vector.broadcast %196 : vector<16x1xf32> to vector<16x128xf32>
    %199 = vector.broadcast %197 : vector<1x128xf32> to vector<16x128xf32>
    %200 = arith.addf %198, %199 : vector<16x128xf32>
    %cst_96 = arith.constant 0.000000e+00 : f32
    %201 = vector.broadcast %cst_96 : f32 to vector<16x128xf32>
    %202 = arith.cmpf ogt, %200, %201 : vector<16x128xf32>
    %cst_97 = arith.constant 2.000000e-01 : f32
    %203 = vector.broadcast %cst_97 : f32 to vector<16x128xf32>
    %204 = arith.mulf %203, %200 : vector<16x128xf32>
    %205 = arith.select %202, %200, %204 : vector<16x128xi1>, vector<16x128xf32>
    %206 = arith.addf %205, %39 : vector<16x128xf32>
    %cst_98 = arith.constant dense<0xFF800000> : vector<16xf32>
    %207 = vector.multi_reduction <maximumf>, %206, %cst_98 [1] : vector<16x128xf32> to vector<16xf32>
    %208 = vector.shape_cast %207 : vector<16xf32> to vector<16x1xf32>
    %209 = vector.broadcast %208 : vector<16x1xf32> to vector<16x128xf32>
    %210 = arith.subf %206, %209 : vector<16x128xf32>
    %211 = math.exp %210 : vector<16x128xf32>
    %cst_99 = arith.constant dense<0.000000e+00> : vector<16xf32>
    %212 = vector.multi_reduction <add>, %211, %cst_99 [1] : vector<16x128xf32> to vector<16xf32>
    %213 = vector.shape_cast %212 : vector<16xf32> to vector<16x1xf32>
    %214 = arith.truncf %211 : vector<16x128xf32> to vector<16x128xbf16>
    %c0_100 = arith.constant 0 : index
    %c384_101 = arith.constant 384 : index
    %215 = vector.load %arg12[%c0_100, %c384_101] : memref<128x1024xbf16, #tpu.memory_space<vmem>>, vector<128x64xbf16>
    %cst_102 = arith.constant dense<0.000000e+00> : vector<16x64xf32>
    %216 = tpu.matmul %214, %215, %cst_102 {dimension_numbers = #tpu.dot_dimension_numbers<[1], [0], [0], [1], [0, 0, 1, 1], [], []>} : vector<16x128xbf16>, vector<128x64xbf16>, vector<16x64xf32> -> vector<16x64xf32>
    %217 = tpu.reciprocal %213 {approx = true} : vector<16x1xf32> -> vector<16x1xf32>
    %218 = vector.broadcast %217 : vector<16x1xf32> to vector<16x64xf32>
    %219 = arith.mulf %216, %218 : vector<16x64xf32>
    %220 = arith.truncf %219 : vector<16x64xf32> to vector<16x64xbf16>
    %c0_103 = arith.constant 0 : index
    %c384_104 = arith.constant 384 : index
    %221 = vector.load %arg13[%c0_103, %c384_104] : memref<16x1024xbf16, #tpu.memory_space<vmem>>, vector<16x64xbf16>
    tpu.vector_store %arg13[%c0_103, %c384_104], %220 {strides = array<i32>} : memref<16x1024xbf16, #tpu.memory_space<vmem>>, vector<16x64xbf16>,
    %222 = vector.extract_strided_slice %35 {offsets = [0, 7], sizes = [16, 1], strides = [1, 1]} : vector<16x16xf32> to vector<16x1xf32>
    %223 = vector.extract_strided_slice %38 {offsets = [7, 0], sizes = [1, 128], strides = [1, 1]} : vector<16x128xf32> to vector<1x128xf32>
    %224 = vector.broadcast %222 : vector<16x1xf32> to vector<16x128xf32>
    %225 = vector.broadcast %223 : vector<1x128xf32> to vector<16x128xf32>
    %226 = arith.addf %224, %225 : vector<16x128xf32>
    %cst_105 = arith.constant 0.000000e+00 : f32
    %227 = vector.broadcast %cst_105 : f32 to vector<16x128xf32>
    %228 = arith.cmpf ogt, %226, %227 : vector<16x128xf32>
    %cst_106 = arith.constant 2.000000e-01 : f32
    %229 = vector.broadcast %cst_106 : f32 to vector<16x128xf32>
    %230 = arith.mulf %229, %226 : vector<16x128xf32>
    %231 = arith.select %228, %226, %230 : vector<16x128xi1>, vector<16x128xf32>
    %232 = arith.addf %231, %39 : vector<16x128xf32>
    %cst_107 = arith.constant dense<0xFF800000> : vector<16xf32>
    %233 = vector.multi_reduction <maximumf>, %232, %cst_107 [1] : vector<16x128xf32> to vector<16xf32>
    %234 = vector.shape_cast %233 : vector<16xf32> to vector<16x1xf32>
    %235 = vector.broadcast %234 : vector<16x1xf32> to vector<16x128xf32>
    %236 = arith.subf %232, %235 : vector<16x128xf32>
    %237 = math.exp %236 : vector<16x128xf32>
    %cst_108 = arith.constant dense<0.000000e+00> : vector<16xf32>
    %238 = vector.multi_reduction <add>, %237, %cst_108 [1] : vector<16x128xf32> to vector<16xf32>
    %239 = vector.shape_cast %238 : vector<16xf32> to vector<16x1xf32>
    %240 = arith.truncf %237 : vector<16x128xf32> to vector<16x128xbf16>
    %c0_109 = arith.constant 0 : index
    %c448 = arith.constant 448 : index
    %241 = vector.load %arg12[%c0_109, %c448] : memref<128x1024xbf16, #tpu.memory_space<vmem>>, vector<128x64xbf16>
    %cst_110 = arith.constant dense<0.000000e+00> : vector<16x64xf32>
    %242 = tpu.matmul %240, %241, %cst_110 {dimension_numbers = #tpu.dot_dimension_numbers<[1], [0], [0], [1], [0, 0, 1, 1], [], []>} : vector<16x128xbf16>, vector<128x64xbf16>, vector<16x64xf32> -> vector<16x64xf32>
    %243 = tpu.reciprocal %239 {approx = true} : vector<16x1xf32> -> vector<16x1xf32>
    %244 = vector.broadcast %243 : vector<16x1xf32> to vector<16x64xf32>
    %245 = arith.mulf %242, %244 : vector<16x64xf32>
    %246 = arith.truncf %245 : vector<16x64xf32> to vector<16x64xbf16>
    %c0_111 = arith.constant 0 : index
    %c448_112 = arith.constant 448 : index
    %247 = vector.load %arg13[%c0_111, %c448_112] : memref<16x1024xbf16, #tpu.memory_space<vmem>>, vector<16x64xbf16>
    tpu.vector_store %arg13[%c0_111, %c448_112], %246 {strides = array<i32>} : memref<16x1024xbf16, #tpu.memory_space<vmem>>, vector<16x64xbf16>,
    %c0_113 = arith.constant 0 : index
    %c128_114 = arith.constant 128 : index
    %248 = vector.load %arg2[%c0_113, %c128_114] : memref<16x256xf32, #tpu.memory_space<vmem>>, vector<16x128xf32>
    %249 = vector.extract_strided_slice %35 {offsets = [0, 8], sizes = [16, 1], strides = [1, 1]} : vector<16x16xf32> to vector<16x1xf32>
    %250 = vector.extract_strided_slice %38 {offsets = [8, 0], sizes = [1, 128], strides = [1, 1]} : vector<16x128xf32> to vector<1x128xf32>
    %251 = vector.broadcast %249 : vector<16x1xf32> to vector<16x128xf32>
    %252 = vector.broadcast %250 : vector<1x128xf32> to vector<16x128xf32>
    %253 = arith.addf %251, %252 : vector<16x128xf32>
    %cst_115 = arith.constant 0.000000e+00 : f32
    %254 = vector.broadcast %cst_115 : f32 to vector<16x128xf32>
    %255 = arith.cmpf ogt, %253, %254 : vector<16x128xf32>
    %cst_116 = arith.constant 2.000000e-01 : f32
    %256 = vector.broadcast %cst_116 : f32 to vector<16x128xf32>
    %257 = arith.mulf %256, %253 : vector<16x128xf32>
    %258 = arith.select %255, %253, %257 : vector<16x128xi1>, vector<16x128xf32>
    %259 = arith.addf %258, %248 : vector<16x128xf32>
    %cst_117 = arith.constant dense<0xFF800000> : vector<16xf32>
    %260 = vector.multi_reduction <maximumf>, %259, %cst_117 [1] : vector<16x128xf32> to vector<16xf32>
    %261 = vector.shape_cast %260 : vector<16xf32> to vector<16x1xf32>
    %262 = vector.broadcast %261 : vector<16x1xf32> to vector<16x128xf32>
    %263 = arith.subf %259, %262 : vector<16x128xf32>
    %264 = math.exp %263 : vector<16x128xf32>
    %cst_118 = arith.constant dense<0.000000e+00> : vector<16xf32>
    %265 = vector.multi_reduction <add>, %264, %cst_118 [1] : vector<16x128xf32> to vector<16xf32>
    %266 = vector.shape_cast %265 : vector<16xf32> to vector<16x1xf32>
    %267 = arith.truncf %264 : vector<16x128xf32> to vector<16x128xbf16>
    %c0_119 = arith.constant 0 : index
    %c512_120 = arith.constant 512 : index
    %268 = vector.load %arg12[%c0_119, %c512_120] : memref<128x1024xbf16, #tpu.memory_space<vmem>>, vector<128x64xbf16>
    %cst_121 = arith.constant dense<0.000000e+00> : vector<16x64xf32>
    %269 = tpu.matmul %267, %268, %cst_121 {dimension_numbers = #tpu.dot_dimension_numbers<[1], [0], [0], [1], [0, 0, 1, 1], [], []>} : vector<16x128xbf16>, vector<128x64xbf16>, vector<16x64xf32> -> vector<16x64xf32>
    %270 = tpu.reciprocal %266 {approx = true} : vector<16x1xf32> -> vector<16x1xf32>
    %271 = vector.broadcast %270 : vector<16x1xf32> to vector<16x64xf32>
    %272 = arith.mulf %269, %271 : vector<16x64xf32>
    %273 = arith.truncf %272 : vector<16x64xf32> to vector<16x64xbf16>
    %c0_122 = arith.constant 0 : index
    %c512_123 = arith.constant 512 : index
    %274 = vector.load %arg13[%c0_122, %c512_123] : memref<16x1024xbf16, #tpu.memory_space<vmem>>, vector<16x64xbf16>
    tpu.vector_store %arg13[%c0_122, %c512_123], %273 {strides = array<i32>} : memref<16x1024xbf16, #tpu.memory_space<vmem>>, vector<16x64xbf16>,
    %275 = vector.extract_strided_slice %35 {offsets = [0, 9], sizes = [16, 1], strides = [1, 1]} : vector<16x16xf32> to vector<16x1xf32>
    %276 = vector.extract_strided_slice %38 {offsets = [9, 0], sizes = [1, 128], strides = [1, 1]} : vector<16x128xf32> to vector<1x128xf32>
    %277 = vector.broadcast %275 : vector<16x1xf32> to vector<16x128xf32>
    %278 = vector.broadcast %276 : vector<1x128xf32> to vector<16x128xf32>
    %279 = arith.addf %277, %278 : vector<16x128xf32>
    %cst_124 = arith.constant 0.000000e+00 : f32
    %280 = vector.broadcast %cst_124 : f32 to vector<16x128xf32>
    %281 = arith.cmpf ogt, %279, %280 : vector<16x128xf32>
    %cst_125 = arith.constant 2.000000e-01 : f32
    %282 = vector.broadcast %cst_125 : f32 to vector<16x128xf32>
    %283 = arith.mulf %282, %279 : vector<16x128xf32>
    %284 = arith.select %281, %279, %283 : vector<16x128xi1>, vector<16x128xf32>
    %285 = arith.addf %284, %248 : vector<16x128xf32>
    %cst_126 = arith.constant dense<0xFF800000> : vector<16xf32>
    %286 = vector.multi_reduction <maximumf>, %285, %cst_126 [1] : vector<16x128xf32> to vector<16xf32>
    %287 = vector.shape_cast %286 : vector<16xf32> to vector<16x1xf32>
    %288 = vector.broadcast %287 : vector<16x1xf32> to vector<16x128xf32>
    %289 = arith.subf %285, %288 : vector<16x128xf32>
    %290 = math.exp %289 : vector<16x128xf32>
    %cst_127 = arith.constant dense<0.000000e+00> : vector<16xf32>
    %291 = vector.multi_reduction <add>, %290, %cst_127 [1] : vector<16x128xf32> to vector<16xf32>
    %292 = vector.shape_cast %291 : vector<16xf32> to vector<16x1xf32>
    %293 = arith.truncf %290 : vector<16x128xf32> to vector<16x128xbf16>
    %c0_128 = arith.constant 0 : index
    %c576 = arith.constant 576 : index
    %294 = vector.load %arg12[%c0_128, %c576] : memref<128x1024xbf16, #tpu.memory_space<vmem>>, vector<128x64xbf16>
    %cst_129 = arith.constant dense<0.000000e+00> : vector<16x64xf32>
    %295 = tpu.matmul %293, %294, %cst_129 {dimension_numbers = #tpu.dot_dimension_numbers<[1], [0], [0], [1], [0, 0, 1, 1], [], []>} : vector<16x128xbf16>, vector<128x64xbf16>, vector<16x64xf32> -> vector<16x64xf32>
    %296 = tpu.reciprocal %292 {approx = true} : vector<16x1xf32> -> vector<16x1xf32>
    %297 = vector.broadcast %296 : vector<16x1xf32> to vector<16x64xf32>
    %298 = arith.mulf %295, %297 : vector<16x64xf32>
    %299 = arith.truncf %298 : vector<16x64xf32> to vector<16x64xbf16>
    %c0_130 = arith.constant 0 : index
    %c576_131 = arith.constant 576 : index
    %300 = vector.load %arg13[%c0_130, %c576_131] : memref<16x1024xbf16, #tpu.memory_space<vmem>>, vector<16x64xbf16>
    tpu.vector_store %arg13[%c0_130, %c576_131], %299 {strides = array<i32>} : memref<16x1024xbf16, #tpu.memory_space<vmem>>, vector<16x64xbf16>,
    %301 = vector.extract_strided_slice %35 {offsets = [0, 10], sizes = [16, 1], strides = [1, 1]} : vector<16x16xf32> to vector<16x1xf32>
    %302 = vector.extract_strided_slice %38 {offsets = [10, 0], sizes = [1, 128], strides = [1, 1]} : vector<16x128xf32> to vector<1x128xf32>
    %303 = vector.broadcast %301 : vector<16x1xf32> to vector<16x128xf32>
    %304 = vector.broadcast %302 : vector<1x128xf32> to vector<16x128xf32>
    %305 = arith.addf %303, %304 : vector<16x128xf32>
    %cst_132 = arith.constant 0.000000e+00 : f32
    %306 = vector.broadcast %cst_132 : f32 to vector<16x128xf32>
    %307 = arith.cmpf ogt, %305, %306 : vector<16x128xf32>
    %cst_133 = arith.constant 2.000000e-01 : f32
    %308 = vector.broadcast %cst_133 : f32 to vector<16x128xf32>
    %309 = arith.mulf %308, %305 : vector<16x128xf32>
    %310 = arith.select %307, %305, %309 : vector<16x128xi1>, vector<16x128xf32>
    %311 = arith.addf %310, %248 : vector<16x128xf32>
    %cst_134 = arith.constant dense<0xFF800000> : vector<16xf32>
    %312 = vector.multi_reduction <maximumf>, %311, %cst_134 [1] : vector<16x128xf32> to vector<16xf32>
    %313 = vector.shape_cast %312 : vector<16xf32> to vector<16x1xf32>
    %314 = vector.broadcast %313 : vector<16x1xf32> to vector<16x128xf32>
    %315 = arith.subf %311, %314 : vector<16x128xf32>
    %316 = math.exp %315 : vector<16x128xf32>
    %cst_135 = arith.constant dense<0.000000e+00> : vector<16xf32>
    %317 = vector.multi_reduction <add>, %316, %cst_135 [1] : vector<16x128xf32> to vector<16xf32>
    %318 = vector.shape_cast %317 : vector<16xf32> to vector<16x1xf32>
    %319 = arith.truncf %316 : vector<16x128xf32> to vector<16x128xbf16>
    %c0_136 = arith.constant 0 : index
    %c640_137 = arith.constant 640 : index
    %320 = vector.load %arg12[%c0_136, %c640_137] : memref<128x1024xbf16, #tpu.memory_space<vmem>>, vector<128x64xbf16>
    %cst_138 = arith.constant dense<0.000000e+00> : vector<16x64xf32>
    %321 = tpu.matmul %319, %320, %cst_138 {dimension_numbers = #tpu.dot_dimension_numbers<[1], [0], [0], [1], [0, 0, 1, 1], [], []>} : vector<16x128xbf16>, vector<128x64xbf16>, vector<16x64xf32> -> vector<16x64xf32>
    %322 = tpu.reciprocal %318 {approx = true} : vector<16x1xf32> -> vector<16x1xf32>
    %323 = vector.broadcast %322 : vector<16x1xf32> to vector<16x64xf32>
    %324 = arith.mulf %321, %323 : vector<16x64xf32>
    %325 = arith.truncf %324 : vector<16x64xf32> to vector<16x64xbf16>
    %c0_139 = arith.constant 0 : index
    %c640_140 = arith.constant 640 : index
    %326 = vector.load %arg13[%c0_139, %c640_140] : memref<16x1024xbf16, #tpu.memory_space<vmem>>, vector<16x64xbf16>
    tpu.vector_store %arg13[%c0_139, %c640_140], %325 {strides = array<i32>} : memref<16x1024xbf16, #tpu.memory_space<vmem>>, vector<16x64xbf16>,
    %327 = vector.extract_strided_slice %35 {offsets = [0, 11], sizes = [16, 1], strides = [1, 1]} : vector<16x16xf32> to vector<16x1xf32>
    %328 = vector.extract_strided_slice %38 {offsets = [11, 0], sizes = [1, 128], strides = [1, 1]} : vector<16x128xf32> to vector<1x128xf32>
    %329 = vector.broadcast %327 : vector<16x1xf32> to vector<16x128xf32>
    %330 = vector.broadcast %328 : vector<1x128xf32> to vector<16x128xf32>
    %331 = arith.addf %329, %330 : vector<16x128xf32>
    %cst_141 = arith.constant 0.000000e+00 : f32
    %332 = vector.broadcast %cst_141 : f32 to vector<16x128xf32>
    %333 = arith.cmpf ogt, %331, %332 : vector<16x128xf32>
    %cst_142 = arith.constant 2.000000e-01 : f32
    %334 = vector.broadcast %cst_142 : f32 to vector<16x128xf32>
    %335 = arith.mulf %334, %331 : vector<16x128xf32>
    %336 = arith.select %333, %331, %335 : vector<16x128xi1>, vector<16x128xf32>
    %337 = arith.addf %336, %248 : vector<16x128xf32>
    %cst_143 = arith.constant dense<0xFF800000> : vector<16xf32>
    %338 = vector.multi_reduction <maximumf>, %337, %cst_143 [1] : vector<16x128xf32> to vector<16xf32>
    %339 = vector.shape_cast %338 : vector<16xf32> to vector<16x1xf32>
    %340 = vector.broadcast %339 : vector<16x1xf32> to vector<16x128xf32>
    %341 = arith.subf %337, %340 : vector<16x128xf32>
    %342 = math.exp %341 : vector<16x128xf32>
    %cst_144 = arith.constant dense<0.000000e+00> : vector<16xf32>
    %343 = vector.multi_reduction <add>, %342, %cst_144 [1] : vector<16x128xf32> to vector<16xf32>
    %344 = vector.shape_cast %343 : vector<16xf32> to vector<16x1xf32>
    %345 = arith.truncf %342 : vector<16x128xf32> to vector<16x128xbf16>
    %c0_145 = arith.constant 0 : index
    %c704 = arith.constant 704 : index
    %346 = vector.load %arg12[%c0_145, %c704] : memref<128x1024xbf16, #tpu.memory_space<vmem>>, vector<128x64xbf16>
    %cst_146 = arith.constant dense<0.000000e+00> : vector<16x64xf32>
    %347 = tpu.matmul %345, %346, %cst_146 {dimension_numbers = #tpu.dot_dimension_numbers<[1], [0], [0], [1], [0, 0, 1, 1], [], []>} : vector<16x128xbf16>, vector<128x64xbf16>, vector<16x64xf32> -> vector<16x64xf32>
    %348 = tpu.reciprocal %344 {approx = true} : vector<16x1xf32> -> vector<16x1xf32>
    %349 = vector.broadcast %348 : vector<16x1xf32> to vector<16x64xf32>
    %350 = arith.mulf %347, %349 : vector<16x64xf32>
    %351 = arith.truncf %350 : vector<16x64xf32> to vector<16x64xbf16>
    %c0_147 = arith.constant 0 : index
    %c704_148 = arith.constant 704 : index
    %352 = vector.load %arg13[%c0_147, %c704_148] : memref<16x1024xbf16, #tpu.memory_space<vmem>>, vector<16x64xbf16>
    tpu.vector_store %arg13[%c0_147, %c704_148], %351 {strides = array<i32>} : memref<16x1024xbf16, #tpu.memory_space<vmem>>, vector<16x64xbf16>,
    %353 = vector.extract_strided_slice %35 {offsets = [0, 12], sizes = [16, 1], strides = [1, 1]} : vector<16x16xf32> to vector<16x1xf32>
    %354 = vector.extract_strided_slice %38 {offsets = [12, 0], sizes = [1, 128], strides = [1, 1]} : vector<16x128xf32> to vector<1x128xf32>
    %355 = vector.broadcast %353 : vector<16x1xf32> to vector<16x128xf32>
    %356 = vector.broadcast %354 : vector<1x128xf32> to vector<16x128xf32>
    %357 = arith.addf %355, %356 : vector<16x128xf32>
    %cst_149 = arith.constant 0.000000e+00 : f32
    %358 = vector.broadcast %cst_149 : f32 to vector<16x128xf32>
    %359 = arith.cmpf ogt, %357, %358 : vector<16x128xf32>
    %cst_150 = arith.constant 2.000000e-01 : f32
    %360 = vector.broadcast %cst_150 : f32 to vector<16x128xf32>
    %361 = arith.mulf %360, %357 : vector<16x128xf32>
    %362 = arith.select %359, %357, %361 : vector<16x128xi1>, vector<16x128xf32>
    %363 = arith.addf %362, %248 : vector<16x128xf32>
    %cst_151 = arith.constant dense<0xFF800000> : vector<16xf32>
    %364 = vector.multi_reduction <maximumf>, %363, %cst_151 [1] : vector<16x128xf32> to vector<16xf32>
    %365 = vector.shape_cast %364 : vector<16xf32> to vector<16x1xf32>
    %366 = vector.broadcast %365 : vector<16x1xf32> to vector<16x128xf32>
    %367 = arith.subf %363, %366 : vector<16x128xf32>
    %368 = math.exp %367 : vector<16x128xf32>
    %cst_152 = arith.constant dense<0.000000e+00> : vector<16xf32>
    %369 = vector.multi_reduction <add>, %368, %cst_152 [1] : vector<16x128xf32> to vector<16xf32>
    %370 = vector.shape_cast %369 : vector<16xf32> to vector<16x1xf32>
    %371 = arith.truncf %368 : vector<16x128xf32> to vector<16x128xbf16>
    %c0_153 = arith.constant 0 : index
    %c768_154 = arith.constant 768 : index
    %372 = vector.load %arg12[%c0_153, %c768_154] : memref<128x1024xbf16, #tpu.memory_space<vmem>>, vector<128x64xbf16>
    %cst_155 = arith.constant dense<0.000000e+00> : vector<16x64xf32>
    %373 = tpu.matmul %371, %372, %cst_155 {dimension_numbers = #tpu.dot_dimension_numbers<[1], [0], [0], [1], [0, 0, 1, 1], [], []>} : vector<16x128xbf16>, vector<128x64xbf16>, vector<16x64xf32> -> vector<16x64xf32>
    %374 = tpu.reciprocal %370 {approx = true} : vector<16x1xf32> -> vector<16x1xf32>
    %375 = vector.broadcast %374 : vector<16x1xf32> to vector<16x64xf32>
    %376 = arith.mulf %373, %375 : vector<16x64xf32>
    %377 = arith.truncf %376 : vector<16x64xf32> to vector<16x64xbf16>
    %c0_156 = arith.constant 0 : index
    %c768_157 = arith.constant 768 : index
    %378 = vector.load %arg13[%c0_156, %c768_157] : memref<16x1024xbf16, #tpu.memory_space<vmem>>, vector<16x64xbf16>
    tpu.vector_store %arg13[%c0_156, %c768_157], %377 {strides = array<i32>} : memref<16x1024xbf16, #tpu.memory_space<vmem>>, vector<16x64xbf16>,
    %379 = vector.extract_strided_slice %35 {offsets = [0, 13], sizes = [16, 1], strides = [1, 1]} : vector<16x16xf32> to vector<16x1xf32>
    %380 = vector.extract_strided_slice %38 {offsets = [13, 0], sizes = [1, 128], strides = [1, 1]} : vector<16x128xf32> to vector<1x128xf32>
    %381 = vector.broadcast %379 : vector<16x1xf32> to vector<16x128xf32>
    %382 = vector.broadcast %380 : vector<1x128xf32> to vector<16x128xf32>
    %383 = arith.addf %381, %382 : vector<16x128xf32>
    %cst_158 = arith.constant 0.000000e+00 : f32
    %384 = vector.broadcast %cst_158 : f32 to vector<16x128xf32>
    %385 = arith.cmpf ogt, %383, %384 : vector<16x128xf32>
    %cst_159 = arith.constant 2.000000e-01 : f32
    %386 = vector.broadcast %cst_159 : f32 to vector<16x128xf32>
    %387 = arith.mulf %386, %383 : vector<16x128xf32>
    %388 = arith.select %385, %383, %387 : vector<16x128xi1>, vector<16x128xf32>
    %389 = arith.addf %388, %248 : vector<16x128xf32>
    %cst_160 = arith.constant dense<0xFF800000> : vector<16xf32>
    %390 = vector.multi_reduction <maximumf>, %389, %cst_160 [1] : vector<16x128xf32> to vector<16xf32>
    %391 = vector.shape_cast %390 : vector<16xf32> to vector<16x1xf32>
    %392 = vector.broadcast %391 : vector<16x1xf32> to vector<16x128xf32>
    %393 = arith.subf %389, %392 : vector<16x128xf32>
    %394 = math.exp %393 : vector<16x128xf32>
    %cst_161 = arith.constant dense<0.000000e+00> : vector<16xf32>
    %395 = vector.multi_reduction <add>, %394, %cst_161 [1] : vector<16x128xf32> to vector<16xf32>
    %396 = vector.shape_cast %395 : vector<16xf32> to vector<16x1xf32>
    %397 = arith.truncf %394 : vector<16x128xf32> to vector<16x128xbf16>
    %c0_162 = arith.constant 0 : index
    %c832 = arith.constant 832 : index
    %398 = vector.load %arg12[%c0_162, %c832] : memref<128x1024xbf16, #tpu.memory_space<vmem>>, vector<128x64xbf16>
    %cst_163 = arith.constant dense<0.000000e+00> : vector<16x64xf32>
    %399 = tpu.matmul %397, %398, %cst_163 {dimension_numbers = #tpu.dot_dimension_numbers<[1], [0], [0], [1], [0, 0, 1, 1], [], []>} : vector<16x128xbf16>, vector<128x64xbf16>, vector<16x64xf32> -> vector<16x64xf32>
    %400 = tpu.reciprocal %396 {approx = true} : vector<16x1xf32> -> vector<16x1xf32>
    %401 = vector.broadcast %400 : vector<16x1xf32> to vector<16x64xf32>
    %402 = arith.mulf %399, %401 : vector<16x64xf32>
    %403 = arith.truncf %402 : vector<16x64xf32> to vector<16x64xbf16>
    %c0_164 = arith.constant 0 : index
    %c832_165 = arith.constant 832 : index
    %404 = vector.load %arg13[%c0_164, %c832_165] : memref<16x1024xbf16, #tpu.memory_space<vmem>>, vector<16x64xbf16>
    tpu.vector_store %arg13[%c0_164, %c832_165], %403 {strides = array<i32>} : memref<16x1024xbf16, #tpu.memory_space<vmem>>, vector<16x64xbf16>,
    %405 = vector.extract_strided_slice %35 {offsets = [0, 14], sizes = [16, 1], strides = [1, 1]} : vector<16x16xf32> to vector<16x1xf32>
    %406 = vector.extract_strided_slice %38 {offsets = [14, 0], sizes = [1, 128], strides = [1, 1]} : vector<16x128xf32> to vector<1x128xf32>
    %407 = vector.broadcast %405 : vector<16x1xf32> to vector<16x128xf32>
    %408 = vector.broadcast %406 : vector<1x128xf32> to vector<16x128xf32>
    %409 = arith.addf %407, %408 : vector<16x128xf32>
    %cst_166 = arith.constant 0.000000e+00 : f32
    %410 = vector.broadcast %cst_166 : f32 to vector<16x128xf32>
    %411 = arith.cmpf ogt, %409, %410 : vector<16x128xf32>
    %cst_167 = arith.constant 2.000000e-01 : f32
    %412 = vector.broadcast %cst_167 : f32 to vector<16x128xf32>
    %413 = arith.mulf %412, %409 : vector<16x128xf32>
    %414 = arith.select %411, %409, %413 : vector<16x128xi1>, vector<16x128xf32>
    %415 = arith.addf %414, %248 : vector<16x128xf32>
    %cst_168 = arith.constant dense<0xFF800000> : vector<16xf32>
    %416 = vector.multi_reduction <maximumf>, %415, %cst_168 [1] : vector<16x128xf32> to vector<16xf32>
    %417 = vector.shape_cast %416 : vector<16xf32> to vector<16x1xf32>
    %418 = vector.broadcast %417 : vector<16x1xf32> to vector<16x128xf32>
    %419 = arith.subf %415, %418 : vector<16x128xf32>
    %420 = math.exp %419 : vector<16x128xf32>
    %cst_169 = arith.constant dense<0.000000e+00> : vector<16xf32>
    %421 = vector.multi_reduction <add>, %420, %cst_169 [1] : vector<16x128xf32> to vector<16xf32>
    %422 = vector.shape_cast %421 : vector<16xf32> to vector<16x1xf32>
    %423 = arith.truncf %420 : vector<16x128xf32> to vector<16x128xbf16>
    %c0_170 = arith.constant 0 : index
    %c896_171 = arith.constant 896 : index
    %424 = vector.load %arg12[%c0_170, %c896_171] : memref<128x1024xbf16, #tpu.memory_space<vmem>>, vector<128x64xbf16>
    %cst_172 = arith.constant dense<0.000000e+00> : vector<16x64xf32>
    %425 = tpu.matmul %423, %424, %cst_172 {dimension_numbers = #tpu.dot_dimension_numbers<[1], [0], [0], [1], [0, 0, 1, 1], [], []>} : vector<16x128xbf16>, vector<128x64xbf16>, vector<16x64xf32> -> vector<16x64xf32>
    %426 = tpu.reciprocal %422 {approx = true} : vector<16x1xf32> -> vector<16x1xf32>
    %427 = vector.broadcast %426 : vector<16x1xf32> to vector<16x64xf32>
    %428 = arith.mulf %425, %427 : vector<16x64xf32>
    %429 = arith.truncf %428 : vector<16x64xf32> to vector<16x64xbf16>
    %c0_173 = arith.constant 0 : index
    %c896_174 = arith.constant 896 : index
    %430 = vector.load %arg13[%c0_173, %c896_174] : memref<16x1024xbf16, #tpu.memory_space<vmem>>, vector<16x64xbf16>
    tpu.vector_store %arg13[%c0_173, %c896_174], %429 {strides = array<i32>} : memref<16x1024xbf16, #tpu.memory_space<vmem>>, vector<16x64xbf16>,
    %431 = vector.extract_strided_slice %35 {offsets = [0, 15], sizes = [16, 1], strides = [1, 1]} : vector<16x16xf32> to vector<16x1xf32>
    %432 = vector.extract_strided_slice %38 {offsets = [15, 0], sizes = [1, 128], strides = [1, 1]} : vector<16x128xf32> to vector<1x128xf32>
    %433 = vector.broadcast %431 : vector<16x1xf32> to vector<16x128xf32>
    %434 = vector.broadcast %432 : vector<1x128xf32> to vector<16x128xf32>
    %435 = arith.addf %433, %434 : vector<16x128xf32>
    %cst_175 = arith.constant 0.000000e+00 : f32
    %436 = vector.broadcast %cst_175 : f32 to vector<16x128xf32>
    %437 = arith.cmpf ogt, %435, %436 : vector<16x128xf32>
    %cst_176 = arith.constant 2.000000e-01 : f32
    %438 = vector.broadcast %cst_176 : f32 to vector<16x128xf32>
    %439 = arith.mulf %438, %435 : vector<16x128xf32>
    %440 = arith.select %437, %435, %439 : vector<16x128xi1>, vector<16x128xf32>
    %441 = arith.addf %440, %248 : vector<16x128xf32>
    %cst_177 = arith.constant dense<0xFF800000> : vector<16xf32>
    %442 = vector.multi_reduction <maximumf>, %441, %cst_177 [1] : vector<16x128xf32> to vector<16xf32>
    %443 = vector.shape_cast %442 : vector<16xf32> to vector<16x1xf32>
    %444 = vector.broadcast %443 : vector<16x1xf32> to vector<16x128xf32>
    %445 = arith.subf %441, %444 : vector<16x128xf32>
    %446 = math.exp %445 : vector<16x128xf32>
    %cst_178 = arith.constant dense<0.000000e+00> : vector<16xf32>
    %447 = vector.multi_reduction <add>, %446, %cst_178 [1] : vector<16x128xf32> to vector<16xf32>
    %448 = vector.shape_cast %447 : vector<16xf32> to vector<16x1xf32>
    %449 = arith.truncf %446 : vector<16x128xf32> to vector<16x128xbf16>
    %c0_179 = arith.constant 0 : index
    %c960 = arith.constant 960 : index
    %450 = vector.load %arg12[%c0_179, %c960] : memref<128x1024xbf16, #tpu.memory_space<vmem>>, vector<128x64xbf16>
    %cst_180 = arith.constant dense<0.000000e+00> : vector<16x64xf32>
    %451 = tpu.matmul %449, %450, %cst_180 {dimension_numbers = #tpu.dot_dimension_numbers<[1], [0], [0], [1], [0, 0, 1, 1], [], []>} : vector<16x128xbf16>, vector<128x64xbf16>, vector<16x64xf32> -> vector<16x64xf32>
    %452 = tpu.reciprocal %448 {approx = true} : vector<16x1xf32> -> vector<16x1xf32>
    %453 = vector.broadcast %452 : vector<16x1xf32> to vector<16x64xf32>
    %454 = arith.mulf %451, %453 : vector<16x64xf32>
    %455 = arith.truncf %454 : vector<16x64xf32> to vector<16x64xbf16>
    %c0_181 = arith.constant 0 : index
    %c960_182 = arith.constant 960 : index
    %456 = vector.load %arg13[%c0_181, %c960_182] : memref<16x1024xbf16, #tpu.memory_space<vmem>>, vector<16x64xbf16>
    tpu.vector_store %arg13[%c0_181, %c960_182], %455 {strides = array<i32>} : memref<16x1024xbf16, #tpu.memory_space<vmem>>, vector<16x64xbf16>,
    %c0_183 = arith.constant 0 : index
    %c0_184 = arith.constant 0 : index
    %457 = vector.load %arg13[%c0_183, %c0_184] : memref<16x1024xbf16, #tpu.memory_space<vmem>>, vector<16x1024xbf16>
    %c0_185 = arith.constant 0 : index
    %c0_186 = arith.constant 0 : index
    %458 = vector.load %arg7[%c0_185, %c0_186] : memref<1024x256xbf16, #tpu.memory_space<vmem>>, vector<1024x256xbf16>
    %cst_187 = arith.constant dense<0.000000e+00> : vector<16x256xf32>
    %459 = tpu.matmul %457, %458, %cst_187 {dimension_numbers = #tpu.dot_dimension_numbers<[1], [0], [0], [1], [0, 0, 1, 1], [], []>} : vector<16x1024xbf16>, vector<1024x256xbf16>, vector<16x256xf32> -> vector<16x256xf32>
    %c0_188 = arith.constant 0 : index
    %c0_189 = arith.constant 0 : index
    %460 = vector.load %arg10[%c0_188, %c0_189] : memref<8x256xf32, #tpu.memory_space<vmem>>, vector<1x256xf32>
    %461 = vector.broadcast %460 : vector<1x256xf32> to vector<16x256xf32>
    %462 = arith.addf %459, %461 : vector<16x256xf32>
    %cst_190 = arith.constant 0.000000e+00 : f32
    %463 = vector.broadcast %cst_190 : f32 to vector<16x256xf32>
    %464 = arith.cmpf ogt, %462, %463 : vector<16x256xf32>
    %cst_191 = arith.constant 1.000000e-01 : f32
    %465 = vector.broadcast %cst_191 : f32 to vector<16x256xf32>
    %466 = arith.mulf %465, %462 : vector<16x256xf32>
    %467 = arith.select %464, %462, %466 : vector<16x256xi1>, vector<16x256xf32>
    %468 = arith.truncf %467 : vector<16x256xf32> to vector<16x256xbf16>
    %c0_192 = arith.constant 0 : index
    %c0_193 = arith.constant 0 : index
    %469 = vector.load %arg8[%c0_192, %c0_193] : memref<256x64xbf16, #tpu.memory_space<vmem>>, vector<256x64xbf16>
    %cst_194 = arith.constant dense<0.000000e+00> : vector<16x64xf32>
    %470 = tpu.matmul %468, %469, %cst_194 {dimension_numbers = #tpu.dot_dimension_numbers<[1], [0], [0], [1], [0, 0, 1, 1], [], []>} : vector<16x256xbf16>, vector<256x64xbf16>, vector<16x64xf32> -> vector<16x64xf32>
    %c1 = arith.constant 1 : index
    %c0_195 = arith.constant 0 : index
    %471 = vector.load %arg10[%c1, %c0_195] : memref<8x256xf32, #tpu.memory_space<vmem>>, vector<1x64xf32>
    %472 = vector.broadcast %471 : vector<1x64xf32> to vector<16x64xf32>
    %473 = arith.addf %470, %472 : vector<16x64xf32>
    %cst_196 = arith.constant 0.000000e+00 : f32
    %474 = vector.broadcast %cst_196 : f32 to vector<16x64xf32>
    %475 = arith.cmpf ogt, %473, %474 : vector<16x64xf32>
    %cst_197 = arith.constant 1.000000e-01 : f32
    %476 = vector.broadcast %cst_197 : f32 to vector<16x64xf32>
    %477 = arith.mulf %476, %473 : vector<16x64xf32>
    %478 = arith.select %475, %473, %477 : vector<16x64xi1>, vector<16x64xf32>
    %479 = arith.truncf %478 : vector<16x64xf32> to vector<16x64xbf16>
    %c0_198 = arith.constant 0 : index
    %c0_199 = arith.constant 0 : index
    %480 = vector.load %arg9[%c0_198, %c0_199] : memref<128x128xbf16, #tpu.memory_space<vmem>>, vector<64x32xbf16>
    %cst_200 = arith.constant dense<0.000000e+00> : vector<16x32xf32>
    %481 = tpu.matmul %479, %480, %cst_200 {dimension_numbers = #tpu.dot_dimension_numbers<[1], [0], [0], [1], [0, 0, 1, 1], [], []>} : vector<16x64xbf16>, vector<64x32xbf16>, vector<16x32xf32> -> vector<16x32xf32>
    %c2 = arith.constant 2 : index
    %c0_201 = arith.constant 0 : index
    %482 = vector.load %arg10[%c2, %c0_201] : memref<8x256xf32, #tpu.memory_space<vmem>>, vector<1x32xf32>
    %483 = vector.broadcast %482 : vector<1x32xf32> to vector<16x32xf32>
    %484 = arith.addf %481, %483 : vector<16x32xf32>
    %cst_202 = arith.constant 0.000000e+00 : f32
    %485 = vector.broadcast %cst_202 : f32 to vector<16x32xf32>
    %486 = arith.cmpf ogt, %484, %485 : vector<16x32xf32>
    %cst_203 = arith.constant 1.000000e-01 : f32
    %487 = vector.broadcast %cst_203 : f32 to vector<16x32xf32>
    %488 = arith.mulf %487, %484 : vector<16x32xf32>
    %489 = arith.select %486, %484, %488 : vector<16x32xi1>, vector<16x32xf32>
    %490 = arith.truncf %489 : vector<16x32xf32> to vector<16x32xbf16>
    %c64_204 = arith.constant 64 : index
    %c0_205 = arith.constant 0 : index
    %491 = vector.load %arg9[%c64_204, %c0_205] : memref<128x128xbf16, #tpu.memory_space<vmem>>, vector<32x32xbf16>
    %cst_206 = arith.constant dense<0.000000e+00> : vector<16x32xf32>
    %492 = tpu.matmul %490, %491, %cst_206 {dimension_numbers = #tpu.dot_dimension_numbers<[1], [0], [0], [1], [0, 0, 1, 1], [], []>} : vector<16x32xbf16>, vector<32x32xbf16>, vector<16x32xf32> -> vector<16x32xf32>
    %c3 = arith.constant 3 : index
    %c0_207 = arith.constant 0 : index
    %493 = vector.load %arg10[%c3, %c0_207] : memref<8x256xf32, #tpu.memory_space<vmem>>, vector<1x32xf32>
    %494 = vector.broadcast %493 : vector<1x32xf32> to vector<16x32xf32>
    %495 = arith.addf %492, %494 : vector<16x32xf32>
    %cst_208 = arith.constant 0.000000e+00 : f32
    %496 = vector.broadcast %cst_208 : f32 to vector<16x32xf32>
    %497 = arith.cmpf ogt, %495, %496 : vector<16x32xf32>
    %cst_209 = arith.constant 1.000000e-01 : f32
    %498 = vector.broadcast %cst_209 : f32 to vector<16x32xf32>
    %499 = arith.mulf %498, %495 : vector<16x32xf32>
    %500 = arith.select %497, %495, %499 : vector<16x32xi1>, vector<16x32xf32>
    %c0_210 = arith.constant 0 : index
    %c0_211 = arith.constant 0 : index
    %501 = vector.load %arg3[%c0_210, %c0_211] : memref<8x16xf32, #tpu.memory_space<vmem>>, vector<8x16xf32>
    %cst_212 = arith.constant dense<0.000000e+00> : vector<8x32xf32>
    %502 = tpu.matmul %501, %500, %cst_212 {dimension_numbers = #tpu.dot_dimension_numbers<[1], [0], [0], [1], [0, 0, 1, 1], [], []>} : vector<8x16xf32>, vector<16x32xf32>, vector<8x32xf32> -> vector<8x32xf32>
    %503 = arith.truncf %502 : vector<8x32xf32> to vector<8x32xbf16>
    %c96 = arith.constant 96 : index
    %c0_213 = arith.constant 0 : index
    %504 = vector.load %arg9[%c96, %c0_213] : memref<128x128xbf16, #tpu.memory_space<vmem>>, vector<32x128xbf16>
    %cst_214 = arith.constant dense<0.000000e+00> : vector<8x128xf32>
    %505 = tpu.matmul %503, %504, %cst_214 {dimension_numbers = #tpu.dot_dimension_numbers<[1], [0], [0], [1], [0, 0, 1, 1], [], []>} : vector<8x32xbf16>, vector<32x128xbf16>, vector<8x128xf32> -> vector<8x128xf32>
    %c4 = arith.constant 4 : index
    %c0_215 = arith.constant 0 : index
    %506 = vector.load %arg10[%c4, %c0_215] : memref<8x256xf32, #tpu.memory_space<vmem>>, vector<1x128xf32>
    %507 = vector.broadcast %506 : vector<1x128xf32> to vector<8x128xf32>
    %508 = arith.addf %505, %507 : vector<8x128xf32>
    %509 = arith.mulf %502, %502 : vector<8x32xf32>
    %cst_216 = arith.constant dense<0.000000e+00> : vector<8xf32>
    %510 = vector.multi_reduction <add>, %509, %cst_216 [1] : vector<8x32xf32> to vector<8xf32>
    %511 = vector.shape_cast %510 : vector<8xf32> to vector<8x1xf32>
    %cst_217 = arith.constant dense<0.000000e+00> : vector<1xf32>
    %512 = vector.multi_reduction <add>, %511, %cst_217 [0] : vector<8x1xf32> to vector<1xf32>
    %513 = vector.shape_cast %512 : vector<1xf32> to vector<1x1xf32>
    %cst_218 = arith.constant 1.562500e-02 : f32
    %514 = vector.broadcast %cst_218 : f32 to vector<1x1xf32>
    %515 = arith.mulf %513, %514 : vector<1x1xf32>
    %516 = tpu.iota {dimensions = array<i32: 0>} : vector<8x128xi32>
    %c7_i32 = arith.constant 7 : i32
    %517 = vector.broadcast %c7_i32 : i32 to vector<8x128xi32>
    %518 = arith.cmpi eq, %516, %517 : vector<8x128xi32>
    %519 = vector.shape_cast %515 : vector<1x1xf32> to vector<1x1xf32>
    %520 = vector.broadcast %519 : vector<1x1xf32> to vector<8x128xf32>
    %521 = arith.select %518, %520, %508 : vector<8x128xi1>, vector<8x128xf32>
    %c0_219 = arith.constant 0 : index
    %c0_220 = arith.constant 0 : index
    %522 = vector.load %arg11[%c0_219, %c0_220] : memref<8x128xf32, #tpu.memory_space<vmem>>, vector<8x128xf32>
    tpu.vector_store %arg11[%c0_219, %c0_220], %521 {strides = array<i32>} : memref<8x128xf32, #tpu.memory_space<vmem>>, vector<8x128xf32>,
    return
  }
}

</mosaic_0001>

<bundles_post_ra>
// kernel: fwd.1
= control target key start
LH: loop header
LB: loop body
LE: loop exit
PB: predicated region body
PF: predicated region fallthrough
CT: control target
= control target key end

     0   :  { %16 = vsyncpa [#allocation5], 0  ;;  %s8462_s0 = inlined_call_operand.vmem [shape: bf16[128,128], index: 0, kind: input, shape index: {}]   ;;  %s8463_s1 = inlined_call_operand.vmem [shape: bf16[128,128], index: 1, kind: input, shape index: {}]   ;;  %s8464_s2 = inlined_call_operand.vmem [shape: f32[16,256], index: 2, kind: input, shape index: {}]   ;;  %s8465_s3 = inlined_call_operand.hbm [shape: f32[8,16], index: 3, kind: input, shape index: {}]   ;;  %s8466_s4 = inlined_call_operand.hbm [shape: bf16[128,1024], index: 4, kind: input, shape index: {}]   ;;  %s8467_s5 = inlined_call_operand.vmem [shape: bf16[128,16], index: 5, kind: input, shape index: {}]   ;;  %s8468_s6 = inlined_call_operand.hbm [shape: bf16[16,128], index: 6, kind: input, shape index: {}]   ;;  %s8469_s7 = inlined_call_operand.hbm [shape: bf16[1024,256], index: 7, kind: input, shape index: {}]   ;;  %s8470_s8 = inlined_call_operand.vmem [shape: bf16[256,64], index: 8, kind: input, shape index: {}]   ;;  %s8471_s9 = inlined_call_operand.vmem [shape: bf16[128,128], index: 9, kind: input, shape index: {}]   ;;  %s8472_s10 = inlined_call_operand.hbm [shape: f32[8,256], index: 10, kind: input, shape index: {}]   ;;  %s8473_s11 = inlined_call_operand.vmem [shape: f32[8,128], index: 11, kind: output, shape index: {}]  }
   0x1   :  { %17 = vsyncpa [#allocation7], 0 }
   0x2   :  { %18 = vsyncpa [#allocation10], 0  ;;  %s6836_s17 = smov [#allocation6]   ;;  %s6720_s21 = scalar_lea.hbm %s8466_s4, 8192 }
   0x3   :  { %s40_s18 = sshll.u32 %s6836_s17, 4  ;;  %p6721_p0 = scmp.ne.s32.totalorder %s8466_s4, %s6720_s21  ;;  %s41_s18 = int_to_ptr.vmem [resolvable:$true] %s40_s18 }
   0x4   :  { %p6724_p1 = scmp.lt.u32.totalorder %s6720_s21, %s8466_s4 }
   0x6   :  { %p6726_p2 = pnand %p6724_p1, %p6721_p0 }
   0x8   :  { %6729 = shalt.err (!%p6726_p2)
}
   0x9   :  { %s6730_s26 = scalar_lea.vmem %s41_s18, 8192  ;;  %p6735_p4 = scmp.lt.s32.totalorder %s41_s18, %s41_s18 }
   0xa   :  { %p6731_p3 = scmp.ne.s32.totalorder %s41_s18, %s6730_s26  ;;  %p6736_p5 = scmp.lt.s32.totalorder %s6730_s26, %s6730_s26 }
   0xc   :  { %p6737_p6 = por %p6736_p5, %p6735_p4 }
   0xe   :  { %p6738_p7 = pnand %p6737_p6, %p6731_p3 }
  0x10   :  { %6741 = shalt.err (!%p6738_p7)
}
  0x11   :  { %s6837_s27 = smov 512   ;;  %s6838_s28 = smov 32  }
  0x12   :  { %46 = dma.hbm_to_vmem [thread:$0]  %s8466_s4, 8192, %s41_s18, [#allocation7], %s6837_s27, %s6837_s27, %s6838_s28  }
  0x13   :  { %s6839_s12 = smov [#allocation9]   ;;  %s6742_s16 = scalar_lea.hbm %s8469_s7, 16384 }
  0x14   :  { %s66_s13 = sshll.u32 %s6839_s12, 4  ;;  %p6743_p8 = scmp.ne.s32.totalorder %s8469_s7, %s6742_s16  ;;  %s67_s13 = int_to_ptr.vmem [resolvable:$true] %s66_s13 }
  0x15   :  { %p6746_p9 = scmp.lt.u32.totalorder %s6742_s16, %s8469_s7 }
  0x17   :  { %p6748_p10 = pnand %p6746_p9, %p6743_p8 }
  0x19   :  { %6751 = shalt.err (!%p6748_p10)
}
  0x1a   :  { %s6752_s22 = scalar_lea.vmem %s67_s13, 16384  ;;  %p6757_p12 = scmp.lt.s32.totalorder %s67_s13, %s67_s13 }
  0x1b   :  { %p6753_p11 = scmp.ne.s32.totalorder %s67_s13, %s6752_s22  ;;  %p6758_p13 = scmp.lt.s32.totalorder %s6752_s22, %s6752_s22 }
  0x1d   :  { %p6759_p0 = por %p6758_p13, %p6757_p12 }
  0x1f   :  { %p6760_p1 = pnand %p6759_p0, %p6753_p11 }
  0x21   :  { %6763 = shalt.err (!%p6760_p1)
}
  0x22   :  { %s6840_s4 = smov 128   ;;  %s6841_s18 = smov 8  }
  0x23   :  { %72 = dma.hbm_to_vmem [thread:$0]  %s8469_s7, 16384, %s67_s13, [#allocation10], %s6840_s4, %s6840_s4, %s6841_s18  }
  0x24   :  { %s6842_s25 = smov [#allocation4]   ;;  %s6843_s27 = smov [#allocation8]  }
  0x25   :  { %s31_s26 = sshll.u32 %s6842_s25, 4  ;;  %s54_s28 = sshll.u32 %s6843_s27, 4  ;;  %s32_s26 = int_to_ptr.vmem [resolvable:$true] %s31_s26  ;;  %s6950_s28 = int_to_ptr.vmem [resolvable:$true] %s54_s28 }
  0x26   :  { %s6764_s12 = scalar_lea.hbm %s8465_s3, 128 }
  0x27   :  { %p6765_p2 = scmp.ne.s32.totalorder %s8465_s3, %s6764_s12  ;;  %p6768_p3 = scmp.lt.u32.totalorder %s6764_s12, %s8465_s3 }
  0x29   :  { %p6770_p4 = pnand %p6768_p3, %p6765_p2 }
  0x2b   :  { %6773 = shalt.err (!%p6770_p4)
}
  0x2c   :  { %s6774_s7 = scalar_lea.vmem %s32_s26, 128  ;;  %p6779_p6 = scmp.lt.s32.totalorder %s32_s26, %s32_s26 }
  0x2d   :  { %p6775_p5 = scmp.ne.s32.totalorder %s32_s26, %s6774_s7  ;;  %p6780_p7 = scmp.lt.s32.totalorder %s6774_s7, %s6774_s7 }
  0x2f   :  { %p6781_p8 = por %p6780_p7, %p6779_p6 }
  0x31   :  { %p6782_p9 = pnand %p6781_p8, %p6775_p5 }
  0x33   :  { %6785 = shalt.err (!%p6782_p9)
}
  0x34   :  { %34 = dma.hbm_to_vmem [thread:$0]  %s8465_s3, 128, %s32_s26, [#allocation5]  }
  0x35   :  { %s6786_s22 = scalar_lea.hbm %s8468_s6, 128 }
  0x36   :  { %p6787_p10 = scmp.ne.s32.totalorder %s8468_s6, %s6786_s22  ;;  %p6790_p11 = scmp.lt.u32.totalorder %s6786_s22, %s8468_s6 }
  0x38   :  { %p6792_p12 = pnand %p6790_p11, %p6787_p10 }
  0x3a   :  { %6795 = shalt.err (!%p6792_p12)
}
  0x3b   :  { %s6796_s25 = scalar_lea.vmem %s6950_s28, 128  ;;  %p6801_p0 = scmp.lt.s32.totalorder %s6950_s28, %s6950_s28 }
  0x3c   :  { %p6797_p13 = scmp.ne.s32.totalorder %s6950_s28, %s6796_s25  ;;  %p6802_p1 = scmp.lt.s32.totalorder %s6796_s25, %s6796_s25 }
  0x3e   :  { %p6803_p2 = por %p6802_p1, %p6801_p0 }
  0x40   :  { %p6804_p3 = pnand %p6803_p2, %p6797_p13 }
  0x42   :  { %6807 = shalt.err (!%p6804_p3)
}
  0x43   :  { %s6844_s3 = smov 64   ;;  %s6845_s26 = smov 4  }
  0x44   :  { %60 = dma.hbm_to_vmem [thread:$0]  %s8468_s6, 128, %s6950_s28, [#allocation7], %s6844_s3, %s6844_s3, %s6845_s26  }
  0x45   :  { %s6846_s30 = smov [#allocation11]   ;;  %s6808_s16 = scalar_lea.hbm %s8472_s10, 256 }
  0x46   :  { %s83_s12 = sshll.u32 %s6846_s30, 4  ;;  %p6809_p4 = scmp.ne.s32.totalorder %s8472_s10, %s6808_s16  ;;  %s84_s12 = int_to_ptr.vmem [resolvable:$true] %s83_s12 }
  0x47   :  { %p6812_p5 = scmp.lt.u32.totalorder %s6808_s16, %s8472_s10 }
  0x49   :  { %p6814_p6 = pnand %p6812_p5, %p6809_p4 }
  0x4b   :  { %6817 = shalt.err (!%p6814_p6)
}
  0x4c   :  { %s6818_s20 = scalar_lea.vmem %s84_s12, 256  ;;  %p6823_p8 = scmp.lt.s32.totalorder %s84_s12, %s84_s12 }
  0x4d   :  { %p6819_p7 = scmp.ne.s32.totalorder %s84_s12, %s6818_s20  ;;  %p6824_p9 = scmp.lt.s32.totalorder %s6818_s20, %s6818_s20 }
  0x4f   :  { %p6825_p10 = por %p6824_p9, %p6823_p8 }
  0x51   :  { %p6826_p11 = pnand %p6825_p10, %p6819_p7 }
  0x53   :  { %6829 = shalt.err (!%p6826_p11)
}
  0x54   :  { %86 = dma.hbm_to_vmem [thread:$0]  %s8472_s10, 256, %s84_s12, [#allocation10]  }
  0x55   :  { %6830 = dma.done.wait [#allocation5], 128  }
  0x56   :  { %6831 = vsyncadd [#allocation5], 4294967168 }
  0x57   :  { %6832 = dma.done.wait [#allocation7], 8320  }
  0x58   :  { %6833 = vsyncadd [#allocation7], 4294958976 }
  0x59   :  { %6834 = dma.done.wait [#allocation10], 16640  }
  0x5a   :  { %6835 = vsyncadd [#allocation10], 4294950656  ;;  %v119_v0 = vld [vmem:[#allocation6] sm:$0xf]  ;;  %v521_v2 = vld [vmem:[#allocation6 + $0x8] sm:$0xf] }
  0x5b   :  { %v120_v1 = vld [vmem:[#allocation6 + $0x20] sm:$0xf]  ;;  %v522_v4 = vld [vmem:[#allocation6 + $0x28] sm:$0xf]  ;;  %v6998_v28 = vld [vmem:[%s8462_s0] sm:$0xff]   ;;  %vm6848_vm0 = vmmov 0  }
  0x5c   :  { %v5047_v3 = vcombine.low %v119_v0, %v120_v1  ;;  %v121_v5 = vld [vmem:[#allocation6 + $0x40] sm:$0xf]  ;;  %v5063_v7 = vcombine.low %v521_v2, %v522_v4  ;;  %v523_v9 = vld [vmem:[#allocation6 + $0x48] sm:$0xf]  ;;  %5627 = vmatprep.mubr.bf16.mxu1 %v6998_v28  ;;  %5691 = vmatprep.mubr.bf16.mxu0 %v6998_v28  ;;  %v344_v49 = vld [vmem:[#allocation6 + $0x4] sm:$0xf] }
  0x5d   :  { %v122_v6 = vld [vmem:[#allocation6 + $0x60] sm:$0xf]  ;;  %v524_v10 = vld [vmem:[#allocation6 + $0x68] sm:$0xf]  ;;  %v345_v50 = vld [vmem:[#allocation6 + $0x24] sm:$0xf] }
  0x5e   :  { %v5048_v8 = vcombine.low %v121_v5, %v122_v6  ;;  %v123_v11 = vld [vmem:[#allocation6 + $0x80] sm:$0xf]  ;;  %5611 = vmatprep.subr.bf16.mxu1 %v5047_v3  ;;  %v5064_v12 = vcombine.low %v523_v9, %v524_v10  ;;  %v525_v14 = vld [vmem:[#allocation6 + $0x88] sm:$0xf]  ;;  %5675 = vmatprep.subr.bf16.mxu0 %v5063_v7  ;;  %v875_v51 = vld [vmem:[#allocation6 + $0x10] sm:$0xf]  ;;  %v5055_v53 = vcombine.low %v344_v49, %v345_v50 }
  0x5f   :  { %v124_v13 = vld [vmem:[#allocation6 + $0xa0] sm:$0xf]  ;;  %v526_v15 = vld [vmem:[#allocation6 + $0xa8] sm:$0xf]  ;;  %5612 = vmatpush3.bf16.msra.mxu1 %v5047_v3  ;;  %5676 = vmatpush3.bf16.msra.mxu0 %v5063_v7  ;;  %v876_v52 = vld [vmem:[#allocation6 + $0x30] sm:$0xf] }
  0x60   :  { %5613 = vmatprep.subr.bf16.mxu1 %v5048_v8  ;;  %v5049_v16 = vcombine.low %v123_v11, %v124_v13  ;;  %5677 = vmatprep.subr.bf16.mxu0 %v5064_v12  ;;  %v5065_v17 = vcombine.low %v525_v14, %v526_v15  ;;  %v125_v18 = vld [vmem:[#allocation6 + $0xc0] sm:$0xf]  ;;  %v527_v20 = vld [vmem:[#allocation6 + $0xc8] sm:$0xf]  ;;  %v5079_v54 = vcombine.low %v875_v51, %v876_v52  ;;  %v346_v55 = vld [vmem:[#allocation6 + $0x44] sm:$0xf] }
  0x61   :  { %v126_v19 = vld [vmem:[#allocation6 + $0xe0] sm:$0xf]  ;;  %v528_v21 = vld [vmem:[#allocation6 + $0xe8] sm:$0xf]  ;;  %v347_v56 = vld [vmem:[#allocation6 + $0x64] sm:$0xf] }
  0x62   :  { %v5050_v22 = vcombine.low %v125_v18, %v126_v19  ;;  %v127_v23 = vld [vmem:[#allocation6 + $0x100] sm:$0xf]  ;;  %v5066_v25 = vcombine.low %v527_v20, %v528_v21  ;;  %v529_v26 = vld [vmem:[#allocation6 + $0x108] sm:$0xf]  ;;  %v877_v58 = vld [vmem:[#allocation6 + $0x50] sm:$0xf]  ;;  %v5056_v60 = vcombine.low %v346_v55, %v347_v56 }
  0x63   :  { %5614 = vmatpush3.bf16.msra.mxu1 %v5048_v8  ;;  %5678 = vmatpush3.bf16.msra.mxu0 %v5064_v12  ;;  %v128_v24 = vld [vmem:[#allocation6 + $0x120] sm:$0xf]  ;;  %v530_v27 = vld [vmem:[#allocation6 + $0x128] sm:$0xf]  ;;  %v878_v59 = vld [vmem:[#allocation6 + $0x70] sm:$0xf] }
  0x64   :  { %5615 = vmatprep.subr.bf16.mxu1 %v5049_v16  ;;  %5679 = vmatprep.subr.bf16.mxu0 %v5065_v17  ;;  %v5051_v29 = vcombine.low %v127_v23, %v128_v24  ;;  %v5067_v30 = vcombine.low %v529_v26, %v530_v27  ;;  %v129_v31 = vld [vmem:[#allocation6 + $0x140] sm:$0xf]  ;;  %v531_v33 = vld [vmem:[#allocation6 + $0x148] sm:$0xf]  ;;  %v5080_v61 = vcombine.low %v877_v58, %v878_v59  ;;  %v348_v63 = vld [vmem:[#allocation6 + $0x84] sm:$0xf] }
  0x65   :  { %v130_v32 = vld [vmem:[#allocation6 + $0x160] sm:$0xf]  ;;  %v532_v34 = vld [vmem:[#allocation6 + $0x168] sm:$0xf]  ;;  %v349_v0 = vld [vmem:[#allocation6 + $0xa4] sm:$0xf] }
  0x66   :  { %v5052_v35 = vcombine.low %v129_v31, %v130_v32  ;;  %v5068_v36 = vcombine.low %v531_v33, %v532_v34  ;;  %v131_v37 = vld [vmem:[#allocation6 + $0x180] sm:$0xf]  ;;  %v533_v39 = vld [vmem:[#allocation6 + $0x188] sm:$0xf]  ;;  %v879_v1 = vld [vmem:[#allocation6 + $0x90] sm:$0xf]  ;;  %v5057_v3 = vcombine.low %v348_v63, %v349_v0 }
  0x67   :  { %5616 = vmatpush3.bf16.msra.mxu1 %v5049_v16  ;;  %5680 = vmatpush3.bf16.msra.mxu0 %v5065_v17  ;;  %v132_v38 = vld [vmem:[#allocation6 + $0x1a0] sm:$0xf]  ;;  %v534_v40 = vld [vmem:[#allocation6 + $0x1a8] sm:$0xf]  ;;  %v880_v2 = vld [vmem:[#allocation6 + $0xb0] sm:$0xf] }
  0x68   :  { %5617 = vmatprep.subr.bf16.mxu1 %v5050_v22  ;;  %5681 = vmatprep.subr.bf16.mxu0 %v5066_v25  ;;  %v5053_v41 = vcombine.low %v131_v37, %v132_v38  ;;  %v5069_v42 = vcombine.low %v533_v39, %v534_v40  ;;  %v133_v43 = vld [vmem:[#allocation6 + $0x1c0] sm:$0xf]  ;;  %v535_v45 = vld [vmem:[#allocation6 + $0x1c8] sm:$0xf]  ;;  %v5081_v4 = vcombine.low %v879_v1, %v880_v2  ;;  %v350_v5 = vld [vmem:[#allocation6 + $0xc4] sm:$0xf] }
  0x69   :  { %v134_v44 = vld [vmem:[#allocation6 + $0x1e0] sm:$0xf]  ;;  %v536_v46 = vld [vmem:[#allocation6 + $0x1e8] sm:$0xf]  ;;  %v351_v6 = vld [vmem:[#allocation6 + $0xe4] sm:$0xf] }
  0x6a   :  { %v5054_v47 = vcombine.low %v133_v43, %v134_v44  ;;  %v5070_v48 = vcombine.low %v535_v45, %v536_v46  ;;  %v7005_v57 = vld [vmem:[%s8462_s0 + $0x8] sm:$0xff]   ;;  %v7010_v62 = vld [vmem:[%s8462_s0 + $0x10] sm:$0xff]   ;;  %v7019_v7 = vld [vmem:[%s8462_s0 + $0x18] sm:$0xff]   ;;  %v5058_v12 = vcombine.low %v350_v5, %v351_v6 }
  0x6b   :  { %5618 = vmatpush3.bf16.msra.mxu1 %v5050_v22  ;;  %5682 = vmatpush3.bf16.msra.mxu0 %v5066_v25  ;;  %v881_v8 = vld [vmem:[#allocation6 + $0xd0] sm:$0xf]  ;;  %v7024_v10 = vld [vmem:[%s8462_s0 + $0x20] sm:$0xff]   ;;  %v352_v11 = vld [vmem:[#allocation6 + $0x104] sm:$0xf] }
  0x6c   :  { %5619 = vmatprep.subr.bf16.mxu1 %v5051_v29  ;;  %5683 = vmatprep.subr.bf16.mxu0 %v5067_v30  ;;  %v882_v9 = vld [vmem:[#allocation6 + $0xf0] sm:$0xf]  ;;  %v353_v13 = vld [vmem:[#allocation6 + $0x124] sm:$0xf]  ;;  %v7038_v26 = vld [vmem:[%s8462_s0 + $0x30] sm:$0xff]  }
  0x6d   :  { %v5082_v14 = vcombine.low %v881_v8, %v882_v9  ;;  %v883_v15 = vld [vmem:[#allocation6 + $0x110] sm:$0xf]  ;;  %v354_v17 = vld [vmem:[#allocation6 + $0x144] sm:$0xf]  ;;  %v5059_v19 = vcombine.low %v352_v11, %v353_v13  ;;  %v1229_v43 = vld [vmem:[#allocation6 + $0x18] sm:$0xf] }
  0x6e   :  { %v884_v16 = vld [vmem:[#allocation6 + $0x130] sm:$0xf]  ;;  %v7031_v18 = vld [vmem:[%s8462_s0 + $0x28] sm:$0xff]   ;;  %v1230_v44 = vld [vmem:[#allocation6 + $0x38] sm:$0xf] }
  0x6f   :  { %5620 = vmatpush3.bf16.msra.mxu1 %v5051_v29  ;;  %5684 = vmatpush3.bf16.msra.mxu0 %v5067_v30  ;;  %v355_v20 = vld [vmem:[#allocation6 + $0x164] sm:$0xf]  ;;  %v5083_v21 = vcombine.low %v883_v15, %v884_v16  ;;  %v885_v22 = vld [vmem:[#allocation6 + $0x150] sm:$0xf]  ;;  %v700_v45 = vld [vmem:[#allocation6 + $0x4c] sm:$0xf] }
  0x70   :  { %5621 = vmatprep.subr.bf16.mxu1 %v5052_v35  ;;  %5685 = vmatprep.subr.bf16.mxu0 %v5068_v36  ;;  %v886_v23 = vld [vmem:[#allocation6 + $0x170] sm:$0xf]  ;;  %v5060_v24 = vcombine.low %v354_v17, %v355_v20  ;;  %v356_v27 = vld [vmem:[#allocation6 + $0x184] sm:$0xf]  ;;  %v1231_v49 = vld [vmem:[#allocation6 + $0x58] sm:$0xf] }
  0x71   :  { %v5084_v25 = vcombine.low %v885_v22, %v886_v23  ;;  %v357_v29 = vld [vmem:[#allocation6 + $0x1a4] sm:$0xf]  ;;  %v887_v30 = vld [vmem:[#allocation6 + $0x190] sm:$0xf]  ;;  %v1232_v50 = vld [vmem:[#allocation6 + $0x78] sm:$0xf] }
  0x72   :  { %v888_v31 = vld [vmem:[#allocation6 + $0x1b0] sm:$0xf]  ;;  %v5061_v32 = vcombine.low %v356_v27, %v357_v29  ;;  %v358_v34 = vld [vmem:[#allocation6 + $0x1c4] sm:$0xf]  ;;  %v702_v51 = vld [vmem:[#allocation6 + $0x8c] sm:$0xf]  ;;  %v5096_v56 = vcombine.low %v1231_v49, %v1232_v50 }
  0x73   :  { %5622 = vmatpush3.bf16.msra.mxu1 %v5052_v35  ;;  %5686 = vmatpush3.bf16.msra.mxu0 %v5068_v36  ;;  %v5085_v33 = vcombine.low %v887_v30, %v888_v31  ;;  %v359_v35 = vld [vmem:[#allocation6 + $0x1e4] sm:$0xf]  ;;  %v7047_v36 = vld [vmem:[%s8462_s0 + $0x38] sm:$0xff]   ;;  %v703_v52 = vld [vmem:[#allocation6 + $0xac] sm:$0xf] }
  0x74   :  { %5623 = vmatprep.subr.bf16.mxu1 %v5053_v41  ;;  %5687 = vmatprep.subr.bf16.mxu0 %v5069_v42  ;;  %v889_v37 = vld [vmem:[#allocation6 + $0x1d0] sm:$0xf]  ;;  %v5062_v39 = vcombine.low %v358_v34, %v359_v35  ;;  %v1234_v55 = vld [vmem:[#allocation6 + $0xb8] sm:$0xf]  ;;  %v704_v58 = vld [vmem:[#allocation6 + $0xcc] sm:$0xf] }
  0x75   :  { %v890_v38 = vld [vmem:[#allocation6 + $0x1f0] sm:$0xf]  ;;  %v705_v59 = vld [vmem:[#allocation6 + $0xec] sm:$0xf]  ;;  %v1236_v63 = vld [vmem:[#allocation6 + $0xf8] sm:$0xf] }
  0x76   :  { %v5086_v40 = vcombine.low %v889_v37, %v890_v38  ;;  %v706_v1 = vld [vmem:[#allocation6 + $0x10c] sm:$0xf]  ;;  %v1238_v5 = vld [vmem:[#allocation6 + $0x138] sm:$0xf]  ;;  %v1052_v30 = vld [vmem:[#allocation6 + $0x14] sm:$0xf] }
  0x77   :  { %5624 = vmatpush3.bf16.msra.mxu1 %v5053_v41  ;;  %5688 = vmatpush3.bf16.msra.mxu0 %v5069_v42  ;;  %v698_v41 = vld [vmem:[#allocation6 + $0xc] sm:$0xf]  ;;  %v1240_v13 = vld [vmem:[#allocation6 + $0x178] sm:$0xf]  ;;  %v1053_v31 = vld [vmem:[#allocation6 + $0x34] sm:$0xf] }
  0x78   :  { %5625 = vmatprep.subr.bf16.mxu1 %v5054_v47  ;;  %5689 = vmatprep.subr.bf16.mxu0 %v5070_v48  ;;  %v699_v42 = vld [vmem:[#allocation6 + $0x2c] sm:$0xf]  ;;  %v1242_v20 = vld [vmem:[#allocation6 + $0x1b8] sm:$0xf]  ;;  %v5087_v34 = vcombine.low %v1052_v30, %v1053_v31  ;;  %v1054_v35 = vld [vmem:[#allocation6 + $0x54] sm:$0xf] }
  0x79   :  { %v5071_v46 = vcombine.low %v698_v41, %v699_v42  ;;  %v707_v2 = vld [vmem:[#allocation6 + $0x12c] sm:$0xf]  ;;  %v1244_v27 = vld [vmem:[#allocation6 + $0x1f8] sm:$0xf]  ;;  %v1055_v37 = vld [vmem:[#allocation6 + $0x74] sm:$0xf] }
  0x7a   :  { %v708_v8 = vld [vmem:[#allocation6 + $0x14c] sm:$0xf]  ;;  %v5075_v11 = vcombine.low %v706_v1, %v707_v2  ;;  %v6352_v38 = vld [vmem:[%s8467_s5] sm:$0xff]   ;;  %v1057_v41 = vld [vmem:[#allocation6 + $0xb4] sm:$0xf] }
  0x7b   :  { %5626 = vmatpush3.bf16.msra.mxu1 %v5054_v47  ;;  %5690 = vmatpush3.bf16.msra.mxu0 %v5070_v48  ;;  %v701_v47 = vld [vmem:[#allocation6 + $0x6c] sm:$0xf]  ;;  %v5095_v48 = vcombine.low %v1229_v43, %v1230_v44  ;;  %v6353_v42 = vld [vmem:[%s8467_s5 + $0x8] sm:$0xff]   ;;  %v5088_v43 = vcombine.low %v1054_v35, %v1055_v37  ;;  %v1059_v44 = vld [vmem:[#allocation6 + $0xf4] sm:$0xf] }
  0x7c   :  { %5643 = vmatprep.subr.bf16.mxu1 %v5055_v53  ;;  %5739 = vmatprep.subr.bf16.mxu0 %v5079_v54  ;;  %v709_v9 = vld [vmem:[#allocation6 + $0x16c] sm:$0xf]  ;;  %v6355_v49 = vld [vmem:[%s8467_s5 + $0x18] sm:$0xff]   ;;  %v1406_v1 = vld [vmem:[#allocation6 + $0x1c] sm:$0xf] }
  0x7d   :  { %v710_v15 = vld [vmem:[#allocation6 + $0x18c] sm:$0xf]  ;;  %v5076_v17 = vcombine.low %v708_v8, %v709_v9  ;;  %v1407_v2 = vld [vmem:[#allocation6 + $0x3c] sm:$0xf]  ;;  %v6715_v31 = vld [vmem:[%s8462_s0 + $0x8] sm:$0xff]  }
  0x7e   :  { %5628 = vmatmul.mubr.bf16.vlgmr.msra.gmra.mrb[0].mxu1 %v7005_v57  ;;  %5692 = vmatmul.mubr.bf16.vlgmr.msra.gmra.mrb[0].mxu0 %v7005_v57  ;;  %v711_v16 = vld [vmem:[#allocation6 + $0x1ac] sm:$0xf]  ;;  %v6360_v8 = vld [vmem:[%s8462_s0] sm:$0xff]   ;;  %v6717_v35 = vld [vmem:[%s8462_s0 + $0x18] sm:$0xff]  }
  0x7f   :  { %5644 = vmatpush3.bf16.msra.mxu1 %v5055_v53  ;;  %5740 = vmatpush3.bf16.msra.mxu0 %v5079_v54  ;;  %v5072_v53 = vcombine.low %v700_v45, %v701_v47  ;;  %v1233_v54 = vld [vmem:[#allocation6 + $0x98] sm:$0xf]  ;;  %v712_v22 = vld [vmem:[#allocation6 + $0x1cc] sm:$0xf]  ;;  %v1060_v47 = vld [vmem:[#allocation6 + $0x114] sm:$0xf] }
  0x80   :  { %5645 = vmatprep.subr.bf16.mxu1 %v5056_v60  ;;  %5741 = vmatprep.subr.bf16.mxu0 %v5080_v61  ;;  %v5097_v0 = vcombine.low %v1233_v54, %v1234_v55  ;;  %v713_v23 = vld [vmem:[#allocation6 + $0x1ec] sm:$0xf]  ;;  %v1064_v55 = vld [vmem:[#allocation6 + $0x194] sm:$0xf]  ;;  %v1408_v9 = vld [vmem:[#allocation6 + $0x5c] sm:$0xf] }
  0x81   :  { %5631 = vmatprep.mubr.bf16.mxu1 %v7010_v62  ;;  %5695 = vmatprep.mubr.bf16.mxu0 %v7010_v62  ;;  %v6354_v45 = vld [vmem:[%s8467_s5 + $0x10] sm:$0xff]   ;;  %v6361_v30 = vld [vmem:[%s8463_s1] sm:$0xff]   ;;  %v6364_v37 = vld [vmem:[%s8463_s1 + $0x18] sm:$0xff]  }
  0x83   :  { %5646 = vmatpush3.bf16.msra.mxu1 %v5056_v60  ;;  %5742 = vmatpush3.bf16.msra.mxu0 %v5080_v61  ;;  %v5073_v60 = vcombine.low %v702_v51, %v703_v52  ;;  %v1235_v61 = vld [vmem:[#allocation6 + $0xd8] sm:$0xf]  ;;  %v1062_v51 = vld [vmem:[#allocation6 + $0x154] sm:$0xf] }
  0x84   :  { %5647 = vmatprep.subr.bf16.mxu1 %v5057_v3  ;;  %5743 = vmatprep.subr.bf16.mxu0 %v5081_v4  ;;  %v5098_v6 = vcombine.low %v1235_v61, %v1236_v63  ;;  %v1063_v52 = vld [vmem:[#allocation6 + $0x174] sm:$0xf] }
  0x85   :  { %v1067_v61 = vld [vmem:[#allocation6 + $0x1f4] sm:$0xf] }
  0x86   :  { %5632 = vmatmul.mubr.bf16.gmra.mrb[4].mxu1 %v7019_v7  ;;  %5696 = vmatmul.mubr.bf16.gmra.mrb[4].mxu0 %v7019_v7 }
  0x87   :  { %5648 = vmatpush3.bf16.msra.mxu1 %v5057_v3  ;;  %5744 = vmatpush3.bf16.msra.mxu0 %v5081_v4  ;;  %v5074_v3 = vcombine.low %v704_v58, %v705_v59  ;;  %v1237_v4 = vld [vmem:[#allocation6 + $0x118] sm:$0xf]  ;;  %v5092_v58 = vcombine.low %v1062_v51, %v1063_v52  ;;  %v6357_v59 = vld [vmem:[%s8467_s5 + $0x28] sm:$0xff]  }
  0x88   :  { %5649 = vmatprep.subr.bf16.mxu1 %v5058_v12  ;;  %5745 = vmatprep.subr.bf16.mxu0 %v5082_v14 }
  0x89   :  { %5635 = vmatprep.mubr.bf16.mxu1 %v7024_v10  ;;  %5699 = vmatprep.mubr.bf16.mxu0 %v7024_v10 }
  0x8b   :  { %5650 = vmatpush3.bf16.msra.mxu1 %v5058_v12  ;;  %5746 = vmatpush3.bf16.msra.mxu0 %v5082_v14  ;;  %v1239_v12 = vld [vmem:[#allocation6 + $0x158] sm:$0xf]  ;;  %v5099_v14 = vcombine.low %v1237_v4, %v1238_v5  ;;  %v6359_v5 = vld [vmem:[%s8467_s5 + $0x38] sm:$0xff]  }
  0x8c   :  { %5651 = vmatprep.subr.bf16.mxu1 %v5059_v19  ;;  %5747 = vmatprep.subr.bf16.mxu0 %v5083_v21  ;;  %v6714_v4 = vld [vmem:[%s8462_s0] sm:$0xff]  }
  0x8e   :  { %5636 = vmatmul.mubr.bf16.gmra.mrb[8].mxu1 %v7031_v18  ;;  %5700 = vmatmul.mubr.bf16.gmra.mrb[8].mxu0 %v7031_v18 }
  0x8f   :  { %5652 = vmatpush3.bf16.msra.mxu1 %v5059_v19  ;;  %5748 = vmatpush3.bf16.msra.mxu0 %v5083_v21  ;;  %v1241_v19 = vld [vmem:[#allocation6 + $0x198] sm:$0xf]  ;;  %v5100_v21 = vcombine.low %v1239_v12, %v1240_v13  ;;  %v1410_v13 = vld [vmem:[#allocation6 + $0x9c] sm:$0xf] }
  0x90   :  { %5653 = vmatprep.subr.bf16.mxu1 %v5060_v24  ;;  %5749 = vmatprep.subr.bf16.mxu0 %v5084_v25  ;;  %v5101_v29 = vcombine.low %v1241_v19, %v1242_v20  ;;  %v1414_v20 = vld [vmem:[#allocation6 + $0x11c] sm:$0xf] }
  0x91   :  { %5639 = vmatprep.mubr.bf16.mxu1 %v7038_v26  ;;  %5703 = vmatprep.mubr.bf16.mxu0 %v7038_v26 }
  0x93   :  { %5654 = vmatpush3.bf16.msra.mxu1 %v5060_v24  ;;  %5750 = vmatpush3.bf16.msra.mxu0 %v5084_v25  ;;  %v5077_v24 = vcombine.low %v710_v15, %v711_v16  ;;  %v1243_v25 = vld [vmem:[#allocation6 + $0x1d8] sm:$0xf]  ;;  %v1412_v16 = vld [vmem:[#allocation6 + $0xdc] sm:$0xf] }
  0x94   :  { %5655 = vmatprep.subr.bf16.mxu1 %v5061_v32  ;;  %5751 = vmatprep.subr.bf16.mxu0 %v5085_v33 }
  0x96   :  { %5640 = vmatmul.mubr.bf16.gmra.mrb[12].mxu1 %v7047_v36  ;;  %5704 = vmatmul.mubr.bf16.gmra.mrb[12].mxu0 %v7047_v36 }
  0x97   :  { %5656 = vmatpush3.bf16.msra.mxu1 %v5061_v32  ;;  %5752 = vmatpush3.bf16.msra.mxu0 %v5085_v33  ;;  %v5078_v32 = vcombine.low %v712_v22, %v713_v23  ;;  %v5102_v33 = vcombine.low %v1243_v25, %v1244_v27  ;;  %v1416_v22 = vld [vmem:[#allocation6 + $0x15c] sm:$0xf] }
  0x98   :  { %5657 = vmatprep.subr.bf16.mxu1 %v5062_v39  ;;  %5753 = vmatprep.subr.bf16.mxu0 %v5086_v40  ;;  %v1417_v23 = vld [vmem:[#allocation6 + $0x17c] sm:$0xf] }
  0x99   :  { %5659 = vmatprep.mubr.bf16.mxu1 %v6998_v28  ;;  %5755 = vmatprep.mubr.bf16.mxu0 %v6998_v28  ;;  %v1419_v25 = vld [vmem:[#allocation6 + $0x1bc] sm:$0xf] }
  0x9b   :  { %5658 = vmatpush3.bf16.msra.mxu1 %v5062_v39  ;;  %5754 = vmatpush3.bf16.msra.mxu0 %v5086_v40  ;;  %v8482_v39 = vmov 0.0   ;;  %v1056_v40 = vld [vmem:[#allocation6 + $0x94] sm:$0xf] }
  0x9c   :  { %5707 = vmatprep.subr.bf16.mxu1 %v5071_v46  ;;  %5803 = vmatprep.subr.bf16.mxu0 %v5095_v48 }
  0x9e   :  { %5660 = vmatmul.mubr.bf16.vlgmr.msra.gmra.mrb[16].mxu1 %v7005_v57  ;;  %5756 = vmatmul.mubr.bf16.vlgmr.msra.gmra.mrb[16].mxu0 %v7005_v57 }
  0x9f   :  { %5708 = vmatpush3.bf16.msra.mxu1 %v5071_v46  ;;  %5804 = vmatpush3.bf16.msra.mxu0 %v5095_v48  ;;  %v5089_v46 = vcombine.low %v1056_v40, %v1057_v41  ;;  %v1061_v48 = vld [vmem:[#allocation6 + $0x134] sm:$0xf]  ;;  %v6365_v40 = vld [vmem:[%s8463_s1 + $0x20] sm:$0xff]   ;;  %v6366_v41 = vld [vmem:[%s8463_s1 + $0x28] sm:$0xff]  }
  0xa0   :  { %5709 = vmatprep.subr.bf16.mxu1 %v5072_v53  ;;  %5805 = vmatprep.subr.bf16.mxu0 %v5096_v56  ;;  %v5091_v54 = vcombine.low %v1060_v47, %v1061_v48 }
  0xa1   :  { %5663 = vmatprep.mubr.bf16.mxu1 %v7010_v62  ;;  %5759 = vmatprep.mubr.bf16.mxu0 %v7010_v62 }
  0xa3   :  { %5710 = vmatpush3.bf16.msra.mxu1 %v5072_v53  ;;  %5806 = vmatpush3.bf16.msra.mxu0 %v5096_v56  ;;  %v6356_v53 = vld [vmem:[%s8467_s5 + $0x20] sm:$0xff]   ;;  %v1065_v56 = vld [vmem:[#allocation6 + $0x1b4] sm:$0xf] }
  0xa4   :  { %5711 = vmatprep.subr.bf16.mxu1 %v5073_v60  ;;  %5807 = vmatprep.subr.bf16.mxu0 %v5097_v0  ;;  %v5093_v63 = vcombine.low %v1064_v55, %v1065_v56 }
  0xa6   :  { %5664 = vmatmul.mubr.bf16.gmra.mrb[20].mxu1 %v7019_v7  ;;  %5760 = vmatmul.mubr.bf16.gmra.mrb[20].mxu0 %v7019_v7 }
  0xa7   :  { %5712 = vmatpush3.bf16.msra.mxu1 %v5073_v60  ;;  %5808 = vmatpush3.bf16.msra.mxu0 %v5097_v0  ;;  %v1066_v60 = vld [vmem:[#allocation6 + $0x1d4] sm:$0xf]  ;;  %v6358_v0 = vld [vmem:[%s8467_s5 + $0x30] sm:$0xff]  }
  0xa8   :  { %5713 = vmatprep.subr.bf16.mxu1 %v5074_v3  ;;  %5809 = vmatprep.subr.bf16.mxu0 %v5098_v6 }
  0xa9   :  { %5667 = vmatprep.mubr.bf16.mxu1 %v7024_v10  ;;  %5763 = vmatprep.mubr.bf16.mxu0 %v7024_v10 }
  0xab   :  { %5714 = vmatpush3.bf16.msra.mxu1 %v5074_v3  ;;  %5810 = vmatpush3.bf16.msra.mxu0 %v5098_v6  ;;  %v5094_v3 = vcombine.low %v1066_v60, %v1067_v61  ;;  %v5103_v6 = vcombine.low %v1406_v1, %v1407_v2 }
  0xac   :  { %5715 = vmatprep.subr.bf16.mxu1 %v5075_v11  ;;  %5811 = vmatprep.subr.bf16.mxu0 %v5099_v14 }
  0xae   :  { %5668 = vmatmul.mubr.bf16.gmra.mrb[24].mxu1 %v7031_v18  ;;  %5764 = vmatmul.mubr.bf16.gmra.mrb[24].mxu0 %v7031_v18 }
  0xaf   :  { %5716 = vmatpush3.bf16.msra.mxu1 %v5075_v11  ;;  %5812 = vmatpush3.bf16.msra.mxu0 %v5099_v14  ;;  %v1409_v11 = vld [vmem:[#allocation6 + $0x7c] sm:$0xf] }
  0xb0   :  { %5717 = vmatprep.subr.bf16.mxu1 %v5076_v17  ;;  %5813 = vmatprep.subr.bf16.mxu0 %v5100_v21  ;;  %v5104_v12 = vcombine.low %v1408_v9, %v1409_v11  ;;  %v1411_v14 = vld [vmem:[#allocation6 + $0xbc] sm:$0xf] }
  0xb1   :  { %5671 = vmatprep.mubr.bf16.mxu1 %v7038_v26  ;;  %5767 = vmatprep.mubr.bf16.mxu0 %v7038_v26  ;;  %v5105_v15 = vcombine.low %v1410_v13, %v1411_v14 }
  0xb3   :  { %5718 = vmatpush3.bf16.msra.mxu1 %v5076_v17  ;;  %5814 = vmatpush3.bf16.msra.mxu0 %v5100_v21  ;;  %v1413_v17 = vld [vmem:[#allocation6 + $0xfc] sm:$0xf] }
  0xb4   :  { %5719 = vmatprep.subr.bf16.mxu1 %v5077_v24  ;;  %5815 = vmatprep.subr.bf16.mxu0 %v5101_v29  ;;  %v5106_v19 = vcombine.low %v1412_v16, %v1413_v17  ;;  %v1415_v21 = vld [vmem:[#allocation6 + $0x13c] sm:$0xf] }
  0xb6   :  { %5672 = vmatmul.mubr.bf16.gmra.mrb[28].mxu1 %v7047_v36  ;;  %5768 = vmatmul.mubr.bf16.gmra.mrb[28].mxu0 %v7047_v36 }
  0xb7   :  { %5720 = vmatpush3.bf16.msra.mxu1 %v5077_v24  ;;  %5816 = vmatpush3.bf16.msra.mxu0 %v5101_v29  ;;  %v1418_v24 = vld [vmem:[#allocation6 + $0x19c] sm:$0xf] }
  0xb8   :  { %5721 = vmatprep.subr.bf16.mxu1 %v5078_v32  ;;  %5817 = vmatprep.subr.bf16.mxu0 %v5102_v33  ;;  %v5109_v27 = vcombine.low %v1418_v24, %v1419_v25  ;;  %v1421_v29 = vld [vmem:[#allocation6 + $0x1fc] sm:$0xf] }
  0xb9   :  { %5723 = vmatprep.mubr.bf16.mxu1 %v6998_v28  ;;  %5819 = vmatprep.mubr.bf16.mxu0 %v6998_v28  ;;  %v1058_v28 = vld [vmem:[#allocation6 + $0xd4] sm:$0xf] }
  0xba   :  { %v5090_v50 = vcombine.low %v1058_v28, %v1059_v44 }
  0xbb   :  { %5722 = vmatpush3.bf16.msra.mxu1 %v5078_v32  ;;  %5818 = vmatpush3.bf16.msra.mxu0 %v5102_v33  ;;  %v6362_v32 = vld [vmem:[%s8463_s1 + $0x8] sm:$0xff]   ;;  %v6716_v33 = vld [vmem:[%s8462_s0 + $0x10] sm:$0xff]  }
  0xbc   :  { %5771 = vmatprep.subr.bf16.mxu1 %v5087_v34  ;;  %5867 = vmatprep.subr.bf16.mxu0 %v8482_v39 }
  0xbe   :  { %5724 = vmatmul.mubr.bf16.vlgmr.msra.gmra.mrb[32].mxu1 %v7005_v57  ;;  %5820 = vmatmul.mubr.bf16.vlgmr.msra.gmra.mrb[32].mxu0 %v7005_v57 }
  0xbf   :  { %5727 = vmatprep.mubr.bf16.mxu1 %v7010_v62  ;;  %5868 = vmatpush3.bf16.msra.mxu0 %v6352_v38  ;;  %v6718_v38 = vld [vmem:[%s8462_s0 + $0x20] sm:$0xff]  }
  0xc0   :  { %5823 = vmatprep.mubr.bf16.mxu0 %v7010_v62  ;;  %5869 = vmatprep.subr.bf16.mxu0 %v8482_v39 }
  0xc1   :  { %5772 = vmatpush3.bf16.msra.mxu1 %v5087_v34  ;;  %v6363_v34 = vld [vmem:[%s8463_s1 + $0x10] sm:$0xff]  }
  0xc2   :  { %5773 = vmatprep.subr.bf16.mxu1 %v5088_v43 }
  0xc3   :  { %5870 = vmatpush3.bf16.msra.mxu0 %v6353_v42  ;;  %v6367_v42 = vld [vmem:[%s8463_s1 + $0x30] sm:$0xff]  }
  0xc4   :  { %5871 = vmatprep.subr.bf16.mxu0 %v8482_v39 }
  0xc5   :  { %5774 = vmatpush3.bf16.msra.mxu1 %v5088_v43  ;;  %v6849_v43 = vmov 1  }
  0xc6   :  { %5728 = vmatmul.mubr.bf16.gmra.mrb[36].mxu1 %v7019_v7  ;;  %5775 = vmatprep.subr.bf16.mxu1 %v5089_v46 }
  0xc7   :  { %5824 = vmatmul.mubr.bf16.gmra.mrb[36].mxu0 %v7019_v7  ;;  %5731 = vmatprep.mubr.bf16.mxu1 %v7024_v10 }
  0xc8   :  { %5872 = vmatpush3.bf16.msra.mxu0 %v6354_v45  ;;  %5827 = vmatprep.mubr.bf16.mxu0 %v7024_v10 }
  0xc9   :  { %5873 = vmatprep.subr.bf16.mxu0 %v8482_v39  ;;  %5776 = vmatpush3.bf16.msra.mxu1 %v5089_v46 }
  0xca   :  { %5777 = vmatprep.subr.bf16.mxu1 %v5090_v50  ;;  %6311 = vset.pattern.permute.xlu0 %v6849_v43 }
  0xcc   :  { %5874 = vmatpush3.bf16.msra.mxu0 %v6355_v49 }
  0xcd   :  { %5875 = vmatprep.subr.bf16.mxu0 %v8482_v39  ;;  %5778 = vmatpush3.bf16.msra.mxu1 %v5090_v50 }
  0xce   :  { %5732 = vmatmul.mubr.bf16.gmra.mrb[40].mxu1 %v7031_v18  ;;  %5779 = vmatprep.subr.bf16.mxu1 %v5091_v54 }
  0xcf   :  { %5828 = vmatmul.mubr.bf16.gmra.mrb[40].mxu0 %v7031_v18  ;;  %5735 = vmatprep.mubr.bf16.mxu1 %v7038_v26 }
  0xd0   :  { %5876 = vmatpush3.bf16.msra.mxu0 %v6356_v53  ;;  %5831 = vmatprep.mubr.bf16.mxu0 %v7038_v26 }
  0xd1   :  { %5877 = vmatprep.subr.bf16.mxu0 %v8482_v39  ;;  %5780 = vmatpush3.bf16.msra.mxu1 %v5091_v54 }
  0xd2   :  { %5781 = vmatprep.subr.bf16.mxu1 %v5092_v58 }
  0xd4   :  { %5878 = vmatpush3.bf16.msra.mxu0 %v6357_v59 }
  0xd5   :  { %5879 = vmatprep.subr.bf16.mxu0 %v8482_v39  ;;  %5782 = vmatpush3.bf16.msra.mxu1 %v5092_v58 }
  0xd6   :  { %5736 = vmatmul.mubr.bf16.gmra.mrb[44].mxu1 %v7047_v36  ;;  %5783 = vmatprep.subr.bf16.mxu1 %v5093_v63 }
  0xd7   :  { %5832 = vmatmul.mubr.bf16.gmra.mrb[44].mxu0 %v7047_v36  ;;  %5787 = vmatprep.mubr.bf16.mxu1 %v6714_v4 }
  0xd8   :  { %5880 = vmatpush3.bf16.msra.mxu0 %v6358_v0  ;;  %5883 = vmatprep.mubr.msk.bf16.mxu0 %vm6848_vm0, %v8482_v39 }
  0xd9   :  { %5881 = vmatprep.subr.bf16.mxu0 %v8482_v39  ;;  %5784 = vmatpush3.bf16.msra.mxu1 %v5093_v63 }
  0xda   :  { %5785 = vmatprep.subr.bf16.mxu1 %v5094_v3 }
  0xdc   :  { %5882 = vmatpush3.bf16.msra.mxu0 %v6359_v5 }
  0xdd   :  { %5786 = vmatpush3.bf16.msra.mxu1 %v5094_v3  ;;  %5907 = vmatprep.subr.bf16.mxu0 %v8482_v39 }
  0xde   :  { %5835 = vmatprep.subr.bf16.mxu1 %v5103_v6 }
  0xdf   :  { %5884 = vmatmul.mubr.bf16.vlgmr.msra.gmra.mrb[48].mxu0 %v6360_v8 }
  0xe0   :  { %5788 = vmatmul.mubr.bf16.vlgmr.msra.gmra.mrb[48].mxu1 %v7005_v57  ;;  %5923 = vmatprep.mubr.msk.bf16.mxu0 %vm6848_vm0, %v8482_v39  ;;  %v5107_v57 = vcombine.low %v1414_v20, %v1415_v21 }
  0xe1   :  { %5836 = vmatpush3.bf16.msra.mxu1 %v5103_v6  ;;  %5791 = vmatprep.mubr.bf16.mxu1 %v7010_v62  ;;  %v5108_v62 = vcombine.low %v1416_v22, %v1417_v23 }
  0xe2   :  { %5837 = vmatprep.subr.bf16.mxu1 %v5104_v12 }
  0xe5   :  { %5838 = vmatpush3.bf16.msra.mxu1 %v5104_v12 }
  0xe6   :  { %5839 = vmatprep.subr.bf16.mxu1 %v5105_v15 }
  0xe8   :  { %5792 = vmatmul.mubr.bf16.gmra.mrb[52].mxu1 %v7019_v7  ;;  %v1420_v7 = vld [vmem:[#allocation6 + $0x1dc] sm:$0xf] }
  0xe9   :  { %5840 = vmatpush3.bf16.msra.mxu1 %v5105_v15  ;;  %5795 = vmatprep.mubr.bf16.mxu1 %v7024_v10  ;;  %v5110_v10 = vcombine.low %v1420_v7, %v1421_v29 }
  0xea   :  { %5841 = vmatprep.subr.bf16.mxu1 %v5106_v19 }
  0xed   :  { %5842 = vmatpush3.bf16.msra.mxu1 %v5106_v19 }
  0xee   :  { %5843 = vmatprep.subr.bf16.mxu1 %v5107_v57 }
  0xf0   :  { %5796 = vmatmul.mubr.bf16.gmra.mrb[56].mxu1 %v7031_v18 }
  0xf1   :  { %5844 = vmatpush3.bf16.msra.mxu1 %v5107_v57  ;;  %5799 = vmatprep.mubr.bf16.mxu1 %v7038_v26 }
  0xf2   :  { %5845 = vmatprep.subr.bf16.mxu1 %v5108_v62 }
  0xf5   :  { %5846 = vmatpush3.bf16.msra.mxu1 %v5108_v62 }
  0xf6   :  { %5847 = vmatprep.subr.bf16.mxu1 %v5109_v27 }
  0xf8   :  { %5800 = vmatmul.mubr.bf16.gmra.mrb[60].mxu1 %v7047_v36 }
  0xf9   :  { %5848 = vmatpush3.bf16.msra.mxu1 %v5109_v27  ;;  %5851 = vmatprep.mubr.bf16.mxu1 %v6714_v4 }
  0xfa   :  { %5849 = vmatprep.subr.bf16.mxu1 %v5110_v10 }
  0xfd   :  { %5850 = vmatpush3.bf16.msra.mxu1 %v5110_v10 }
  0xfe   :  { %5887 = vmatprep.subr.bf16.mxu1 %v8482_v39 }
 0x100   :  { %5852 = vmatmul.mubr.bf16.vlgmr.msra.gmra.mrb[64].mxu1 %v6715_v31 }
 0x101   :  { %5888 = vmatpush3.bf16.msra.mxu1 %v6361_v30  ;;  %5855 = vmatprep.mubr.bf16.mxu1 %v6716_v33 }
 0x102   :  { %5889 = vmatprep.subr.bf16.mxu1 %v8482_v39 }
 0x105   :  { %5890 = vmatpush3.bf16.msra.mxu1 %v6362_v32 }
 0x106   :  { %5891 = vmatprep.subr.bf16.mxu1 %v8482_v39 }
 0x108   :  { %5856 = vmatmul.mubr.bf16.gmra.mrb[68].mxu1 %v6717_v35 }
 0x109   :  { %5892 = vmatpush3.bf16.msra.mxu1 %v6363_v34  ;;  %5859 = vmatprep.mubr.bf16.mxu1 %v6718_v38 }
 0x10a   :  { %5893 = vmatprep.subr.bf16.mxu1 %v8482_v39 }
 0x10d   :  { %5894 = vmatpush3.bf16.msra.mxu1 %v6364_v37 }
 0x10e   :  { %5895 = vmatprep.subr.bf16.mxu1 %v8482_v39 }
 0x110   :  { %5860 = vmatmul.mubr.bf16.gmra.mrb[72].mxu1 %v7031_v18  ;;  %v6368_v18 = vld [vmem:[%s8463_s1 + $0x38] sm:$0xff]  }
 0x111   :  { %5896 = vmatpush3.bf16.msra.mxu1 %v6365_v40  ;;  %5863 = vmatprep.mubr.bf16.mxu1 %v7038_v26  ;;  %v6369_v26 = vld [vmem:[#allocation8] sm:$0xff]  }
 0x112   :  { %5897 = vmatprep.subr.bf16.mxu1 %v8482_v39 }
 0x115   :  { %5898 = vmatpush3.bf16.msra.mxu1 %v6366_v41 }
 0x116   :  { %5899 = vmatprep.subr.bf16.mxu1 %v8482_v39 }
 0x118   :  { %5864 = vmatmul.mubr.bf16.gmra.mrb[76].mxu1 %v7047_v36  ;;  %v6850_v36 = vmov 3  }
 0x119   :  { %5900 = vmatpush3.bf16.msra.mxu1 %v6367_v42  ;;  %5903 = vmatprep.mubr.msk.bf16.mxu1 %vm6848_vm0, %v8482_v39 }
 0x11a   :  { %5901 = vmatprep.subr.bf16.mxu1 %v8482_v39  ;;  %6312 = vset.pattern.permute.xlu1 %v6850_v36 }
 0x11d   :  { %5902 = vmatpush3.bf16.msra.mxu1 %v6368_v18 }
 0x11e   :  { %5927 = vmatprep.subr.bf16.mxu1 %v8482_v39 }
 0x120   :  { %5904 = vmatmul.mubr.bf16.vlgmr.msra.gmra.mrb[80].mxu1 %v6369_v26 }
 0x121   :  { %5943 = vmatprep.mubr.msk.bf16.mxu1 %vm6848_vm0, %v8482_v39 }
 0x151   :  { %v5629_v28 = vpop.f32.mrb[0].mxu1  ;;  %v5693_v44 = vpop.f32.mrb[0].mxu0 }
 0x152   :  { %v265_v45 = vpop.f32.mrb[1].mxu1  ;;  %v619_v46 = vpop.f32.mrb[1].mxu0 }
 0x153   :  { %v5630_v47 = vpop.f32.mrb[2].mxu1  ;;  %v5694_v49 = vpop.f32.mrb[2].mxu0 }
 0x154   :  { %v329_v48 = vpack.c.bf16 %v5630_v47, %v5629_v28  ;;  %v268_v50 = vpop.f32.mrb[3].mxu1  ;;  %v7187_v51 = vpack.c.bf16 %v5694_v49, %v5693_v44  ;;  %v622_v53 = vpop.f32.mrb[3].mxu0 }
 0x155   :  { %v328_v52 = vpack.c.bf16 %v268_v50, %v265_v45  ;;  %v7189_v54 = vpack.c.bf16 %v622_v53, %v619_v46 }
 0x156   :  { %8541 = vst [vmem:[#allocation15_spill] sm:$0xff] %v7187_v51  ;;  %1961 = vrot.lane.b32.xlu0 %v329_v48, %s6844_s3 }
 0x157   :  { %8542 = vst [vmem:[#allocation16_spill] sm:$0xff] %v7189_v54  ;;  %1959 = vrot.lane.b32.xlu1 %v328_v52, %s6844_s3  ;;  %5908 = vmatpush3.bf16.msra.mxu0 %v328_v52 }
 0x158   :  { %5909 = vmatprep.subr.bf16.mxu0 %v8482_v39 }
 0x159   :  { %v5633_v55 = vpop.f32.mrb[4].mxu1  ;;  %v5697_v56 = vpop.f32.mrb[4].mxu0 }
 0x15a   :  { %2402 = vrot.lane.b32.xlu0 %v7187_v51, %s6844_s3  ;;  %v281_v58 = vpop.f32.mrb[5].mxu1  ;;  %v635_v59 = vpop.f32.mrb[5].mxu0 }
 0x15b   :  { %2400 = vrot.lane.b32.xlu1 %v7189_v54, %s6844_s3  ;;  %v5634_v60 = vpop.f32.mrb[6].mxu1  ;;  %5910 = vmatpush3.bf16.msra.mxu0 %v329_v48  ;;  %v5698_v61 = vpop.f32.mrb[6].mxu0 }
 0x15c   :  { %v331_v63 = vpack.c.bf16 %v5634_v60, %v5633_v55  ;;  %v284_v0 = vpop.f32.mrb[7].mxu1  ;;  %5911 = vmatprep.subr.bf16.mxu0 %v8482_v39  ;;  %v7199_v1 = vpack.c.bf16 %v5698_v61, %v5697_v56  ;;  %v638_v3 = vpop.f32.mrb[7].mxu0 }
 0x15d   :  { %v330_v2 = vpack.c.bf16 %v284_v0, %v281_v58  ;;  %v7201_v4 = vpack.c.bf16 %v638_v3, %v635_v59 }
 0x15e   :  { %8543 = vst [vmem:[#allocation17_spill] sm:$0xff] %v7199_v1 }
 0x15f   :  { %8544 = vst [vmem:[#allocation18_spill] sm:$0xff] %v7201_v4  ;;  %1965 = vrot.lane.b32.xlu1 %v331_v63, %s6844_s3  ;;  %5912 = vmatpush3.bf16.msra.mxu0 %v330_v2 }
 0x160   :  { %5913 = vmatprep.subr.bf16.mxu0 %v8482_v39 }
 0x161   :  { %v5637_v5 = vpop.f32.mrb[8].mxu1  ;;  %v5701_v6 = vpop.f32.mrb[8].mxu0 }
 0x162   :  { %v297_v8 = vpop.f32.mrb[9].mxu1  ;;  %v651_v9 = vpop.f32.mrb[9].mxu0 }
 0x163   :  { %2406 = vrot.lane.b32.xlu1 %v7199_v1, %s6844_s3  ;;  %v5638_v11 = vpop.f32.mrb[10].mxu1  ;;  %5914 = vmatpush3.bf16.msra.mxu0 %v331_v63  ;;  %v5702_v12 = vpop.f32.mrb[10].mxu0 }
 0x164   :  { %v333_v13 = vpack.c.bf16 %v5638_v11, %v5637_v5  ;;  %v300_v14 = vpop.f32.mrb[11].mxu1  ;;  %5915 = vmatprep.subr.bf16.mxu0 %v8482_v39  ;;  %v7208_v15 = vpack.c.bf16 %v5702_v12, %v5701_v6  ;;  %v654_v17 = vpop.f32.mrb[11].mxu0 }
 0x165   :  { %v332_v16 = vpack.c.bf16 %v300_v14, %v297_v8  ;;  %v7210_v19 = vpack.c.bf16 %v654_v17, %v651_v9 }
 0x166   :  { %8545 = vst [vmem:[#allocation19_spill] sm:$0xff] %v7208_v15 }
 0x167   :  { %8546 = vst [vmem:[#allocation20_spill] sm:$0xff] %v7210_v19  ;;  %1963 = vrot.lane.b32.xlu1 %v330_v2, %s6844_s3  ;;  %1967 = vrot.lane.b32.xlu0 %v332_v16, %s6844_s3 }
 0x168   :  { %5916 = vmatpush3.bf16.msra.mxu0 %v332_v16 }
 0x169   :  { %v5641_v20 = vpop.f32.mrb[12].mxu1  ;;  %5917 = vmatprep.subr.bf16.mxu0 %v8482_v39  ;;  %v5705_v21 = vpop.f32.mrb[12].mxu0 }
 0x16a   :  { %v313_v57 = vpop.f32.mrb[13].mxu1  ;;  %v667_v22 = vpop.f32.mrb[13].mxu0 }
 0x16b   :  { %2404 = vrot.lane.b32.xlu1 %v7201_v4, %s6844_s3  ;;  %2408 = vrot.lane.b32.xlu0 %v7210_v19, %s6844_s3  ;;  %v5642_v23 = vpop.f32.mrb[14].mxu1  ;;  %v5706_v62 = vpop.f32.mrb[14].mxu0 }
 0x16c   :  { %v335_v24 = vpack.c.bf16 %v5642_v23, %v5641_v20  ;;  %5918 = vmatpush3.bf16.msra.mxu0 %v333_v13  ;;  %v316_v25 = vpop.f32.mrb[15].mxu1  ;;  %v7219_v27 = vpack.c.bf16 %v5706_v62, %v5705_v21  ;;  %v670_v29 = vpop.f32.mrb[15].mxu0 }
 0x16d   :  { %v334_v7 = vpack.c.bf16 %v316_v25, %v313_v57  ;;  %5919 = vmatprep.subr.bf16.mxu0 %v8482_v39  ;;  %v7222_v10 = vpack.c.bf16 %v670_v29, %v667_v22 }
 0x16e   :  { %8547 = vst [vmem:[#allocation21_spill] sm:$0xff] %v7219_v27 }
 0x16f   :  { %8548 = vst [vmem:[#allocation22_spill] sm:$0xff] %v7222_v10  ;;  %1969 = vrot.lane.b32.xlu1 %v333_v13, %s6844_s3  ;;  %2414 = vrot.lane.b32.xlu0 %v7219_v27, %s6844_s3 }
 0x170   :  { %5920 = vmatpush3.bf16.msra.mxu0 %v334_v7 }
 0x171   :  { %v5661_v30 = vpop.f32.mrb[16].mxu1  ;;  %5921 = vmatprep.subr.bf16.mxu0 %v8482_v39  ;;  %v5757_v31 = vpop.f32.mrb[16].mxu0 }
 0x172   :  { %v442_v32 = vpop.f32.mrb[17].mxu1  ;;  %v973_v33 = vpop.f32.mrb[17].mxu0 }
 0x173   :  { %2410 = vrot.lane.b32.xlu1 %v7208_v15, %s6844_s3  ;;  %v5662_v34 = vpop.f32.mrb[18].mxu1  ;;  %v5758_v35 = vpop.f32.mrb[18].mxu0 }
 0x174   :  { %v7230_v37 = vpack.c.bf16 %v5662_v34, %v5661_v30  ;;  %5922 = vmatpush3.bf16.msra.mxu0 %v335_v24  ;;  %v445_v38 = vpop.f32.mrb[19].mxu1  ;;  %v7232_v40 = vpack.c.bf16 %v5758_v35, %v5757_v31  ;;  %v976_v42 = vpop.f32.mrb[19].mxu0 }
 0x175   :  { %v7234_v41 = vpack.c.bf16 %v445_v38, %v442_v32  ;;  %5947 = vmatprep.subr.bf16.mxu0 %v8482_v39  ;;  %v7237_v18 = vpack.c.bf16 %v976_v42, %v973_v33 }
 0x176   :  { %2182 = vrot.lane.b32.xlu0 %v7230_v37, %s6844_s3 }
 0x177   :  { %8549 = vst [vmem:[#allocation23_spill] sm:$0xff] %v7237_v18  ;;  %1973 = vrot.lane.b32.xlu1 %v335_v24, %s6844_s3 }
 0x179   :  { %v5665_v26 = vpop.f32.mrb[20].mxu1  ;;  %v5761_v28 = vpop.f32.mrb[20].mxu0 }
 0x17a   :  { %2180 = vrot.lane.b32.xlu0 %v7234_v41, %s6844_s3  ;;  %v458_v44 = vpop.f32.mrb[21].mxu1  ;;  %v989_v45 = vpop.f32.mrb[21].mxu0 }
 0x17b   :  { %v5666_v46 = vpop.f32.mrb[22].mxu1  ;;  %1971 = vrot.lane.b32.xlu1 %v334_v7, %s6844_s3  ;;  %v5762_v48 = vpop.f32.mrb[22].mxu0 }
 0x17c   :  { %v7245_v47 = vpack.c.bf16 %v5666_v46, %v5665_v26  ;;  %v461_v49 = vpop.f32.mrb[23].mxu1  ;;  %v7247_v50 = vpack.c.bf16 %v5762_v48, %v5761_v28  ;;  %v992_v53 = vpop.f32.mrb[23].mxu0 }
 0x17d   :  { %v7249_v52 = vpack.c.bf16 %v461_v49, %v458_v44  ;;  %v7251_v55 = vpack.c.bf16 %v992_v53, %v989_v45 }
 0x17f   :  { %2412 = vrot.lane.b32.xlu1 %v7222_v10, %s6844_s3 }
 0x181   :  { %v5669_v56 = vpop.f32.mrb[24].mxu1  ;;  %v5765_v58 = vpop.f32.mrb[24].mxu0 }
 0x182   :  { %v474_v59 = vpop.f32.mrb[25].mxu1  ;;  %v1005_v60 = vpop.f32.mrb[25].mxu0 }
 0x183   :  { %v5670_v61 = vpop.f32.mrb[26].mxu1  ;;  %2842 = vrot.lane.b32.xlu1 %v7237_v18, %s6844_s3  ;;  %v5766_v0 = vpop.f32.mrb[26].mxu0 }
 0x184   :  { %v7257_v63 = vpack.c.bf16 %v5670_v61, %v5669_v56  ;;  %v477_v2 = vpop.f32.mrb[27].mxu1  ;;  %v7259_v3 = vpack.c.bf16 %v5766_v0, %v5765_v58  ;;  %v1008_v6 = vpop.f32.mrb[27].mxu0 }
 0x185   :  { %v7261_v5 = vpack.c.bf16 %v477_v2, %v474_v59  ;;  %v7263_v8 = vpack.c.bf16 %v1008_v6, %v1005_v60 }
 0x186   :  { %8550 = vst [vmem:[#allocation24_spill] sm:$0xff] %v7257_v63 }
 0x187   :  { %2188 = vrot.lane.b32.xlu0 %v7261_v5, %s6844_s3  ;;  %2186 = vrot.lane.b32.xlu1 %v7245_v47, %s6844_s3 }
 0x189   :  { %v5673_v9 = vpop.f32.mrb[28].mxu1  ;;  %v5769_v11 = vpop.f32.mrb[28].mxu0 }
 0x18a   :  { %v490_v12 = vpop.f32.mrb[29].mxu1  ;;  %v1021_v13 = vpop.f32.mrb[29].mxu0 }
 0x18b   :  { %v5674_v14 = vpop.f32.mrb[30].mxu1  ;;  %2184 = vrot.lane.b32.xlu1 %v7249_v52, %s6844_s3  ;;  %v5770_v17 = vpop.f32.mrb[30].mxu0 }
 0x18c   :  { %v7271_v16 = vpack.c.bf16 %v5674_v14, %v5673_v9  ;;  %v493_v20 = vpop.f32.mrb[31].mxu1  ;;  %v7273_v21 = vpack.c.bf16 %v5770_v17, %v5769_v11  ;;  %v1024_v22 = vpop.f32.mrb[31].mxu0 }
 0x18d   :  { %v7275_v57 = vpack.c.bf16 %v493_v20, %v490_v12  ;;  %v7277_v23 = vpack.c.bf16 %v1024_v22, %v1021_v13 }
 0x18e   :  { %8551 = vst [vmem:[#allocation25_spill] sm:$0xff] %v7271_v16  ;;  %2194 = vrot.lane.b32.xlu0 %v7271_v16, %s6844_s3 }
 0x18f   :  { %8552 = vst [vmem:[#allocation26_spill] sm:$0xff] %v7275_v57  ;;  %2190 = vrot.lane.b32.xlu1 %v7257_v63, %s6844_s3 }
 0x191   :  { %v5725_v62 = vpop.f32.mrb[32].mxu1  ;;  %v5821_v24 = vpop.f32.mrb[32].mxu0 }
 0x192   :  { %v796_v25 = vpop.f32.mrb[33].mxu1  ;;  %v1327_v7 = vpop.f32.mrb[33].mxu0 }
 0x193   :  { %v5726_v29 = vpop.f32.mrb[34].mxu1  ;;  %2192 = vrot.lane.b32.xlu1 %v7275_v57, %s6844_s3  ;;  %v5822_v31 = vpop.f32.mrb[34].mxu0 }
 0x194   :  { %v7285_v30 = vpack.c.bf16 %v5726_v29, %v5725_v62  ;;  %v799_v32 = vpop.f32.mrb[35].mxu1  ;;  %v7287_v33 = vpack.c.bf16 %v5822_v31, %v5821_v24  ;;  %v1330_v35 = vpop.f32.mrb[35].mxu0 }
 0x195   :  { %v7289_v34 = vpack.c.bf16 %v799_v32, %v796_v25  ;;  %v7291_v38 = vpack.c.bf16 %v1330_v35, %v1327_v7 }
 0x196   :  { %8553 = vst [vmem:[#allocation27_spill] sm:$0xff] %v7285_v30  ;;  %8554 = vst [vmem:[#allocation28_spill] sm:$0xff] %v7287_v33  ;;  %2622 = vrot.lane.b32.xlu0 %v7285_v30, %s6844_s3 }
 0x197   :  { %8555 = vst [vmem:[#allocation29_spill] sm:$0xff] %v7289_v34  ;;  %8556 = vst [vmem:[#allocation30_spill] sm:$0xff] %v7291_v38  ;;  %2620 = vrot.lane.b32.xlu1 %v7289_v34, %s6844_s3 }
 0x199   :  { %v5729_v42 = vpop.f32.mrb[36].mxu1 }
 0x19a   :  { %v5825_v26 = vpop.f32.mrb[36].mxu0  ;;  %v812_v28 = vpop.f32.mrb[37].mxu1 }
 0x19b   :  { %v1343_v44 = vpop.f32.mrb[37].mxu0  ;;  %v5730_v45 = vpop.f32.mrb[38].mxu1 }
 0x19c   :  { %v7297_v46 = vpack.c.bf16 %v5730_v45, %v5729_v42  ;;  %v5826_v48 = vpop.f32.mrb[38].mxu0  ;;  %v815_v49 = vpop.f32.mrb[39].mxu1 }
 0x19d   :  { %v7299_v53 = vpack.c.bf16 %v5826_v48, %v5825_v26  ;;  %v7301_v56 = vpack.c.bf16 %v815_v49, %v812_v28  ;;  %v1346_v58 = vpop.f32.mrb[39].mxu0 }
 0x19e   :  { %8557 = vst [vmem:[#allocation31_spill] sm:$0xff] %v7297_v46  ;;  %v7303_v59 = vpack.c.bf16 %v1346_v58, %v1343_v44  ;;  %2626 = vrot.lane.b32.xlu1 %v7297_v46, %s6844_s3 }
 0x19f   :  { %8558 = vst [vmem:[#allocation32_spill] sm:$0xff] %v7299_v53  ;;  %8559 = vst [vmem:[#allocation33_spill] sm:$0xff] %v7301_v56 }
 0x1a0   :  { %8560 = vst [vmem:[#allocation34_spill] sm:$0xff] %v7303_v59 }
 0x1a1   :  { %v5733_v60 = vpop.f32.mrb[40].mxu1 }
 0x1a2   :  { %v5829_v61 = vpop.f32.mrb[40].mxu0  ;;  %v828_v0 = vpop.f32.mrb[41].mxu1  ;;  %2624 = vrot.lane.b32.xlu1 %v7301_v56, %s6844_s3 }
 0x1a3   :  { %v1359_v2 = vpop.f32.mrb[41].mxu0  ;;  %v5734_v6 = vpop.f32.mrb[42].mxu1 }
 0x1a4   :  { %v7309_v9 = vpack.c.bf16 %v5734_v6, %v5733_v60  ;;  %v5830_v11 = vpop.f32.mrb[42].mxu0  ;;  %v831_v12 = vpop.f32.mrb[43].mxu1  ;;  %v8481_v6 = vmov 0  }
 0x1a5   :  { %v7311_v13 = vpack.c.bf16 %v5830_v11, %v5829_v61  ;;  %v7313_v14 = vpack.c.bf16 %v831_v12, %v828_v0  ;;  %v1362_v17 = vpop.f32.mrb[43].mxu0  ;;  %v6852_v11 = vmov 5  }
 0x1a6   :  { %8561 = vst [vmem:[#allocation35_spill] sm:$0xff] %v7309_v9  ;;  %v7315_v20 = vpack.c.bf16 %v1362_v17, %v1359_v2  ;;  %2630 = vrot.lane.b32.xlu1 %v7309_v9, %s6844_s3 }
 0x1a7   :  { %8562 = vst [vmem:[#allocation36_spill] sm:$0xff] %v7311_v13  ;;  %8563 = vst [vmem:[#allocation37_spill] sm:$0xff] %v7313_v14  ;;  %2628 = vrot.lane.b32.xlu0 %v7313_v14, %s6844_s3  ;;  %v1821_v13 = vlaneseq }
 0x1a8   :  { %8564 = vst [vmem:[#allocation38_spill] sm:$0xff] %v7315_v20 }
 0x1a9   :  { %v5737_v22 = vpop.f32.mrb[44].mxu1 }
 0x1aa   :  { %v5833_v62 = vpop.f32.mrb[44].mxu0  ;;  %v844_v24 = vpop.f32.mrb[45].mxu1 }
 0x1ab   :  { %v1375_v25 = vpop.f32.mrb[45].mxu0  ;;  %v5738_v7 = vpop.f32.mrb[46].mxu1 }
 0x1ac   :  { %v7321_v29 = vpack.c.bf16 %v5738_v7, %v5737_v22  ;;  %v5834_v31 = vpop.f32.mrb[46].mxu0  ;;  %v847_v32 = vpop.f32.mrb[47].mxu1  ;;  %v8477_v22 = vmov 7  }
 0x1ad   :  { %v7323_v35 = vpack.c.bf16 %v5834_v31, %v5833_v62  ;;  %v7325_v42 = vpack.c.bf16 %v847_v32, %v844_v24  ;;  %v1378_v26 = vpop.f32.mrb[47].mxu0  ;;  %v6854_v62 = vmov 2  }
 0x1ae   :  { %8565 = vst [vmem:[#allocation39_spill] sm:$0xff] %v7321_v29  ;;  %v7327_v28 = vpack.c.bf16 %v1378_v26, %v1375_v25  ;;  %2634 = vrot.lane.b32.xlu0 %v7321_v29, %s6844_s3  ;;  %v8474_v26 = vmov 9  }
 0x1af   :  { %8566 = vst [vmem:[#allocation40_spill] sm:$0xff] %v7323_v35  ;;  %8567 = vst [vmem:[#allocation41_spill] sm:$0xff] %v7325_v42  ;;  %2632 = vrot.lane.b32.xlu1 %v7325_v42, %s6844_s3 }
 0x1b0   :  { %8568 = vst [vmem:[#allocation42_spill] sm:$0xff] %v7327_v28 }
 0x1b2   :  { %v7333_v44 = vpop.f32.mrb[48].mxu0 }
 0x1b3   :  { %v5885_v45 = vpop.f32.mrb[49].mxu0  ;;  %1907 = vperm.xlu0 %6311, %v7333_v44   ;;  %2128 = vperm.xlu1 %6312, %v7333_v44   ;;  %v5789_v48 = vpop.f32.mrb[48].mxu1 }
 0x1b4   :  { %v7337_v49 = vpop.f32.mrb[50].mxu0  ;;  %v1150_v58 = vpop.f32.mrb[49].mxu1  ;;  %v8475_v45 = vmov 4  }
 0x1b5   :  { %v5886_v60 = vpop.f32.mrb[51].mxu0  ;;  %v5790_v61 = vpop.f32.mrb[50].mxu1 }
 0x1b6   :  { %v7339_v0 = vpack.c.bf16 %v5790_v61, %v5789_v48  ;;  %v1153_v2 = vpop.f32.mrb[51].mxu1  ;;  %v8476_v61 = vmov 11  }
 0x1b7   :  { %6313 = vset.pattern.permute.xlu0 %v8481_v6  ;;  %6314 = vset.pattern.permute.xlu1 %v6852_v11  ;;  %v7342_v12 = vpack.c.bf16 %v1153_v2, %v1150_v58  ;;  %v8480_v2 = vmov 6  }
 0x1b8   :  { %1813 = vperm.xlu0 %6313, %v7333_v44   ;;  %2348 = vperm.xlu1 %6314, %v7333_v44  }
 0x1bb   :  { %v5793_v17 = vpop.f32.mrb[52].mxu1 }
 0x1bc   :  { %6316 = vset.pattern.permute.xlu0 %v8477_v22  ;;  %6315 = vset.pattern.permute.xlu1 %v6854_v62  ;;  %v1166_v24 = vpop.f32.mrb[53].mxu1 }
 0x1bd   :  { %2568 = vperm.xlu0 %6316, %v7333_v44   ;;  %2036 = vperm.xlu1 %6315, %v7333_v44   ;;  %v5794_v25 = vpop.f32.mrb[54].mxu1 }
 0x1be   :  { %v7349_v7 = vpack.c.bf16 %v5794_v25, %v5793_v17  ;;  %v1169_v31 = vpop.f32.mrb[55].mxu1 }
 0x1bf   :  { %v7351_v32 = vpack.c.bf16 %v1169_v31, %v1166_v24 }
 0x1c1   :  { %6318 = vset.pattern.permute.xlu0 %v8474_v26  ;;  %6317 = vset.pattern.permute.xlu1 %v8475_v45  ;;  %v8478_v26 = vmov 13   ;;  %v8479_v45 = vmov 8  }
 0x1c2   :  { %2790 = vperm.xlu0 %6318, %v7333_v44   ;;  %2256 = vperm.xlu1 %6317, %v7333_v44  }
 0x1c3   :  { %v5797_v48 = vpop.f32.mrb[56].mxu1 }
 0x1c4   :  { %v1182_v58 = vpop.f32.mrb[57].mxu1 }
 0x1c5   :  { %v5798_v60 = vpop.f32.mrb[58].mxu1 }
 0x1c6   :  { %6320 = vset.pattern.permute.xlu0 %v8476_v61  ;;  %6319 = vset.pattern.permute.xlu1 %v8480_v2  ;;  %v7359_v17 = vpack.c.bf16 %v5798_v60, %v5797_v48  ;;  %v1185_v24 = vpop.f32.mrb[59].mxu1 }
 0x1c7   :  { %3010 = vperm.xlu0 %6320, %v7333_v44   ;;  %2476 = vperm.xlu1 %6319, %v7333_v44   ;;  %v7363_v25 = vpack.c.bf16 %v1185_v24, %v1182_v58 }
 0x1c8   :  { %v1962_v22 = vpop.permute.xlu0 %1961 }
 0x1c9   :  { %v1960_v31 = vpop.permute.xlu1 %1959 }
 0x1ca   :  { %5928 = vmatpush3.bf16.msra.mxu1 %v1960_v31 }
 0x1cb   :  { %6322 = vset.pattern.permute.xlu0 %v8478_v26  ;;  %6321 = vset.pattern.permute.xlu1 %v8479_v45  ;;  %v5801_v61 = vpop.f32.mrb[60].mxu1 }
 0x1cc   :  { %3230 = vperm.xlu0 %6322, %v7333_v44   ;;  %2698 = vperm.xlu1 %6321, %v7333_v44   ;;  %v1198_v48 = vpop.f32.mrb[61].mxu1  ;;  %v7394_v28 = vpop.permute.xlu0 %2402 }
 0x1cd   :  { %5929 = vmatprep.subr.bf16.mxu1 %v8482_v39  ;;  %v7370_v60 = vpop.permute.xlu1 %2400  ;;  %v5802_v58 = vpop.f32.mrb[62].mxu1  ;;  %8577 = vst [vmem:[#allocation48_spill] sm:$0xff] %v7394_v28 }
 0x1ce   :  { %8569 = vst [vmem:[#allocation43_spill] sm:$0xff] %v7370_v60  ;;  %5930 = vmatpush3.bf16.msra.mxu1 %v1962_v22  ;;  %v7372_v24 = vpack.c.bf16 %v5802_v58, %v5801_v61  ;;  %v1201_v31 = vpop.f32.mrb[63].mxu1  ;;  %v8572_v61 = vmov 0  }
 0x1cf   :  { %5931 = vmatprep.subr.bf16.mxu1 %v8482_v39  ;;  %v7375_v26 = vpack.c.bf16 %v1201_v31, %v1198_v48 }
 0x1d0   :  { %8570 = vst [vmem:[#allocation44_spill] sm:$0xff] %v7372_v24  ;;  %6323 = vset.pattern.permute.xlu0 %v6849_v43  ;;  %6324 = vset.pattern.permute.xlu1 %v6850_v36 }
 0x1d1   :  { %1911 = vperm.xlu0 %6323, %v7337_v49   ;;  %v1966_v45 = vpop.permute.xlu1 %1965  ;;  %2132 = vperm.xlu1 %6324, %v7337_v49  }
 0x1d3   :  { %v5853_v2 = vpop.f32.mrb[64].mxu1 }
 0x1d4   :  { %v1504_v6 = vpop.f32.mrb[65].mxu1 }
 0x1d5   :  { %6326 = vset.pattern.permute.xlu0 %v6852_v11  ;;  %v7381_v22 = vpop.permute.xlu1 %2406  ;;  %6325 = vset.pattern.permute.xlu1 %v8572_v61  ;;  %v5854_v58 = vpop.f32.mrb[66].mxu1  ;;  %v8575_v11 = vmov 7   ;;  %v8576_v61 = vmov 0.0  }
 0x1d6   :  { %8571 = vst [vmem:[#allocation45_spill] sm:$0xff] %v7381_v22  ;;  %2352 = vperm.xlu0 %6326, %v7337_v49   ;;  %1818 = vperm.xlu1 %6325, %v7337_v49   ;;  %v7386_v43 = vpack.c.bf16 %v5854_v58, %v5853_v2  ;;  %v1507_v36 = vpop.f32.mrb[67].mxu1  ;;  %v8579_v58 = vmov 4  }
 0x1d7   :  { %v7388_v48 = vpack.c.bf16 %v1507_v36, %v1504_v6 }
 0x1d8   :  { %8573 = vst [vmem:[#allocation46_spill] sm:$0xff] %v7386_v43 }
 0x1d9   :  { %8574 = vst [vmem:[#allocation47_spill] sm:$0xff] %v7388_v48  ;;  %v1964_v31 = vpop.permute.xlu1 %1963  ;;  %v1968_v43 = vpop.permute.xlu0 %1967 }
 0x1da   :  { %6327 = vset.pattern.permute.xlu0 %v6854_v62  ;;  %5932 = vmatpush3.bf16.msra.mxu1 %v1964_v31  ;;  %v8581_v31 = vmov 9  }
 0x1db   :  { %2040 = vperm.xlu0 %6327, %v7337_v49   ;;  %6328 = vset.pattern.permute.xlu1 %v8575_v11  ;;  %v5857_v39 = vpop.f32.mrb[68].mxu1 }
 0x1dc   :  { %2572 = vperm.xlu1 %6328, %v7337_v49   ;;  %5933 = vmatprep.subr.bf16.mxu1 %v8576_v61  ;;  %v1520_v35 = vpop.f32.mrb[69].mxu1 }
 0x1dd   :  { %v7396_v2 = vpop.permute.xlu1 %2404  ;;  %v5858_v6 = vpop.f32.mrb[70].mxu1 }
 0x1de   :  { %8578 = vst [vmem:[#allocation49_spill] sm:$0xff] %v7396_v2  ;;  %5934 = vmatpush3.bf16.msra.mxu1 %v1966_v45  ;;  %v7400_v62 = vpack.c.bf16 %v5858_v6, %v5857_v39  ;;  %v1523_v36 = vpop.f32.mrb[71].mxu1  ;;  %v8584_v39 = vmov 11   ;;  %v7471_v14 = vpop.permute.xlu0 %2408 }
 0x1df   :  { %6329 = vset.pattern.permute.xlu0 %v8579_v58  ;;  %5935 = vmatprep.subr.bf16.mxu1 %v8576_v61  ;;  %v7404_v11 = vpack.c.bf16 %v1523_v36, %v1520_v35  ;;  %v8583_v58 = vmov 6   ;;  %8600 = vst [vmem:[#allocation65_spill] sm:$0xff] %v7471_v14 }
 0x1e0   :  { %8580 = vst [vmem:[#allocation50_spill] sm:$0xff] %v7400_v62  ;;  %2260 = vperm.xlu0 %6329, %v7337_v49   ;;  %6330 = vset.pattern.permute.xlu1 %v8581_v31  ;;  %v8589_v62 = vmov 13  }
 0x1e1   :  { %8582 = vst [vmem:[#allocation51_spill] sm:$0xff] %v7404_v11  ;;  %2794 = vperm.xlu1 %6330, %v7337_v49   ;;  %v1970_v48 = vpop.permute.xlu1 %1969  ;;  %v8588_v11 = vmov 8  }
 0x1e2   :  { %5936 = vmatpush3.bf16.msra.mxu1 %v1968_v43  ;;  %v7475_v56 = vpop.permute.xlu0 %2414 }
 0x1e3   :  { %5937 = vmatprep.subr.bf16.mxu1 %v8576_v61  ;;  %v5861_v45 = vpop.f32.mrb[72].mxu1  ;;  %8601 = vst [vmem:[#allocation66_spill] sm:$0xff] %v7475_v56 }
 0x1e4   :  { %6331 = vset.pattern.permute.xlu0 %v8583_v58  ;;  %v1536_v53 = vpop.f32.mrb[73].mxu1 }
 0x1e5   :  { %2480 = vperm.xlu0 %6331, %v7337_v49   ;;  %6332 = vset.pattern.permute.xlu1 %v8584_v39  ;;  %v7411_v6 = vpop.permute.xlu1 %2410  ;;  %v5862_v31 = vpop.f32.mrb[74].mxu1 }
 0x1e6   :  { %8585 = vst [vmem:[#allocation52_spill] sm:$0xff] %v7411_v6  ;;  %3014 = vperm.xlu1 %6332, %v7337_v49   ;;  %5938 = vmatpush3.bf16.msra.mxu1 %v1970_v48  ;;  %v7414_v35 = vpack.c.bf16 %v5862_v31, %v5861_v45  ;;  %v1539_v36 = vpop.f32.mrb[75].mxu1 }
 0x1e7   :  { %5939 = vmatprep.subr.bf16.mxu1 %v8576_v61  ;;  %v7417_v43 = vpack.c.bf16 %v1539_v36, %v1536_v53  ;;  %v6861_v53 = vmov 10   ;;  %v7428_v36 = vshrl.u32 %v1821_v13, 7 }
 0x1e8   :  { %8586 = vst [vmem:[#allocation53_spill] sm:$0xff] %v7414_v35  ;;  %v7477_v30 = vpop.permute.xlu0 %2182 }
 0x1e9   :  { %8587 = vst [vmem:[#allocation54_spill] sm:$0xff] %v7417_v43  ;;  %6333 = vset.pattern.permute.xlu0 %v8588_v11  ;;  %v1974_v58 = vpop.permute.xlu1 %1973  ;;  %8592 = vst [vmem:[#allocation57_spill] sm:$0xff] %v7428_v36  ;;  %v2137_v43 = vsub.s32 3, %v7428_v36  ;;  %v7500_v56 = vsub.s32 1, %v7428_v36  ;;  %v8613_v60 = vsub.s32 4, %v7428_v36 }
 0x1ea   :  { %2702 = vperm.xlu0 %6333, %v7337_v49   ;;  %6334 = vset.pattern.permute.xlu1 %v8589_v62 }
 0x1eb   :  { %3234 = vperm.xlu1 %6334, %v7337_v49   ;;  %v5865_v39 = vpop.f32.mrb[76].mxu1  ;;  %8609 = vst [vmem:[#allocation74_spill] sm:$0xff] %v7500_v56 }
 0x1ec   :  { %v1552_v33 = vpop.f32.mrb[77].mxu1 }
 0x1ed   :  { %v1972_v48 = vpop.permute.xlu1 %1971  ;;  %v5866_v45 = vpop.f32.mrb[78].mxu1 }
 0x1ee   :  { %5940 = vmatpush3.bf16.msra.mxu1 %v1972_v48  ;;  %v7423_v31 = vpack.c.bf16 %v5866_v45, %v5865_v39  ;;  %v1555_v35 = vpop.f32.mrb[79].mxu1  ;;  %6336 = vset.pattern.permute.xlu0 %v6861_v53  ;;  %v2357_v39 = vsub.s32 5, %v7428_v36  ;;  %v2577_v45 = vsub.s32 7, %v7428_v36 }
 0x1ef   :  { %5941 = vmatprep.subr.bf16.mxu1 %v8576_v61  ;;  %v7426_v11 = vpack.c.bf16 %v1555_v35, %v1552_v33  ;;  %6335 = vset.pattern.permute.xlu1 %v6861_v53  ;;  %v8507_v33 = vsub.s32 4, %v7428_v36  ;;  %v8509_v53 = vsub.s32 6, %v7428_v36 }
 0x1f0   :  { %8590 = vst [vmem:[#allocation55_spill] sm:$0xff] %v7423_v31  ;;  %v2045_v31 = vsub.s32 2, %v7428_v36 }
 0x1f1   :  { %8591 = vst [vmem:[#allocation56_spill] sm:$0xff] %v7426_v11  ;;  %v7440_v13 = vpop.permute.xlu1 %2412 }
 0x1f2   :  { %5942 = vmatpush3.bf16.msra.mxu1 %v1974_v58  ;;  %8593 = vst [vmem:[#allocation58_spill] sm:$0xff] %v7440_v13 }
 0x1f3   :  { %v7430_v62 = vpop.f32.mrb[80].mxu1  ;;  %5967 = vmatprep.subr.bf16.mxu1 %v8576_v61 }
 0x1f4   :  { %v5905_v48 = vpop.f32.mrb[81].mxu1  ;;  %v7511_v13 = vrot.slane %v7430_v62, %v2137_v43  ;;  %v7523_v1 = vrot.slane %v7430_v62, %v2357_v39  ;;  %v7533_v51 = vrot.slane %v7430_v62, %v2045_v31  ;;  %v7537_v28 = vrot.slane %v7430_v62, %v2577_v45 }
 0x1f5   :  { %v7437_v20 = vpop.f32.mrb[82].mxu1  ;;  %v7465_v29 = vpop.permute.xlu1 %2842 }
 0x1f6   :  { %v7443_v35 = vrot.slane %v7437_v20, %v2137_v43  ;;  %v5906_v58 = vpop.f32.mrb[83].mxu1  ;;  %v7447_v11 = vrot.slane %v7437_v20, %v2357_v39  ;;  %v7450_v48 = vrot.slane %v7437_v20, %v2045_v31  ;;  %v7453_v18 = vrot.slane %v7437_v20, %v2577_v45  ;;  %8599 = vst [vmem:[#allocation64_spill] sm:$0xff] %v7465_v29  ;;  %v1809_v43 = vld [vmem:[%s8464_s2] sm:$0xff] }
 0x1f7   :  { %v7458_v59 = vrot.slane %v7437_v20, %v8507_v33  ;;  %v7463_v58 = vrot.slane %v7437_v20, %v8509_v53  ;;  %v7549_v45 = vrot.slane %v7430_v62, %v8613_v60 }
 0x1f8   :  { %8594 = vst [vmem:[#allocation59_spill] sm:$0xff] %v7447_v11  ;;  %8595 = vst [vmem:[#allocation60_spill] sm:$0xff] %v7450_v48 }
 0x1f9   :  { %8596 = vst [vmem:[#allocation61_spill] sm:$0xff] %v7453_v18  ;;  %8597 = vst [vmem:[#allocation62_spill] sm:$0xff] %v7458_v59  ;;  %v7467_v42 = vpop.permute.xlu1 %2186  ;;  %v7481_v59 = vpop.permute.xlu0 %2180 }
 0x1fa   :  { %8598 = vst [vmem:[#allocation63_spill] sm:$0xff] %v7463_v58 }
 0x1fd   :  { %v7469_v9 = vpop.permute.xlu1 %2184  ;;  %v7485_v58 = vpop.permute.xlu0 %2188 }
 0x201   :  { %v7473_v46 = vpop.permute.xlu1 %2190  ;;  %v7489_v11 = vpop.permute.xlu0 %2194 }
 0x202   :  { %8604 = vst [vmem:[#allocation69_spill] sm:$0xff] %v7489_v11 }
 0x205   :  { %v7479_v33 = vpop.permute.xlu1 %2192 }
 0x208   :  { %v7493_v24 = vpop.permute.xlu0 %2622 }
 0x209   :  { %v7483_v53 = vpop.permute.xlu1 %2620  ;;  %8606 = vst [vmem:[#allocation71_spill] sm:$0xff] %v7493_v24 }
 0x20a   :  { %8602 = vst [vmem:[#allocation67_spill] sm:$0xff] %v7483_v53 }
 0x210   :  { %v7487_v29 = vpop.permute.xlu1 %2626 }
 0x211   :  { %8603 = vst [vmem:[#allocation68_spill] sm:$0xff] %v7487_v29  ;;  %v7508_v29 = vrot.slane %v7430_v62, %v7500_v56 }
 0x214   :  { %v7491_v34 = vpop.permute.xlu1 %2624 }
 0x215   :  { %8605 = vst [vmem:[#allocation70_spill] sm:$0xff] %v7491_v34  ;;  %v7514_v34 = vsub.s32 0, %v7428_v36 }
 0x217   :  { %8612 = vst [vmem:[#allocation77_spill] sm:$0xff] %v7514_v34 }
 0x218   :  { %v7495_v27 = vpop.permute.xlu1 %2630 }
 0x219   :  { %8607 = vst [vmem:[#allocation72_spill] sm:$0xff] %v7495_v27  ;;  %v7497_v10 = vpop.permute.xlu0 %2628 }
 0x21a   :  { %8608 = vst [vmem:[#allocation73_spill] sm:$0xff] %v7497_v10 }
 0x220   :  { %v7502_v15 = vpop.permute.xlu0 %2634 }
 0x221   :  { %8610 = vst [vmem:[#allocation75_spill] sm:$0xff] %v7502_v15  ;;  %v7504_v53 = vpop.permute.xlu1 %2632  ;;  %v7520_v15 = vrot.slane %v7430_v62, %v7514_v34 }
 0x222   :  { %8611 = vst [vmem:[#allocation76_spill] sm:$0xff] %v7504_v53 }
 0x232   :  { %v1908_v27 = vpop.permute.xlu0 %1907  ;;  %v2129_v24 = vpop.permute.xlu1 %2128 }
 0x233   :  { %v1918_v10 = vadd.f32 %v7508_v29, %v1908_v27  ;;  %v2139_v19 = vadd.f32 %v7511_v13, %v2129_v24 }
 0x235   :  { %v1922_v53 = vmul.f32 0.2, %v1918_v10  ;;  %v2143_v6 = vmul.f32 0.2, %v2139_v19  ;;  %vm1920_vm1 = vcmp.gt.f32.partialorder %v1918_v10, 0.0  ;;  %vm2141_vm2 = vcmp.gt.f32.partialorder %v2139_v19, 0.0 }
 0x237   :  { %v1814_v38 = vpop.permute.xlu0 %1813  ;;  %v2349_v14 = vpop.permute.xlu1 %2348  ;;  %v1924_v27 = vsel %vm1920_vm1, %v1918_v10, %v1922_v53  ;;  %v2145_v39 = vsel %vm2141_vm2, %v2139_v19, %v2143_v6 }
 0x238   :  { %v1825_v24 = vadd.f32 %v7520_v15, %v1814_v38  ;;  %v7529_v4 = vadd.f32 %v1924_v27, %v1809_v43  ;;  %v2359_v22 = vadd.f32 %v7523_v1, %v2349_v14  ;;  %v7539_v10 = vadd.f32 %v2145_v39, %v1809_v43 }
 0x23a   :  { %v1829_v2 = vmul.f32 0.2, %v1825_v24  ;;  %1928 = vmax.xlane.f32.xlu1 %v7529_v4  ;;  %vm1827_vm3 = vcmp.gt.f32.partialorder %v1825_v24, 0.0  ;;  %v2363_v38 = vmul.f32 0.2, %v2359_v22  ;;  %vm2361_vm4 = vcmp.gt.f32.partialorder %v2359_v22, 0.0 }
 0x23c   :  { %v2569_v54 = vpop.permute.xlu0 %2568  ;;  %v2037_v16 = vpop.permute.xlu1 %2036  ;;  %v1831_v27 = vsel %vm1827_vm3, %v1825_v24, %v1829_v2  ;;  %v2365_v57 = vsel %vm2361_vm4, %v2359_v22, %v2363_v38 }
 0x23d   :  { %v2047_v53 = vadd.f32 %v7533_v51, %v2037_v16  ;;  %v2579_v19 = vadd.f32 %v7537_v28, %v2569_v54  ;;  %v7544_v14 = vadd.f32 %v1831_v27, %v1809_v43  ;;  %v8614_v16 = vsub.s32 6, %v7428_v36 }
 0x23e   :  { %2149 = vmax.xlane.f32.xlu1 %v7539_v10  ;;  %v7557_v24 = vadd.f32 %v2365_v57, %v1809_v43  ;;  %v7561_v27 = vrot.slane %v7437_v20, %v7500_v56 }
 0x23f   :  { %v2051_v6 = vmul.f32 0.2, %v2047_v53  ;;  %vm2049_vm5 = vcmp.gt.f32.partialorder %v2047_v53, 0.0  ;;  %v7555_v2 = vrot.slane %v7430_v62, %v8614_v16  ;;  %v2583_v54 = vmul.f32 0.2, %v2579_v19 }
 0x240   :  { %8615 = vst [vmem:[#allocation78_spill] sm:$0xff] %v7557_v24  ;;  %vm2581_vm6 = vcmp.gt.f32.partialorder %v2579_v19, 0.0 }
 0x241   :  { %v2791_v31 = vpop.permute.xlu0 %2790  ;;  %v2257_v39 = vpop.permute.xlu1 %2256  ;;  %v2053_v18 = vsel %vm2049_vm5, %v2047_v53, %v2051_v6  ;;  %v2585_v16 = vsel %vm2581_vm6, %v2579_v19, %v2583_v54 }
 0x242   :  { %1835 = vmax.xlane.f32.xlu1 %v7544_v14  ;;  %v2267_v60 = vadd.f32 %v7549_v45, %v2257_v39  ;;  %v7568_v62 = vadd.f32 %v2053_v18, %v1809_v43  ;;  %v2801_v57 = vadd.f32 %v7561_v27, %v2791_v31  ;;  %v7576_v56 = vadd.f32 %v2585_v16, %v1809_v43  ;;  %v1810_v16 = vld [vmem:[%s8464_s2 + $0x10] sm:$0xff] }
 0x244   :  { %v2271_v11 = vmul.f32 0.2, %v2267_v60  ;;  %vm2269_vm8 = vcmp.gt.f32.partialorder %v2267_v60, 0.0  ;;  %8618 = vst [vmem:[#allocation81_spill] sm:$0xff] %v7576_v56  ;;  %v2805_v18 = vmul.f32 0.2, %v2801_v57 }
 0x245   :  { %vm2803_vm9 = vcmp.gt.f32.partialorder %v2801_v57, 0.0 }
 0x246   :  { %v7564_v22 = vpop.permute.xlu0 %3010  ;;  %2369 = vmax.xlane.f32.xlu1 %v7557_v24  ;;  %v2477_v38 = vpop.permute.xlu1 %2476 }
 0x247   :  { %v2487_v36 = vadd.f32 %v7555_v2, %v2477_v38  ;;  %v2273_v38 = vsel %vm2269_vm8, %v2267_v60, %v2271_v11 }
 0x248   :  { %v7581_v54 = vadd.f32 %v2273_v38, %v1809_v43 }
 0x249   :  { %v2491_v63 = vmul.f32 0.2, %v2487_v36  ;;  %vm2489_vm7 = vcmp.gt.f32.partialorder %v2487_v36, 0.0 }
 0x24a   :  { %2057 = vmax.xlane.f32.xlu1 %v7568_v62  ;;  %8619 = vst [vmem:[#allocation82_spill] sm:$0xff] %v7581_v54 }
 0x24b   :  { %v7572_v53 = vpop.permute.xlu0 %3230  ;;  %v7574_v6 = vpop.permute.xlu1 %2698  ;;  %v2493_v39 = vsel %vm2489_vm7, %v2487_v36, %v2491_v63  ;;  %v7588_v63 = vld [vmem:[%s8464_s2 + $0x8] sm:$0xff]  ;;  %v2807_v36 = vsel %vm2803_vm9, %v2801_v57, %v2805_v18 }
 0x24c   :  { %8616 = vst [vmem:[#allocation79_spill] sm:$0xff] %v7572_v53  ;;  %8617 = vst [vmem:[#allocation80_spill] sm:$0xff] %v7574_v6  ;;  %v7578_v24 = vadd.f32 %v2493_v39, %v1809_v43  ;;  %v7595_v43 = vadd.f32 %v2807_v36, %v7588_v63 }
 0x24e   :  { %2589 = vmax.xlane.f32.xlu1 %v7576_v56 }
 0x250   :  { %v1912_v19 = vpop.permute.xlu0 %1911  ;;  %v2133_v31 = vpop.permute.xlu1 %2132 }
 0x251   :  { %v1919_v48 = vadd.f32 %v7508_v29, %v1912_v19  ;;  %v2140_v53 = vadd.f32 %v7511_v13, %v2133_v31 }
 0x252   :  { %2277 = vmax.xlane.f32.xlu1 %v7581_v54 }
 0x253   :  { %v1923_v11 = vmul.f32 0.2, %v1919_v48  ;;  %v2144_v60 = vmul.f32 0.2, %v2140_v53  ;;  %vm1921_vm10 = vcmp.gt.f32.partialorder %v1919_v48, 0.0  ;;  %vm2142_vm11 = vcmp.gt.f32.partialorder %v2140_v53, 0.0 }
 0x255   :  { %v2353_v29 = vpop.permute.xlu0 %2352  ;;  %v1819_v13 = vpop.permute.xlu1 %1818  ;;  %v1925_v39 = vsel %vm1921_vm10, %v1919_v48, %v1923_v11  ;;  %v2146_v19 = vsel %vm2142_vm11, %v2140_v53, %v2144_v60 }
 0x256   :  { %2811 = vmax.xlane.f32.xlu1 %v7595_v43  ;;  %v1826_v57 = vadd.f32 %v7520_v15, %v1819_v13  ;;  %v7599_v18 = vadd.f32 %v1925_v39, %v1810_v16  ;;  %v2360_v38 = vadd.f32 %v7523_v1, %v2353_v29  ;;  %v7603_v36 = vadd.f32 %v2146_v19, %v1810_v16 }
 0x258   :  { %v1830_v31 = vmul.f32 0.2, %v1826_v57  ;;  %1930 = vmax.xlane.f32.xlu0 %v7599_v18  ;;  %vm1828_vm12 = vcmp.gt.f32.partialorder %v1826_v57, 0.0  ;;  %v2364_v54 = vmul.f32 0.2, %v2360_v38  ;;  %vm2362_vm13 = vcmp.gt.f32.partialorder %v2360_v38, 0.0 }
 0x25a   :  { %v2041_v56 = vpop.permute.xlu0 %2040  ;;  %v1832_v11 = vsel %vm1828_vm12, %v1826_v57, %v1830_v31  ;;  %v2366_v60 = vsel %vm2362_vm13, %v2360_v38, %v2364_v54 }
 0x25b   :  { %v2048_v6 = vadd.f32 %v7533_v51, %v2041_v56  ;;  %v2573_v48 = vpop.permute.xlu1 %2572  ;;  %v7608_v13 = vadd.f32 %v1832_v11, %v1810_v16  ;;  %v7611_v39 = vadd.f32 %v2366_v60, %v1810_v16 }
 0x25c   :  { %2151 = vmax.xlane.f32.xlu0 %v7603_v36  ;;  %v2580_v15 = vadd.f32 %v7537_v28, %v2573_v48 }
 0x25d   :  { %v2052_v1 = vmul.f32 0.2, %v2048_v6  ;;  %vm2050_vm14 = vcmp.gt.f32.partialorder %v2048_v6, 0.0 }
 0x25e   :  { %v2584_v29 = vmul.f32 0.2, %v2580_v15  ;;  %vm2582_vm15 = vcmp.gt.f32.partialorder %v2580_v15, 0.0 }
 0x25f   :  { %v2261_v53 = vpop.permute.xlu0 %2260  ;;  %v2054_v56 = vsel %vm2050_vm14, %v2048_v6, %v2052_v1 }
 0x260   :  { %1837 = vmax.xlane.f32.xlu0 %v7608_v13  ;;  %v2268_v51 = vadd.f32 %v7549_v45, %v2261_v53  ;;  %v2795_v57 = vpop.permute.xlu1 %2794  ;;  %v7616_v31 = vadd.f32 %v2054_v56, %v1810_v16  ;;  %v2586_v48 = vsel %vm2582_vm15, %v2580_v15, %v2584_v29  ;;  %v7635_v53 = vld [vmem:[%s8464_s2 + $0x18] sm:$0xff]  ;;  %v3021_v56 = vadd.f32 %v7443_v35, %v7564_v22 }
 0x261   :  { %v2802_v38 = vadd.f32 %v7561_v27, %v2795_v57  ;;  %v7622_v6 = vadd.f32 %v2586_v48, %v1810_v16 }
 0x262   :  { %v2272_v54 = vmul.f32 0.2, %v2268_v51  ;;  %vm2270_vm2 = vcmp.gt.f32.partialorder %v2268_v51, 0.0  ;;  %v3025_v57 = vmul.f32 0.2, %v3021_v56  ;;  %vm3023_vm4 = vcmp.gt.f32.partialorder %v3021_v56, 0.0 }
 0x263   :  { %vm2804_vm3 = vcmp.gt.f32.partialorder %v2802_v38, 0.0 }
 0x264   :  { %v2481_v19 = vpop.permute.xlu0 %2480  ;;  %2371 = vmax.xlane.f32.xlu0 %v7611_v39  ;;  %v2274_v15 = vsel %vm2270_vm2, %v2268_v51, %v2272_v54  ;;  %v6863_v51 = vmov 12  }
 0x265   :  { %v2488_v28 = vadd.f32 %v7555_v2, %v2481_v19  ;;  %v2806_v2 = vmul.f32 0.2, %v2802_v38  ;;  %v7629_v27 = vadd.f32 %v2274_v15, %v1810_v16  ;;  %v3027_v19 = vsel %vm3023_vm4, %v3021_v56, %v3025_v57 }
 0x266   :  { %v7664_v48 = vadd.f32 %v3027_v19, %v7588_v63  ;;  %vm2033_vm4 = vcmask 1048064  }
 0x267   :  { %v2492_v11 = vmul.f32 0.2, %v2488_v28  ;;  %2846 = vrot.lane.b32.xlu1 %v7251_v55, %s6844_s3  ;;  %vm2490_vm1 = vcmp.gt.f32.partialorder %v2488_v28, 0.0  ;;  %v2808_v60 = vsel %vm2804_vm3, %v2802_v38, %v2806_v2  ;;  %vm1904_vm3 = vcmask 523264  }
 0x268   :  { %2059 = vmax.xlane.f32.xlu0 %v7616_v31  ;;  %v7639_v29 = vadd.f32 %v2808_v60, %v7635_v53 }
 0x269   :  { %v2494_v45 = vsel %vm2490_vm1, %v2488_v28, %v2492_v11  ;;  %v3015_v28 = vpop.permute.xlu1 %3014  ;;  %v7670_v2 = vpop.permute.xlu0 %2702 }
 0x26a   :  { %v7624_v1 = vadd.f32 %v2494_v45, %v1810_v16  ;;  %v8533_v16 = vmov 15   ;;  %v3022_v11 = vadd.f32 %v7443_v35, %v3015_v28 }
 0x26b   :  { %2848 = vrot.lane.b32.xlu1 %v7247_v50, %s6844_s3 }
 0x26c   :  { %2591 = vmax.xlane.f32.xlu0 %v7622_v6  ;;  %v3026_v15 = vmul.f32 0.2, %v3022_v11  ;;  %vm3024_vm5 = vcmp.gt.f32.partialorder %v3022_v11, 0.0 }
 0x26d   :  { %v7667_v54 = vpop.permute.xlu1 %3234 }
 0x26e   :  { %v3028_v19 = vsel %vm3024_vm5, %v3022_v11, %v3026_v15  ;;  %v6864_v15 = vmov 14  }
 0x26f   :  { %2918 = vperm.xlu1 %6335, %v7333_v44  }
 0x270   :  { %2279 = vmax.xlane.f32.xlu0 %v7629_v27 }
 0x273   :  { %2852 = vrot.lane.b32.xlu1 %v7259_v3, %s6844_s3 }
 0x274   :  { %2813 = vmax.xlane.f32.xlu0 %v7639_v29  ;;  %6338 = vset.pattern.permute.xlu1 %v8533_v16 }
 0x277   :  { %2854 = vrot.lane.b32.xlu1 %v7277_v23, %s6844_s3 }
 0x27b   :  { %3454 = vperm.xlu1 %6338, %v7337_v49  }
 0x27f   :  { %6339 = vset.pattern.permute.xlu1 %v6863_v51 }
 0x28a   :  { %2844 = vrot.lane.b32.xlu0 %v7232_v40, %s6844_s3 }
 0x28e   :  { %2850 = vrot.lane.b32.xlu0 %v7263_v8, %s6844_s3 }
 0x292   :  { %2922 = vperm.xlu0 %6336, %v7337_v49  }
 0x296   :  { %6337 = vset.pattern.permute.xlu0 %v8533_v16 }
 0x297   :  { %3450 = vperm.xlu0 %6337, %v7333_v44  }
 0x29b   :  { %6340 = vset.pattern.permute.xlu0 %v6863_v51 }
 0x29f   :  { %2497 = vmax.xlane.f32.xlu1 %v7578_v24 }
 0x2b0   :  { %3062 = vrot.lane.b32.xlu1 %v7342_v12, %s6844_s3 }
 0x2b6   :  { %2499 = vmax.xlane.f32.xlu0 %v7624_v1 }
 0x2c7   :  { %v1929_v38 = vpop.xlane.xlu1 %1928 }
 0x2c8   :  { %v1932_v22 = vsub.f32 %v7529_v4, %v1929_v38  ;;  %v7680_v4 = vadd.f32 %v3028_v19, %v7635_v53 }
 0x2ca   :  { %v1934_v60 = vmul.f32 1.442695, %v1932_v22 }
 0x2cb   :  { %v2150_v45 = vpop.xlane.xlu1 %2149 }
 0x2cc   :  { %2856 = vrot.lane.b32.xlu0 %v7273_v21, %s6844_s3  ;;  %6586 = vpow2.f32 %v1934_v60 }
 0x2cf   :  { %v1836_v56 = vpop.xlane.xlu1 %1835 }
 0x2d0   :  { %v1839_v35 = vsub.f32 %v7544_v14, %v1836_v56 }
 0x2d2   :  { %v1841_v38 = vmul.f32 1.442695, %v1839_v35 }
 0x2d4   :  { %3031 = vmax.xlane.f32.xlu1 %v7664_v48 }
 0x2d6   :  { %v7689_v60 = vpop.eup %6586 }
 0x2e5   :  { %v1931_v51 = vpop.xlane.xlu0 %1930  ;;  %3066 = vrot.lane.b32.xlu1 %v7351_v32, %s6844_s3 }
 0x2e6   :  { %v1933_v57 = vsub.f32 %v7599_v18, %v1931_v51 }
 0x2e8   :  { %v1936_v16 = vmul.f32 1.442695, %v1933_v57 }
 0x2e9   :  { %3068 = vrot.lane.b32.xlu1 %v7349_v7, %s6844_s3  ;;  %v2152_v28 = vpop.xlane.xlu0 %2151 }
 0x2ea   :  { %6588 = vpow2.f32 %v1936_v16 }
 0x2eb   :  { %3033 = vmax.xlane.f32.xlu0 %v7680_v4  ;;  %6590 = vpow2.f32 %v1841_v38  ;;  %v2154_v38 = vsub.f32 %v7603_v36, %v2152_v28 }
 0x2ed   :  { %3138 = vperm.xlu1 %6339, %v7333_v44   ;;  %v1838_v22 = vpop.xlane.xlu0 %1837  ;;  %v2157_v36 = vmul.f32 1.442695, %v2154_v38  ;;  %v8627_v38 = vld [vmem:[#allocation61_spill] sm:$0xff] }
 0x2ee   :  { %v1840_v18 = vsub.f32 %v7608_v13, %v1838_v22  ;;  %v7716_v22 = vpop.xlane.xlu1 %2369 }
 0x2f0   :  { %v1843_v11 = vmul.f32 1.442695, %v1840_v18 }
 0x2f1   :  { %3072 = vrot.lane.b32.xlu1 %v7359_v17, %s6844_s3  ;;  %v7687_v14 = vpop.xlane.xlu0 %2371 }
 0x2f2   :  { %6592 = vpow2.f32 %v1843_v11  ;;  %6342 = vset.pattern.permute.xlu1 %v6864_v15 }
 0x2f3   :  { %6594 = vpow2.f32 %v2157_v36 }
 0x2f4   :  { %v7691_v16 = vpop.eup %6588 }
 0x2f5   :  { %8620 = vst [vmem:[#allocation83_spill] sm:$0xff] %v7691_v16  ;;  %3074 = vrot.lane.b32.xlu1 %v7375_v26, %s6844_s3  ;;  %v2060_v51 = vpop.xlane.xlu0 %2059  ;;  %v1942_v13 = vpack.c.bf16 %v7691_v16, %v7689_v60  ;;  %v7703_v57 = vpop.eup %6590  ;;  %v8662_v16 = vld [vmem:[#allocation73_spill] sm:$0xff] }
 0x2f6   :  { %8621 = vst [vmem:[#allocation84_spill] sm:$0xff] %v7703_v57 }
 0x2f7   :  { %5944 = vmatmul.mubr.bf16.vlgmr.msra.gmra.mrb[84].mxu1 %v1942_v13 }
 0x2f8   :  { %5968 = vmatpush3.bf16.msra.mxu1 %v7481_v59  ;;  %5983 = vmatprep.mubr.msk.bf16.mxu1 %vm6848_vm0, %v8576_v61 }
 0x2f9   :  { %v7700_v56 = vpop.xlane.xlu0 %2591  ;;  %5969 = vmatprep.subr.bf16.mxu1 %v8576_v61 }
 0x2fc   :  { %v7705_v19 = vpop.eup %6592  ;;  %5970 = vmatpush3.bf16.msra.mxu1 %v7477_v30  ;;  %v2153_v30 = vsub.f32 %v7539_v10, %v2150_v45  ;;  %v2062_v45 = vsub.f32 %v7616_v31, %v2060_v51  ;;  %v8625_v51 = vld [vmem:[#allocation24_spill] sm:$0xff] }
 0x2fd   :  { %8622 = vst [vmem:[#allocation85_spill] sm:$0xff] %v7705_v19  ;;  %v7708_v35 = vpop.xlane.xlu0 %2279  ;;  %5971 = vmatprep.subr.bf16.mxu1 %v8576_v61  ;;  %v1849_v59 = vpack.c.bf16 %v7705_v19, %v7703_v57  ;;  %v8658_v19 = vld [vmem:[#allocation81_spill] sm:$0xff] }
 0x2fe   :  { %v2065_v11 = vmul.f32 1.442695, %v2062_v45 }
 0x2ff   :  { %5924 = vmatmul.mubr.bf16.vlgmr.msra.gmra.mrb[52].mxu0 %v1849_v59 }
 0x300   :  { %5948 = vmatpush3.bf16.msra.mxu0 %v7234_v41  ;;  %5972 = vmatpush3.bf16.msra.mxu1 %v7469_v9  ;;  %v2155_v41 = vmul.f32 1.442695, %v2153_v30  ;;  %v2058_v9 = vpop.xlane.xlu1 %2057 }
 0x301   :  { %v7718_v18 = vpop.xlane.xlu0 %2813  ;;  %3064 = vrot.lane.b32.xlu0 %v7339_v0, %s6844_s3  ;;  %5949 = vmatprep.subr.bf16.mxu0 %v8576_v61 }
 0x302   :  { %5973 = vmatprep.subr.bf16.mxu1 %v8576_v61  ;;  %5963 = vmatprep.mubr.msk.bf16.mxu0 %vm6848_vm0, %v8576_v61  ;;  %6596 = vpow2.f32 %v2155_v41  ;;  %v8628_v41 = vld [vmem:[#allocation26_spill] sm:$0xff] }
 0x303   :  { %6598 = vpow2.f32 %v2065_v11  ;;  %v8632_v11 = vld [vmem:[#allocation80_spill] sm:$0xff] }
 0x304   :  { %5950 = vmatpush3.bf16.msra.mxu0 %v7230_v37  ;;  %5974 = vmatpush3.bf16.msra.mxu1 %v7467_v42  ;;  %v2708_v37 = vrot.slane %v7437_v20, %v7514_v34  ;;  %v2061_v42 = vsub.f32 %v7568_v62, %v2058_v9  ;;  %v8629_v9 = vld [vmem:[#allocation43_spill] sm:$0xff] }
 0x305   :  { %3070 = vrot.lane.b32.xlu0 %v7363_v25, %s6844_s3  ;;  %5951 = vmatprep.subr.bf16.mxu0 %v8576_v61  ;;  %v7733_v10 = vpop.permute.xlu0 %2844 }
 0x306   :  { %5975 = vmatprep.subr.bf16.mxu1 %v8576_v61  ;;  %v2710_v28 = vadd.f32 %v2708_v37, %v7670_v2  ;;  %v7760_v2 = vpop.xlane.xlu1 %2589 }
 0x308   :  { %5952 = vmatpush3.bf16.msra.mxu0 %v7249_v52  ;;  %5976 = vmatpush3.bf16.msra.mxu1 %v7485_v58  ;;  %v2063_v58 = vmul.f32 1.442695, %v2061_v42  ;;  %v2714_v20 = vmul.f32 0.2, %v2710_v28  ;;  %vm2712_vm6 = vcmp.gt.f32.partialorder %v2710_v28, 0.0 }
 0x309   :  { %3142 = vperm.xlu0 %6340, %v7337_v49   ;;  %5953 = vmatprep.subr.bf16.mxu0 %v8576_v61  ;;  %v7747_v52 = vpop.permute.xlu0 %2850 }
 0x30a   :  { %5977 = vmatprep.subr.bf16.mxu1 %v8576_v61  ;;  %6600 = vpow2.f32 %v2063_v58  ;;  %v2278_v45 = vpop.xlane.xlu1 %2277  ;;  %v2709_v58 = vadd.f32 %v2708_v37, %v8632_v11  ;;  %v8636_v37 = vld [vmem:[#allocation49_spill] sm:$0xff] }
 0x30c   :  { %5954 = vmatpush3.bf16.msra.mxu0 %v7245_v47  ;;  %5978 = vmatpush3.bf16.msra.mxu1 %v7473_v46  ;;  %v7755_v47 = vpop.eup %6594  ;;  %v8624_v46 = vld [vmem:[#allocation60_spill] sm:$0xff]  ;;  %vm2711_vm7 = vcmp.gt.f32.partialorder %v2709_v58, 0.0 }
 0x30d   :  { %5955 = vmatprep.subr.bf16.mxu0 %v8576_v61  ;;  %5979 = vmatprep.subr.bf16.mxu1 %v8576_v61  ;;  %8623 = vst [vmem:[#allocation86_spill] sm:$0xff] %v7755_v47 }
 0x30e   :  { %6341 = vset.pattern.permute.xlu0 %v6864_v15  ;;  %v7762_v15 = vpop.eup %6596 }
 0x30f   :  { %v2163_v13 = vpack.c.bf16 %v7755_v47, %v7762_v15  ;;  %v7780_v42 = vpop.eup %6598  ;;  %v8663_v47 = vld [vmem:[#allocation31_spill] sm:$0xff] }
 0x310   :  { %5956 = vmatpush3.bf16.msra.mxu0 %v7261_v5  ;;  %5980 = vmatpush3.bf16.msra.mxu1 %v7479_v33  ;;  %v8626_v5 = vld [vmem:[#allocation69_spill] sm:$0xff]  ;;  %v2716_v33 = vsel %vm2712_vm6, %v2710_v28, %v2714_v20  ;;  %8630 = vst [vmem:[#allocation60_spill] sm:$0xff] %v7780_v42 }
 0x311   :  { %v2923_v62 = vpop.permute.xlu0 %2922  ;;  %5957 = vmatprep.subr.bf16.mxu0 %v8576_v61  ;;  %5981 = vmatprep.subr.bf16.mxu1 %v8576_v61  ;;  %v7774_v36 = vadd.f32 %v2716_v33, %v7635_v53  ;;  %v8633_v20 = vld [vmem:[#allocation25_spill] sm:$0xff]  ;;  %v2713_v33 = vmul.f32 0.2, %v2709_v58 }
 0x312   :  { %v7758_v31 = vadd.f32 %v8624_v46, %v2923_v62  ;;  %v8634_v62 = vld [vmem:[#allocation48_spill] sm:$0xff] }
 0x314   :  { %5958 = vmatpush3.bf16.msra.mxu0 %v8625_v51  ;;  %5982 = vmatpush3.bf16.msra.mxu1 %v8626_v5  ;;  %v7785_v28 = vpop.eup %6600  ;;  %v7794_v5 = vpop.xlane.xlu1 %2811  ;;  %vm2932_vm13 = vcmp.gt.f32.partialorder %v7758_v31, 0.0 }
 0x315   :  { %5959 = vmatprep.subr.bf16.mxu0 %v8576_v61  ;;  %6007 = vmatprep.subr.bf16.mxu1 %v8576_v61  ;;  %8631 = vst [vmem:[#allocation24_spill] sm:$0xff] %v7785_v28  ;;  %v2071_v51 = vpack.c.bf16 %v7780_v42, %v7785_v28  ;;  %v2593_v28 = vsub.f32 %v8658_v19, %v7760_v2  ;;  %v8661_v2 = vld [vmem:[#allocation33_spill] sm:$0xff] }
 0x316   :  { %v3451_v59 = vpop.permute.xlu0 %3450 }
 0x317   :  { %v7771_v30 = vadd.f32 %v8627_v38, %v3451_v59  ;;  %5984 = vmatmul.mubr.bf16.vlgmr.msra.gmra.mrb[88].mxu1 %v2163_v13  ;;  %v2374_v13 = vsub.f32 %v7611_v39, %v7687_v14  ;;  %v8635_v59 = vld [vmem:[#allocation16_spill] sm:$0xff]  ;;  %v2715_v39 = vsel %vm2711_vm7, %v2709_v58, %v2713_v33  ;;  %v8642_v58 = vld [vmem:[#allocation82_spill] sm:$0xff] }
 0x318   :  { %5960 = vmatpush3.bf16.msra.mxu0 %v8628_v41  ;;  %6008 = vmatpush3.bf16.msra.mxu1 %v8629_v9  ;;  %v8637_v41 = vld [vmem:[#allocation78_spill] sm:$0xff]  ;;  %v7808_v14 = vpop.permute.xlu1 %2846  ;;  %v2281_v33 = vsub.f32 %v8642_v58, %v2278_v45 }
 0x319   :  { %2721 = vmax.xlane.f32.xlu1 %v7774_v36  ;;  %5961 = vmatprep.subr.bf16.mxu0 %v8576_v61  ;;  %v2373_v9 = vsub.f32 %v8637_v41, %v7716_v22  ;;  %v2377_v11 = vmul.f32 1.442695, %v2374_v13  ;;  %v2282_v22 = vsub.f32 %v7629_v27, %v7708_v35  ;;  %v8640_v13 = vld [vmem:[#allocation18_spill] sm:$0xff]  ;;  %v8644_v27 = vld [vmem:[#allocation17_spill] sm:$0xff]  ;;  %v8645_v35 = vld [vmem:[#allocation52_spill] sm:$0xff]  ;;  %vm3463_vm11 = vcmp.gt.f32.partialorder %v7771_v30, 0.0 }
 0x31a   :  { %6009 = vmatprep.subr.bf16.mxu1 %v8576_v61  ;;  %6023 = vmatprep.mubr.msk.bf16.mxu1 %vm6848_vm0, %v8576_v61  ;;  %v8643_v41 = vld [vmem:[#allocation30_spill] sm:$0xff] }
 0x31b   :  { %6602 = vpow2.f32 %v2377_v11  ;;  %v2285_v11 = vmul.f32 1.442695, %v2282_v22  ;;  %v8647_v45 = vld [vmem:[#allocation58_spill] sm:$0xff] }
 0x31c   :  { %5962 = vmatpush3.bf16.msra.mxu0 %v8633_v20  ;;  %6010 = vmatpush3.bf16.msra.mxu1 %v8634_v62  ;;  %v8638_v20 = vld [vmem:[#allocation15_spill] sm:$0xff]  ;;  %v8639_v62 = vld [vmem:[#allocation45_spill] sm:$0xff] }
 0x31d   :  { %5987 = vmatprep.subr.bf16.mxu0 %v8576_v61  ;;  %6011 = vmatprep.subr.bf16.mxu1 %v8576_v61 }
 0x31f   :  { %5964 = vmatmul.mubr.bf16.vlgmr.msra.gmra.mrb[56].mxu0 %v2071_v51  ;;  %v2375_v51 = vmul.f32 1.442695, %v2373_v9  ;;  %v7825_v9 = vpop.permute.xlu1 %2848 }
 0x320   :  { %5988 = vmatpush3.bf16.msra.mxu0 %v8635_v59  ;;  %6012 = vmatpush3.bf16.msra.mxu1 %v8636_v37  ;;  %v7813_v59 = vadd.f32 %v2715_v39, %v7588_v63  ;;  %v8641_v37 = vld [vmem:[#allocation65_spill] sm:$0xff] }
 0x321   :  { %5989 = vmatprep.subr.bf16.mxu0 %v8576_v61  ;;  %6013 = vmatprep.subr.bf16.mxu1 %v8576_v61  ;;  %6604 = vpow2.f32 %v2375_v51 }
 0x322   :  { %6003 = vmatprep.mubr.msk.bf16.mxu0 %vm6848_vm0, %v8576_v61  ;;  %6606 = vpow2.f32 %v2285_v11  ;;  %v8650_v11 = vld [vmem:[#allocation22_spill] sm:$0xff] }
 0x323   :  { %v7833_v39 = vpop.permute.xlu1 %2918 }
 0x324   :  { %5990 = vmatpush3.bf16.msra.mxu0 %v8638_v20  ;;  %6014 = vmatpush3.bf16.msra.mxu1 %v8639_v62  ;;  %v2283_v20 = vmul.f32 1.442695, %v2281_v33  ;;  %v8646_v62 = vld [vmem:[#allocation20_spill] sm:$0xff] }
 0x325   :  { %5991 = vmatprep.subr.bf16.mxu0 %v8576_v61  ;;  %6015 = vmatprep.subr.bf16.mxu1 %v8576_v61  ;;  %v7837_v51 = vpop.eup %6602 }
 0x326   :  { %6608 = vpow2.f32 %v2283_v20 }
 0x327   :  { %v7847_v33 = vpop.permute.xlu1 %2852 }
 0x328   :  { %5992 = vmatpush3.bf16.msra.mxu0 %v8640_v13  ;;  %6016 = vmatpush3.bf16.msra.mxu1 %v8641_v37  ;;  %v8648_v13 = vld [vmem:[#allocation19_spill] sm:$0xff]  ;;  %v8649_v37 = vld [vmem:[#allocation66_spill] sm:$0xff] }
 0x329   :  { %2719 = vmax.xlane.f32.xlu0 %v7813_v59  ;;  %5993 = vmatprep.subr.bf16.mxu0 %v8576_v61 }
 0x32a   :  { %3282 = vrot.lane.b32.xlu1 %v8643_v41, %s6844_s3  ;;  %6017 = vmatprep.subr.bf16.mxu1 %v8576_v61 }
 0x32b   :  { %v7839_v22 = vpop.eup %6604 }
 0x32c   :  { %5994 = vmatpush3.bf16.msra.mxu0 %v8644_v27  ;;  %6018 = vmatpush3.bf16.msra.mxu1 %v8645_v35  ;;  %v2383_v58 = vpack.c.bf16 %v7837_v51, %v7839_v22  ;;  %v8651_v27 = vld [vmem:[#allocation67_spill] sm:$0xff]  ;;  %v7853_v35 = vpop.eup %6606 }
 0x32d   :  { %5995 = vmatprep.subr.bf16.mxu0 %v8576_v61  ;;  %6019 = vmatprep.subr.bf16.mxu1 %v8576_v61 }
 0x330   :  { %5996 = vmatpush3.bf16.msra.mxu0 %v8646_v62  ;;  %6020 = vmatpush3.bf16.msra.mxu1 %v8647_v45  ;;  %v7857_v20 = vpop.eup %6608  ;;  %v8652_v62 = vld [vmem:[#allocation21_spill] sm:$0xff]  ;;  %v8653_v45 = vld [vmem:[#allocation71_spill] sm:$0xff] }
 0x331   :  { %5997 = vmatprep.subr.bf16.mxu0 %v8576_v61  ;;  %6021 = vmatprep.subr.bf16.mxu1 %v8576_v61 }
 0x334   :  { %5998 = vmatpush3.bf16.msra.mxu0 %v8648_v13  ;;  %6022 = vmatpush3.bf16.msra.mxu1 %v8649_v37  ;;  %v7861_v13 = vpop.permute.xlu1 %2854  ;;  %v2291_v37 = vpack.c.bf16 %v7853_v35, %v7857_v20 }
 0x335   :  { %5999 = vmatprep.subr.bf16.mxu0 %v8576_v61  ;;  %6047 = vmatprep.subr.bf16.mxu1 %v8576_v61 }
 0x337   :  { %6024 = vmatmul.mubr.bf16.vlgmr.msra.gmra.mrb[92].mxu1 %v2383_v58  ;;  %v8654_v58 = vld [vmem:[#allocation44_spill] sm:$0xff] }
 0x338   :  { %6000 = vmatpush3.bf16.msra.mxu0 %v8650_v11  ;;  %6048 = vmatpush3.bf16.msra.mxu1 %v8651_v27  ;;  %v2594_v11 = vsub.f32 %v7622_v6, %v7700_v56  ;;  %v8655_v27 = vld [vmem:[#allocation29_spill] sm:$0xff]  ;;  %v8659_v56 = vld [vmem:[#allocation27_spill] sm:$0xff] }
 0x339   :  { %6001 = vmatprep.subr.bf16.mxu0 %v8576_v61  ;;  %6049 = vmatprep.subr.bf16.mxu1 %v8576_v61 }
 0x33a   :  { %6063 = vmatprep.mubr.msk.bf16.mxu1 %vm6848_vm0, %v8576_v61  ;;  %v2597_v6 = vmul.f32 1.442695, %v2594_v11 }
 0x33c   :  { %6002 = vmatpush3.bf16.msra.mxu0 %v8652_v62  ;;  %6050 = vmatpush3.bf16.msra.mxu1 %v8653_v45  ;;  %v8656_v62 = vld [vmem:[#allocation70_spill] sm:$0xff]  ;;  %v8657_v45 = vld [vmem:[#allocation59_spill] sm:$0xff]  ;;  %6610 = vpow2.f32 %v2597_v6 }
 0x33d   :  { %6027 = vmatprep.subr.bf16.mxu0 %v8576_v61  ;;  %6051 = vmatprep.subr.bf16.mxu1 %v8576_v61  ;;  %v3242_v34 = vadd.f32 %v8657_v45, %v7667_v54  ;;  %v2595_v54 = vmul.f32 1.442695, %v2593_v28  ;;  %v8664_v28 = vld [vmem:[#allocation72_spill] sm:$0xff] }
 0x33f   :  { %3076 = vrot.lane.b32.xlu0 %v8654_v58, %s6844_s3  ;;  %6004 = vmatmul.mubr.bf16.vlgmr.msra.gmra.mrb[60].mxu0 %v2291_v37  ;;  %v7881_v37 = vpop.permute.xlu1 %3454  ;;  %vm3244_vm8 = vcmp.gt.f32.partialorder %v3242_v34, 0.0  ;;  %6612 = vpow2.f32 %v2595_v54  ;;  %v8669_v54 = vld [vmem:[#allocation75_spill] sm:$0xff] }
 0x340   :  { %6028 = vmatpush3.bf16.msra.mxu0 %v8655_v27  ;;  %6052 = vmatpush3.bf16.msra.mxu1 %v8656_v62  ;;  %v8660_v27 = vld [vmem:[#allocation68_spill] sm:$0xff]  ;;  %v3246_v62 = vmul.f32 0.2, %v3242_v34 }
 0x341   :  { %6029 = vmatprep.subr.bf16.mxu0 %v8576_v61  ;;  %6053 = vmatprep.subr.bf16.mxu1 %v8576_v61 }
 0x342   :  { %6043 = vmatprep.mubr.msk.bf16.mxu0 %vm6848_vm0, %v8576_v61  ;;  %v3248_v11 = vsel %vm3244_vm8, %v3242_v34, %v3246_v62  ;;  %v8665_v34 = vld [vmem:[#allocation37_spill] sm:$0xff]  ;;  %v8668_v62 = vld [vmem:[#allocation35_spill] sm:$0xff] }
 0x343   :  { %v2500_v57 = vpop.xlane.xlu0 %2499  ;;  %v2498_v42 = vpop.xlane.xlu1 %2497  ;;  %v7896_v6 = vadd.f32 %v3248_v11, %v7635_v53  ;;  %v8671_v11 = vld [vmem:[#allocation64_spill] sm:$0xff] }
 0x344   :  { %6030 = vmatpush3.bf16.msra.mxu0 %v8659_v56  ;;  %6054 = vmatpush3.bf16.msra.mxu1 %v8660_v27  ;;  %v2502_v19 = vsub.f32 %v7624_v1, %v2500_v57  ;;  %v2501_v56 = vsub.f32 %v7578_v24, %v2498_v42  ;;  %v8667_v24 = vld [vmem:[#allocation79_spill] sm:$0xff] }
 0x345   :  { %6031 = vmatprep.subr.bf16.mxu0 %v8576_v61  ;;  %6055 = vmatprep.subr.bf16.mxu1 %v8576_v61  ;;  %v3241_v57 = vadd.f32 %v8657_v45, %v8667_v24  ;;  %v8670_v45 = vld [vmem:[#allocation41_spill] sm:$0xff] }
 0x346   :  { %v2505_v27 = vmul.f32 1.442695, %v2502_v19  ;;  %v2503_v1 = vmul.f32 1.442695, %v2501_v56 }
 0x347   :  { %v3245_v19 = vmul.f32 0.2, %v3241_v57  ;;  %vm3243_vm9 = vcmp.gt.f32.partialorder %v3241_v57, 0.0 }
 0x348   :  { %6032 = vmatpush3.bf16.msra.mxu0 %v8661_v2  ;;  %6056 = vmatpush3.bf16.msra.mxu1 %v8662_v16  ;;  %6614 = vpow2.f32 %v2505_v27  ;;  %v8666_v16 = vld [vmem:[#allocation76_spill] sm:$0xff] }
 0x349   :  { %6033 = vmatprep.subr.bf16.mxu0 %v8576_v61  ;;  %6057 = vmatprep.subr.bf16.mxu1 %v8576_v61  ;;  %6616 = vpow2.f32 %v2503_v1  ;;  %v3247_v56 = vsel %vm3243_vm9, %v3241_v57, %v3245_v19  ;;  %v8672_v1 = vld [vmem:[#allocation39_spill] sm:$0xff]  ;;  %v8673_v57 = vld [vmem:[#allocation34_spill] sm:$0xff]  ;;  %v2815_v19 = vsub.f32 %v7595_v43, %v7794_v5 }
 0x34c   :  { %6034 = vmatpush3.bf16.msra.mxu0 %v8663_v47  ;;  %6058 = vmatpush3.bf16.msra.mxu1 %v8664_v28  ;;  %v7907_v47 = vpop.eup %6610 }
 0x34d   :  { %6035 = vmatprep.subr.bf16.mxu0 %v8576_v61  ;;  %6059 = vmatprep.subr.bf16.mxu1 %v8576_v61  ;;  %v7909_v42 = vpop.eup %6612 }
 0x34e   :  { %3253 = vmax.xlane.f32.xlu1 %v7896_v6  ;;  %v2603_v2 = vpack.c.bf16 %v7907_v47, %v7909_v42 }
 0x350   :  { %6036 = vmatpush3.bf16.msra.mxu0 %v8665_v34  ;;  %6060 = vmatpush3.bf16.msra.mxu1 %v8666_v16  ;;  %v7930_v34 = vadd.f32 %v3247_v56, %v7588_v63  ;;  %v3063_v16 = vpop.permute.xlu1 %3062  ;;  %v2929_v56 = vadd.f32 %v8624_v46, %v7833_v39 }
 0x351   :  { %6037 = vmatprep.subr.bf16.mxu0 %v8576_v61  ;;  %6061 = vmatprep.subr.bf16.mxu1 %v8576_v61 }
 0x352   :  { %v7921_v27 = vpop.eup %6614  ;;  %vm2931_vm10 = vcmp.gt.f32.partialorder %v2929_v56, 0.0 }
 0x353   :  { %v7925_v28 = vpop.eup %6616 }
 0x354   :  { %6038 = vmatpush3.bf16.msra.mxu0 %v8668_v62  ;;  %6062 = vmatpush3.bf16.msra.mxu1 %v8669_v54  ;;  %v2511_v24 = vpack.c.bf16 %v7921_v27, %v7925_v28  ;;  %v8674_v62 = vld [vmem:[#allocation23_spill] sm:$0xff] }
 0x355   :  { %6039 = vmatprep.subr.bf16.mxu0 %v8576_v61  ;;  %6087 = vmatprep.subr.bf16.mxu1 %v8576_v61 }
 0x357   :  { %6064 = vmatmul.mubr.bf16.vlgmr.msra.gmra.mrb[96].mxu1 %v2603_v2  ;;  %v8675_v2 = vld [vmem:[#allocation38_spill] sm:$0xff] }
 0x358   :  { %6040 = vmatpush3.bf16.msra.mxu0 %v8670_v45  ;;  %6088 = vmatpush3.bf16.msra.mxu1 %v8671_v11  ;;  %v8681_v11 = vmov 15  }
 0x359   :  { %6041 = vmatprep.subr.bf16.mxu0 %v8576_v61  ;;  %6089 = vmatprep.subr.bf16.mxu1 %v8576_v61 }
 0x35a   :  { %6103 = vmatprep.mubr.msk.bf16.mxu1 %vm6848_vm0, %v8576_v61 }
 0x35c   :  { %6042 = vmatpush3.bf16.msra.mxu0 %v8672_v1  ;;  %6090 = vmatpush3.bf16.msra.mxu1 %v7733_v10  ;;  %v2816_v10 = vsub.f32 %v7639_v29, %v7718_v18  ;;  %v3462_v1 = vadd.f32 %v8627_v38, %v7881_v37 }
 0x35d   :  { %6067 = vmatprep.subr.bf16.mxu0 %v8576_v61  ;;  %6091 = vmatprep.subr.bf16.mxu1 %v8576_v61 }
 0x35e   :  { %3251 = vmax.xlane.f32.xlu0 %v7930_v34  ;;  %v2819_v29 = vmul.f32 1.442695, %v2816_v10  ;;  %v3466_v39 = vmul.f32 0.2, %v3462_v1  ;;  %vm3464_vm12 = vcmp.gt.f32.partialorder %v3462_v1, 0.0 }
 0x35f   :  { %6044 = vmatmul.mubr.bf16.vlgmr.msra.gmra.mrb[64].mxu0 %v2511_v24  ;;  %3286 = vrot.lane.b32.xlu1 %v8673_v57, %s6844_s3 }
 0x360   :  { %6068 = vmatpush3.bf16.msra.mxu0 %v8674_v62  ;;  %6092 = vmatpush3.bf16.msra.mxu1 %v7808_v14  ;;  %v2817_v14 = vmul.f32 1.442695, %v2815_v19  ;;  %6618 = vpow2.f32 %v2819_v29  ;;  %v3468_v19 = vsel %vm3464_vm12, %v3462_v1, %v3466_v39 }
 0x361   :  { %v7943_v54 = vpop.xlane.xlu1 %3031  ;;  %6069 = vmatprep.subr.bf16.mxu0 %v8576_v61  ;;  %6093 = vmatprep.subr.bf16.mxu1 %v8576_v61  ;;  %v8021_v29 = vadd.f32 %v3468_v19, %v7635_v53 }
 0x362   :  { %6083 = vmatprep.mubr.msk.bf16.mxu0 %vm6848_vm0, %v8576_v61  ;;  %6620 = vpow2.f32 %v2817_v14 }
 0x363   :  { %3290 = vrot.lane.b32.xlu1 %v8675_v2, %s6844_s3 }
 0x364   :  { %6070 = vmatpush3.bf16.msra.mxu0 %v7232_v40  ;;  %6094 = vmatpush3.bf16.msra.mxu1 %v7825_v9  ;;  %v8676_v40 = vld [vmem:[#allocation36_spill] sm:$0xff] }
 0x365   :  { %v3067_v18 = vpop.permute.xlu1 %3066  ;;  %6071 = vmatprep.subr.bf16.mxu0 %v8576_v61  ;;  %6095 = vmatprep.subr.bf16.mxu1 %v8576_v61  ;;  %v8678_v9 = vld [vmem:[#allocation28_spill] sm:$0xff] }
 0x367   :  { %3362 = vperm.xlu1 %6342, %v7337_v49  }
 0x368   :  { %6072 = vmatpush3.bf16.msra.mxu0 %v7251_v55  ;;  %6096 = vmatpush3.bf16.msra.mxu1 %v7747_v52  ;;  %v8677_v55 = vld [vmem:[#allocation62_spill] sm:$0xff] }
 0x369   :  { %v3069_v43 = vpop.permute.xlu1 %3068  ;;  %6073 = vmatprep.subr.bf16.mxu0 %v8576_v61  ;;  %6097 = vmatprep.subr.bf16.mxu1 %v8576_v61 }
 0x36a   :  { %v7975_v52 = vpop.eup %6618 }
 0x36b   :  { %3292 = vrot.lane.b32.xlu1 %v8676_v40, %s6844_s3 }
 0x36c   :  { %6074 = vmatpush3.bf16.msra.mxu0 %v7247_v50  ;;  %6098 = vmatpush3.bf16.msra.mxu1 %v7847_v33  ;;  %v2857_v50 = vpop.permute.xlu0 %2856  ;;  %v7980_v33 = vpop.eup %6620 }
 0x36d   :  { %v3139_v5 = vpop.permute.xlu1 %3138  ;;  %6075 = vmatprep.subr.bf16.mxu0 %v8576_v61  ;;  %6099 = vmatprep.subr.bf16.mxu1 %v8576_v61 }
 0x36e   :  { %v7969_v49 = vadd.f32 %v8677_v55, %v3139_v5  ;;  %v8682_v5 = vld [vmem:[#allocation47_spill] sm:$0xff] }
 0x370   :  { %6076 = vmatpush3.bf16.msra.mxu0 %v7263_v8  ;;  %6100 = vmatpush3.bf16.msra.mxu1 %v7861_v13  ;;  %v2825_v8 = vpack.c.bf16 %v7975_v52, %v7980_v33  ;;  %v8679_v13 = vld [vmem:[#allocation32_spill] sm:$0xff]  ;;  %vm3151_vm14 = vcmp.gt.f32.partialorder %v7969_v49, 0.0 }
 0x371   :  { %6077 = vmatprep.subr.bf16.mxu0 %v8576_v61  ;;  %6101 = vmatprep.subr.bf16.mxu1 %v8576_v61  ;;  %v3073_v24 = vpop.permute.xlu1 %3072 }
 0x374   :  { %3284 = vrot.lane.b32.xlu0 %v8678_v9, %s6844_s3  ;;  %6078 = vmatpush3.bf16.msra.mxu0 %v7259_v3 }
 0x375   :  { %6102 = vmatpush3.bf16.msra.mxu1 %v2857_v50  ;;  %6079 = vmatprep.subr.bf16.mxu0 %v8576_v61  ;;  %v3075_v38 = vpop.permute.xlu1 %3074  ;;  %v3035_v50 = vsub.f32 %v7664_v48, %v7943_v54 }
 0x376   :  { %6127 = vmatprep.subr.bf16.mxu1 %v8576_v61 }
 0x378   :  { %6104 = vmatmul.mubr.bf16.vlgmr.msra.gmra.mrb[100].mxu1 %v2825_v8  ;;  %3288 = vrot.lane.b32.xlu0 %v8679_v13, %s6844_s3  ;;  %v3034_v45 = vpop.xlane.xlu0 %3033 }
 0x379   :  { %6080 = vmatpush3.bf16.msra.mxu0 %v7277_v23  ;;  %6128 = vmatpush3.bf16.msra.mxu1 %v3063_v16  ;;  %v8680_v23 = vld [vmem:[#allocation42_spill] sm:$0xff]  ;;  %v3465_v16 = vmul.f32 0.2, %v7771_v30 }
 0x37a   :  { %6081 = vmatprep.subr.bf16.mxu0 %v8576_v61  ;;  %6129 = vmatprep.subr.bf16.mxu1 %v8576_v61 }
 0x37b   :  { %6143 = vmatprep.mubr.msk.bf16.mxu1 %vm6848_vm0, %v8576_v61  ;;  %v3467_v10 = vsel %vm3463_vm11, %v7771_v30, %v3465_v16 }
 0x37c   :  { %3358 = vperm.xlu0 %6341, %v7333_v44   ;;  %v3065_v3 = vpop.permute.xlu0 %3064  ;;  %v2933_v44 = vmul.f32 0.2, %v2929_v56  ;;  %v8016_v37 = vadd.f32 %v3467_v10, %v7588_v63  ;;  %v8687_v10 = vld [vmem:[#allocation51_spill] sm:$0xff] }
 0x37d   :  { %6082 = vmatpush3.bf16.msra.mxu0 %v7273_v21  ;;  %6130 = vmatpush3.bf16.msra.mxu1 %v3065_v3  ;;  %v8683_v3 = vld [vmem:[#allocation50_spill] sm:$0xff] }
 0x37e   :  { %6131 = vmatprep.subr.bf16.mxu1 %v8576_v61  ;;  %6107 = vmatprep.subr.bf16.mxu0 %v8576_v61  ;;  %v2935_v62 = vsel %vm2931_vm10, %v2929_v56, %v2933_v44  ;;  %v8684_v56 = vld [vmem:[#allocation53_spill] sm:$0xff] }
 0x37f   :  { %v8010_v46 = vadd.f32 %v2935_v62, %v7588_v63 }
 0x380   :  { %3294 = vrot.lane.b32.xlu0 %v8680_v23, %s6844_s3  ;;  %v3071_v21 = vpop.permute.xlu0 %3070 }
 0x381   :  { %6132 = vmatpush3.bf16.msra.mxu1 %v3067_v18  ;;  %6343 = vset.pattern.permute.xlu0 %v8681_v11  ;;  %v2934_v18 = vmul.f32 0.2, %v7758_v31  ;;  %v3037_v11 = vmul.f32 1.442695, %v3035_v50 }
 0x382   :  { %6133 = vmatprep.subr.bf16.mxu1 %v8576_v61 }
 0x383   :  { %v2936_v30 = vsel %vm2932_vm13, %v7758_v31, %v2934_v18  ;;  %vm4829_vm13 = vcmask 261120  }
 0x384   :  { %v8028_v14 = vadd.f32 %v2936_v30, %v7635_v53  ;;  %v8689_v30 = vld [vmem:[#allocation56_spill] sm:$0xff] }
 0x385   :  { %6134 = vmatpush3.bf16.msra.mxu1 %v3069_v43  ;;  %v3036_v43 = vsub.f32 %v7680_v4, %v3034_v45  ;;  %v8685_v45 = vld [vmem:[#allocation40_spill] sm:$0xff] }
 0x386   :  { %6135 = vmatprep.subr.bf16.mxu1 %v8576_v61 }
 0x387   :  { %v3039_v8 = vmul.f32 1.442695, %v3036_v43 }
 0x388   :  { %v3143_v44 = vpop.permute.xlu0 %3142 }
 0x389   :  { %6136 = vmatpush3.bf16.msra.mxu1 %v3071_v21  ;;  %6622 = vpow2.f32 %v3039_v8  ;;  %v3153_v8 = vmul.f32 0.2, %v7969_v49 }
 0x38a   :  { %6137 = vmatprep.subr.bf16.mxu1 %v8576_v61  ;;  %6624 = vpow2.f32 %v3037_v11 }
 0x38d   :  { %6138 = vmatpush3.bf16.msra.mxu1 %v3073_v24  ;;  %v8686_v24 = vld [vmem:[#allocation46_spill] sm:$0xff] }
 0x38e   :  { %6139 = vmatprep.subr.bf16.mxu1 %v8576_v61 }
 0x38f   :  { %2939 = vmax.xlane.f32.xlu1 %v8010_v46 }
 0x391   :  { %6140 = vmatpush3.bf16.msra.mxu1 %v3075_v38  ;;  %v8688_v38 = vld [vmem:[#allocation54_spill] sm:$0xff] }
 0x392   :  { %6141 = vmatprep.subr.bf16.mxu1 %v8576_v61 }
 0x393   :  { %3471 = vmax.xlane.f32.xlu1 %v8016_v37  ;;  %v8044_v54 = vpop.eup %6622 }
 0x394   :  { %v8048_v39 = vpop.eup %6624 }
 0x397   :  { %3473 = vmax.xlane.f32.xlu1 %v8021_v29 }
 0x39f   :  { %2941 = vmax.xlane.f32.xlu0 %v8028_v14 }
 0x3a6   :  { %v2722_v31 = vpop.xlane.xlu1 %2721 }
 0x3a7   :  { %v2724_v4 = vsub.f32 %v7774_v36, %v2722_v31  ;;  %v3045_v36 = vpack.c.bf16 %v8044_v54, %v8048_v39 }
 0x3a8   :  { %3502 = vrot.lane.b32.xlu1 %v8682_v5, %s6844_s3 }
 0x3a9   :  { %v2727_v21 = vmul.f32 1.442695, %v2724_v4 }
 0x3ab   :  { %6626 = vpow2.f32 %v2727_v21 }
 0x3ac   :  { %3508 = vrot.lane.b32.xlu1 %v8683_v3, %s6844_s3 }
 0x3b0   :  { %3512 = vrot.lane.b32.xlu1 %v8684_v56, %s6844_s3 }
 0x3b5   :  { %3296 = vrot.lane.b32.xlu0 %v8685_v45, %s6844_s3  ;;  %v8060_v19 = vpop.eup %6626 }
 0x3b6   :  { %v2720_v1 = vpop.xlane.xlu0 %2719 }
 0x3b7   :  { %v2723_v48 = vsub.f32 %v7813_v59, %v2720_v1  ;;  %v3283_v59 = vpop.permute.xlu1 %3282 }
 0x3b9   :  { %v2725_v16 = vmul.f32 1.442695, %v2723_v48  ;;  %3504 = vrot.lane.b32.xlu0 %v8686_v24, %s6844_s3 }
 0x3ba   :  { %v3077_v62 = vpop.permute.xlu0 %3076 }
 0x3bb   :  { %6628 = vpow2.f32 %v2725_v16  ;;  %6142 = vmatpush3.bf16.msra.mxu1 %v3077_v62 }
 0x3bc   :  { %6167 = vmatprep.subr.bf16.mxu1 %v8576_v61 }
 0x3bd   :  { %3506 = vrot.lane.b32.xlu0 %v8687_v10, %s6844_s3 }
 0x3be   :  { %6144 = vmatmul.mubr.bf16.vlgmr.msra.gmra.mrb[104].mxu1 %v3045_v36 }
 0x3bf   :  { %6168 = vmatpush3.bf16.msra.mxu1 %v3283_v59  ;;  %6183 = vmatprep.mubr.msk.bf16.mxu1 %vm6848_vm0, %v8576_v61 }
 0x3c0   :  { %6169 = vmatprep.subr.bf16.mxu1 %v8576_v61 }
 0x3c1   :  { %3510 = vrot.lane.b32.xlu0 %v8688_v38, %s6844_s3 }
 0x3c5   :  { %v8062_v18 = vpop.eup %6628  ;;  %3514 = vrot.lane.b32.xlu0 %v8689_v30, %s6844_s3 }
 0x3c6   :  { %v2733_v43 = vpack.c.bf16 %v8060_v19, %v8062_v18 }
 0x3c8   :  { %6084 = vmatmul.mubr.bf16.vlgmr.msra.gmra.mrb[68].mxu0 %v2733_v43 }
 0x3c9   :  { %6108 = vmatpush3.bf16.msra.mxu0 %v7342_v12  ;;  %6123 = vmatprep.mubr.msk.bf16.mxu0 %vm6848_vm0, %v8576_v61  ;;  %v3155_v12 = vsel %vm3151_vm14, %v7969_v49, %v3153_v8  ;;  %v3150_v49 = vadd.f32 %v8677_v55, %v3143_v44 }
 0x3ca   :  { %v8071_v50 = vpop.f32.mrb[84].mxu1  ;;  %6109 = vmatprep.subr.bf16.mxu0 %v8576_v61  ;;  %v8086_v1 = vadd.f32 %v3155_v12, %v7588_v63 }
 0x3cb   :  { %v5945_v11 = vpop.f32.mrb[85].mxu1  ;;  %vm3152_vm15 = vcmp.gt.f32.partialorder %v3150_v49, 0.0 }
 0x3cc   :  { %v8076_v31 = vpop.f32.mrb[86].mxu1 }
 0x3cd   :  { %6110 = vmatpush3.bf16.msra.mxu0 %v7339_v0  ;;  %v5946_v4 = vpop.f32.mrb[87].mxu1 }
 0x3ce   :  { %6111 = vmatprep.subr.bf16.mxu0 %v8576_v61 }
 0x3d1   :  { %6112 = vmatpush3.bf16.msra.mxu0 %v7351_v32  ;;  %v3154_v32 = vmul.f32 0.2, %v3150_v49 }
 0x3d2   :  { %v8082_v21 = vpop.f32.mrb[52].mxu0  ;;  %6113 = vmatprep.subr.bf16.mxu0 %v8576_v61 }
 0x3d3   :  { %v5925_v48 = vpop.f32.mrb[53].mxu0  ;;  %v3156_v63 = vsel %vm3152_vm15, %v3150_v49, %v3154_v32  ;;  %v8691_v32 = vld [vmem:[#allocation55_spill] sm:$0xff] }
 0x3d4   :  { %3159 = vmax.xlane.f32.xlu1 %v8086_v1  ;;  %v8089_v16 = vpop.f32.mrb[54].mxu0 }
 0x3d5   :  { %6114 = vmatpush3.bf16.msra.mxu0 %v7349_v7  ;;  %v5926_v0 = vpop.f32.mrb[55].mxu0  ;;  %v8101_v7 = vadd.f32 %v3156_v63, %v7635_v53 }
 0x3d6   :  { %6115 = vmatprep.subr.bf16.mxu0 %v8576_v61  ;;  %v8690_v0 = vld [vmem:[#allocation63_spill] sm:$0xff] }
 0x3d9   :  { %6116 = vmatpush3.bf16.msra.mxu0 %v7363_v25 }
 0x3da   :  { %6117 = vmatprep.subr.bf16.mxu0 %v8576_v61 }
 0x3db   :  { %v8103_v62 = vpop.xlane.xlu1 %3253 }
 0x3dd   :  { %6118 = vmatpush3.bf16.msra.mxu0 %v7359_v17 }
 0x3de   :  { %6119 = vmatprep.subr.bf16.mxu0 %v8576_v61 }
 0x3df   :  { %v3287_v25 = vpop.permute.xlu1 %3286 }
 0x3e1   :  { %6120 = vmatpush3.bf16.msra.mxu0 %v7375_v26 }
 0x3e2   :  { %6121 = vmatprep.subr.bf16.mxu0 %v8576_v61 }
 0x3e3   :  { %v3291_v43 = vpop.permute.xlu1 %3290 }
 0x3e4   :  { %3161 = vmax.xlane.f32.xlu0 %v8101_v7 }
 0x3e5   :  { %6122 = vmatpush3.bf16.msra.mxu0 %v8654_v58 }
 0x3e6   :  { %6147 = vmatprep.subr.bf16.mxu0 %v8576_v61 }
 0x3e7   :  { %v3363_v12 = vpop.permute.xlu1 %3362 }
 0x3e8   :  { %v3370_v49 = vadd.f32 %v8690_v0, %v3363_v12 }
 0x3ea   :  { %v8108_v17 = vpop.f32.mrb[88].mxu1  ;;  %vm3372_vm2 = vcmp.gt.f32.partialorder %v3370_v49, 0.0 }
 0x3eb   :  { %v3252_v55 = vpop.xlane.xlu0 %3251  ;;  %v5985_v44 = vpop.f32.mrb[89].mxu1 }
 0x3ec   :  { %v8110_v36 = vpop.f32.mrb[90].mxu1 }
 0x3ed   :  { %v5986_v26 = vpop.f32.mrb[91].mxu1 }
 0x3ef   :  { %v3285_v59 = vpop.permute.xlu0 %3284 }
 0x3f0   :  { %6170 = vmatpush3.bf16.msra.mxu1 %v3285_v59  ;;  %v3293_v59 = vpop.permute.xlu1 %3292 }
 0x3f1   :  { %6171 = vmatprep.subr.bf16.mxu1 %v8576_v61 }
 0x3f2   :  { %v8113_v8 = vpop.f32.mrb[56].mxu0 }
 0x3f3   :  { %v5965_v11 = vpop.f32.mrb[57].mxu0  ;;  %v3289_v48 = vpop.permute.xlu0 %3288 }
 0x3f4   :  { %v8115_v4 = vpop.f32.mrb[58].mxu0  ;;  %6172 = vmatpush3.bf16.msra.mxu1 %v3287_v25  ;;  %v3374_v25 = vmul.f32 0.2, %v3370_v49 }
 0x3f5   :  { %v5966_v58 = vpop.f32.mrb[59].mxu0  ;;  %6173 = vmatprep.subr.bf16.mxu1 %v8576_v61 }
 0x3f6   :  { %v6719_v58 = vld [vmem:[%s8464_s2 + $0x8] sm:$0xff] }
 0x3f8   :  { %6174 = vmatpush3.bf16.msra.mxu1 %v3289_v48  ;;  %v3376_v48 = vsel %vm3372_vm2, %v3370_v49, %v3374_v25 }
 0x3f9   :  { %6175 = vmatprep.subr.bf16.mxu1 %v8576_v61 }
 0x3fa   :  { %3516 = vrot.lane.b32.xlu0 %v8691_v32, %s6844_s3 }
 0x3fb   :  { %v3359_v63 = vpop.permute.xlu0 %3358 }
 0x3fc   :  { %v3369_v44 = vadd.f32 %v8690_v0, %v3359_v63  ;;  %6176 = vmatpush3.bf16.msra.mxu1 %v3291_v43  ;;  %v8132_v43 = vadd.f32 %v3376_v48, %v7635_v53 }
 0x3fd   :  { %6177 = vmatprep.subr.bf16.mxu1 %v8576_v61 }
 0x3fe   :  { %vm3371_vm1 = vcmp.gt.f32.partialorder %v3369_v44, 0.0  ;;  %v3373_v26 = vmul.f32 0.2, %v3369_v44 }
 0x3ff   :  { %v3295_v0 = vpop.permute.xlu0 %3294 }
 0x400   :  { %6178 = vmatpush3.bf16.msra.mxu1 %v3293_v59  ;;  %v3375_v11 = vsel %vm3371_vm1, %v3369_v44, %v3373_v26 }
 0x401   :  { %v8127_v12 = vadd.f32 %v6719_v58, %v3375_v11  ;;  %6179 = vmatprep.subr.bf16.mxu1 %v8576_v61  ;;  %v3256_v58 = vsub.f32 %v7896_v6, %v8103_v62 }
 0x403   :  { %3379 = vmax.xlane.f32.xlu1 %v8127_v12 }
 0x404   :  { %6180 = vmatpush3.bf16.msra.mxu1 %v3295_v0 }
 0x405   :  { %6181 = vmatprep.subr.bf16.mxu1 %v8576_v61 }
 0x407   :  { %3381 = vmax.xlane.f32.xlu1 %v8132_v43 }
 0x40a   :  { %v8136_v63 = vpop.f32.mrb[92].mxu1 }
 0x40b   :  { %v6025_v44 = vpop.f32.mrb[93].mxu1  ;;  %2599 = vadd.xlane.f32.xlu1 %v7909_v42  ;;  %v3255_v42 = vsub.f32 %v7930_v34, %v3252_v55 }
 0x40c   :  { %v8139_v26 = vpop.f32.mrb[94].mxu1 }
 0x40d   :  { %v6026_v59 = vpop.f32.mrb[95].mxu1 }
 0x40f   :  { %2601 = vadd.xlane.f32.xlu1 %v7907_v47  ;;  %v3257_v47 = vmul.f32 1.442695, %v3255_v42 }
 0x411   :  { %6630 = vpow2.f32 %v3257_v47 }
 0x412   :  { %v8142_v49 = vpop.f32.mrb[60].mxu0 }
 0x413   :  { %2379 = vadd.xlane.f32.xlu1 %v7839_v22  ;;  %v6005_v53 = vpop.f32.mrb[61].mxu0  ;;  %v3259_v22 = vmul.f32 1.442695, %v3256_v58 }
 0x414   :  { %v8145_v25 = vpop.f32.mrb[62].mxu0 }
 0x415   :  { %v6006_v11 = vpop.f32.mrb[63].mxu0  ;;  %6632 = vpow2.f32 %v3259_v22 }
 0x417   :  { %2381 = vadd.xlane.f32.xlu1 %v7837_v51 }
 0x419   :  { %2507 = vadd.xlane.f32.xlu0 %v7925_v28 }
 0x41b   :  { %2509 = vadd.xlane.f32.xlu1 %v7921_v27  ;;  %v8167_v44 = vpop.eup %6630 }
 0x41c   :  { %v2940_v48 = vpop.xlane.xlu1 %2939 }
 0x41d   :  { %v2943_v51 = vsub.f32 %v8010_v46, %v2940_v48 }
 0x41f   :  { %2287 = vadd.xlane.f32.xlu1 %v7857_v20  ;;  %v2945_v6 = vmul.f32 1.442695, %v2943_v51  ;;  %v8170_v59 = vpop.eup %6632 }
 0x420   :  { %v8157_v28 = vpop.xlane.xlu1 %3471  ;;  %v3265_v53 = vpack.c.bf16 %v8170_v59, %v8167_v44 }
 0x421   :  { %6634 = vpow2.f32 %v2945_v6 }
 0x423   :  { %2289 = vadd.xlane.f32.xlu1 %v7853_v35 }
 0x424   :  { %v8165_v0 = vpop.xlane.xlu1 %3473 }
 0x427   :  { %3041 = vadd.xlane.f32.xlu1 %v8048_v39 }
 0x428   :  { %v3503_v11 = vpop.permute.xlu1 %3502 }
 0x42a   :  { %v8159_v27 = vpop.f32.mrb[96].mxu1 }
 0x42b   :  { %v6065_v34 = vpop.f32.mrb[97].mxu1  ;;  %3043 = vadd.xlane.f32.xlu1 %v8044_v54  ;;  %v8183_v47 = vpop.eup %6634 }
 0x42c   :  { %v2942_v20 = vpop.xlane.xlu0 %2941  ;;  %v8162_v62 = vpop.f32.mrb[98].mxu1 }
 0x42d   :  { %v2944_v55 = vsub.f32 %v8028_v14, %v2942_v20  ;;  %v6066_v35 = vpop.f32.mrb[99].mxu1  ;;  %v3509_v51 = vpop.permute.xlu1 %3508 }
 0x42f   :  { %v2947_v39 = vmul.f32 1.442695, %v2944_v55  ;;  %2821 = vadd.xlane.f32.xlu1 %v7980_v33 }
 0x430   :  { %v3297_v46 = vpop.permute.xlu0 %3296 }
 0x431   :  { %6636 = vpow2.f32 %v2947_v39  ;;  %6182 = vmatpush3.bf16.msra.mxu1 %v3297_v46 }
 0x432   :  { %v8172_v54 = vpop.f32.mrb[64].mxu0  ;;  %6207 = vmatprep.subr.bf16.mxu1 %v8576_v61 }
 0x433   :  { %2823 = vadd.xlane.f32.xlu1 %v7975_v52  ;;  %v6045_v14 = vpop.f32.mrb[65].mxu0 }
 0x434   :  { %v8178_v42 = vpop.f32.mrb[66].mxu0  ;;  %6184 = vmatmul.mubr.bf16.vlgmr.msra.gmra.mrb[108].mxu1 %v3265_v53  ;;  %v3505_v58 = vpop.permute.xlu0 %3504 }
 0x435   :  { %v6046_v33 = vpop.f32.mrb[67].mxu0  ;;  %6208 = vmatpush3.bf16.msra.mxu1 %v3503_v11  ;;  %6223 = vmatprep.mubr.msk.bf16.mxu1 %vm6848_vm0, %v8576_v61 }
 0x436   :  { %6209 = vmatprep.subr.bf16.mxu1 %v8576_v61 }
 0x438   :  { %v3507_v52 = vpop.permute.xlu0 %3506 }
 0x439   :  { %6210 = vmatpush3.bf16.msra.mxu1 %v3505_v58 }
 0x43a   :  { %6211 = vmatprep.subr.bf16.mxu1 %v8576_v61 }
 0x43b   :  { %v8186_v48 = vpop.eup %6636 }
 0x43c   :  { %v2953_v22 = vpack.c.bf16 %v8186_v48, %v8183_v47  ;;  %v3511_v34 = vpop.permute.xlu0 %3510 }
 0x43d   :  { %6212 = vmatpush3.bf16.msra.mxu1 %v3507_v52 }
 0x43e   :  { %6124 = vmatmul.mubr.bf16.vlgmr.msra.gmra.mrb[72].mxu0 %v2953_v22  ;;  %6213 = vmatprep.subr.bf16.mxu1 %v8576_v61 }
 0x43f   :  { %6148 = vmatpush3.bf16.msra.mxu0 %v8643_v41  ;;  %6163 = vmatprep.mubr.msk.bf16.mxu0 %vm6848_vm0, %v8576_v61  ;;  %v3513_v41 = vpop.permute.xlu1 %3512 }
 0x440   :  { %6149 = vmatprep.subr.bf16.mxu0 %v8576_v61  ;;  %v3515_v20 = vpop.permute.xlu0 %3514 }
 0x441   :  { %6214 = vmatpush3.bf16.msra.mxu1 %v3509_v51 }
 0x442   :  { %6215 = vmatprep.subr.bf16.mxu1 %v8576_v61 }
 0x443   :  { %6150 = vmatpush3.bf16.msra.mxu0 %v8678_v9 }
 0x444   :  { %6151 = vmatprep.subr.bf16.mxu0 %v8576_v61 }
 0x445   :  { %6216 = vmatpush3.bf16.msra.mxu1 %v3511_v34 }
 0x446   :  { %6217 = vmatprep.subr.bf16.mxu1 %v8576_v61 }
 0x447   :  { %6152 = vmatpush3.bf16.msra.mxu0 %v8673_v57  ;;  %v3476_v57 = vsub.f32 %v8021_v29, %v8165_v0 }
 0x448   :  { %6153 = vmatprep.subr.bf16.mxu0 %v8576_v61 }
 0x449   :  { %6218 = vmatpush3.bf16.msra.mxu1 %v3513_v41 }
 0x44a   :  { %6219 = vmatprep.subr.bf16.mxu1 %v8576_v61 }
 0x44b   :  { %v8202_v6 = vpop.f32.mrb[100].mxu1  ;;  %6154 = vmatpush3.bf16.msra.mxu0 %v8679_v13  ;;  %v3479_v13 = vmul.f32 1.442695, %v3476_v57 }
 0x44c   :  { %v6105_v9 = vpop.f32.mrb[101].mxu1  ;;  %6155 = vmatprep.subr.bf16.mxu0 %v8576_v61 }
 0x44d   :  { %v8206_v55 = vpop.f32.mrb[102].mxu1  ;;  %6220 = vmatpush3.bf16.msra.mxu1 %v3515_v20  ;;  %6638 = vpow2.f32 %v3479_v13  ;;  %v6370_v13 = vld [vmem:[#allocation9 + $0x100] ss:$8 sps:$4 sm:$0xff]  }
 0x44e   :  { %v6106_v35 = vpop.f32.mrb[103].mxu1  ;;  %6221 = vmatprep.subr.bf16.mxu1 %v8576_v61 }
 0x44f   :  { %6156 = vmatpush3.bf16.msra.mxu0 %v8675_v2  ;;  %v3475_v2 = vsub.f32 %v8016_v37, %v8157_v28 }
 0x450   :  { %6157 = vmatprep.subr.bf16.mxu0 %v8576_v61 }
 0x451   :  { %v3477_v39 = vmul.f32 1.442695, %v3475_v2 }
 0x453   :  { %6158 = vmatpush3.bf16.msra.mxu0 %v8676_v40  ;;  %6640 = vpow2.f32 %v3477_v39 }
 0x454   :  { %6159 = vmatprep.subr.bf16.mxu0 %v8576_v61 }
 0x457   :  { %6160 = vmatpush3.bf16.msra.mxu0 %v8680_v23 }
 0x458   :  { %6161 = vmatprep.subr.bf16.mxu0 %v8576_v61 }
 0x45b   :  { %6162 = vmatpush3.bf16.msra.mxu0 %v8685_v45  ;;  %v8223_v45 = vpop.eup %6638 }
 0x45c   :  { %6187 = vmatprep.subr.bf16.mxu0 %v8576_v61 }
 0x45d   :  { %v8225_v29 = vpop.eup %6640 }
 0x45e   :  { %v3485_v37 = vpack.c.bf16 %v8223_v45, %v8225_v29 }
 0x461   :  { %v3160_v40 = vpop.xlane.xlu1 %3159 }
 0x462   :  { %v3163_v46 = vsub.f32 %v8086_v1, %v3160_v40  ;;  %v6375_v40 = vld [vmem:[#allocation9 + $0x114] ss:$8 sps:$4 sm:$0xff]  }
 0x464   :  { %v3165_v23 = vmul.f32 1.442695, %v3163_v46 }
 0x466   :  { %6642 = vpow2.f32 %v3165_v23 }
 0x470   :  { %v8229_v28 = vpop.eup %6642 }
 0x471   :  { %v3162_v53 = vpop.xlane.xlu0 %3161 }
 0x472   :  { %v3164_v14 = vsub.f32 %v8101_v7, %v3162_v53 }
 0x474   :  { %v3167_v11 = vmul.f32 1.442695, %v3164_v14 }
 0x475   :  { %v3517_v33 = vpop.permute.xlu0 %3516 }
 0x476   :  { %6644 = vpow2.f32 %v3167_v11  ;;  %6222 = vmatpush3.bf16.msra.mxu1 %v3517_v33 }
 0x479   :  { %6224 = vmatmul.mubr.bf16.vlgmr.msra.gmra.mrb[112].mxu1 %v3485_v37  ;;  %v6378_v37 = vld [vmem:[#allocation9 + $0x124] ss:$8 sps:$4 sm:$0xff]  }
 0x480   :  { %v8231_v1 = vpop.eup %6644 }
 0x481   :  { %v3173_v7 = vpack.c.bf16 %v8231_v1, %v8229_v28 }
 0x483   :  { %6164 = vmatmul.mubr.bf16.vlgmr.msra.gmra.mrb[76].mxu0 %v3173_v7 }
 0x484   :  { %6188 = vmatpush3.bf16.msra.mxu0 %v8682_v5  ;;  %6203 = vmatprep.mubr.msk.bf16.mxu0 %vm6848_vm0, %v8576_v61 }
 0x485   :  { %6189 = vmatprep.subr.bf16.mxu0 %v8576_v61 }
 0x488   :  { %6190 = vmatpush3.bf16.msra.mxu0 %v8686_v24 }
 0x489   :  { %6191 = vmatprep.subr.bf16.mxu0 %v8576_v61 }
 0x48c   :  { %6192 = vmatpush3.bf16.msra.mxu0 %v8687_v10 }
 0x48d   :  { %6193 = vmatprep.subr.bf16.mxu0 %v8576_v61 }
 0x490   :  { %6194 = vmatpush3.bf16.msra.mxu0 %v8683_v3  ;;  %v3380_v0 = vpop.xlane.xlu1 %3379 }
 0x491   :  { %v3383_v58 = vsub.f32 %v8127_v12, %v3380_v0  ;;  %v8245_v52 = vpop.f32.mrb[104].mxu1  ;;  %6195 = vmatprep.subr.bf16.mxu0 %v8576_v61  ;;  %v6376_v0 = vld [vmem:[#allocation9 + $0x120] ss:$8 sps:$4 sm:$0xff]  }
 0x492   :  { %v6145_v5 = vpop.f32.mrb[105].mxu1 }
 0x493   :  { %v8248_v22 = vpop.f32.mrb[106].mxu1  ;;  %v3385_v51 = vmul.f32 1.442695, %v3383_v58  ;;  %v6381_v5 = vld [vmem:[#allocation9 + $0x134] ss:$8 sps:$4 sm:$0xff]  }
 0x494   :  { %6196 = vmatpush3.bf16.msra.mxu0 %v8688_v38  ;;  %v6146_v24 = vpop.f32.mrb[107].mxu1  ;;  %v3382_v34 = vpop.xlane.xlu1 %3381 }
 0x495   :  { %v3384_v10 = vsub.f32 %v8132_v43, %v3382_v34  ;;  %6197 = vmatprep.subr.bf16.mxu0 %v8576_v61  ;;  %6646 = vpow2.f32 %v3385_v51  ;;  %v6372_v43 = vld [vmem:[#allocation9 + $0x104] ss:$8 sps:$4 sm:$0xff]   ;;  %v6379_v34 = vld [vmem:[#allocation9 + $0x130] ss:$8 sps:$4 sm:$0xff]  }
 0x497   :  { %v3387_v3 = vmul.f32 1.442695, %v3384_v10 }
 0x498   :  { %6198 = vmatpush3.bf16.msra.mxu0 %v8684_v56  ;;  %v2600_v12 = vpop.xlane.xlu1 %2599 }
 0x499   :  { %6648 = vpow2.f32 %v3387_v3  ;;  %6199 = vmatprep.subr.bf16.mxu0 %v8576_v61  ;;  %v6384_v3 = vld [vmem:[#allocation9 + $0x144] ss:$8 sps:$4 sm:$0xff]  }
 0x49a   :  { %6650 = vrcp.f32 %v2600_v12 }
 0x49b   :  { %v8255_v41 = vpop.f32.mrb[68].mxu0 }
 0x49c   :  { %6200 = vmatpush3.bf16.msra.mxu0 %v8689_v30  ;;  %v2602_v38 = vpop.xlane.xlu1 %2601  ;;  %v6085_v20 = vpop.f32.mrb[69].mxu0 }
 0x49d   :  { %6652 = vrcp.f32 %v2602_v38  ;;  %v8258_v9 = vpop.f32.mrb[70].mxu0  ;;  %6201 = vmatprep.subr.bf16.mxu0 %v8576_v61 }
 0x49e   :  { %v6086_v35 = vpop.f32.mrb[71].mxu0 }
 0x49f   :  { %v8262_v57 = vpop.eup %6646 }
 0x4a0   :  { %6202 = vmatpush3.bf16.msra.mxu0 %v8691_v32  ;;  %v2380_v56 = vpop.xlane.xlu1 %2379  ;;  %v6373_v32 = vld [vmem:[#allocation9 + $0x110] ss:$8 sps:$4 sm:$0xff]  }
 0x4a1   :  { %4408 = vmatprep.subr.bf16.mxu0 %v6372_v43  ;;  %6654 = vrcp.f32 %v2380_v56  ;;  %v6382_v43 = vld [vmem:[#allocation9 + $0x140] ss:$8 sps:$4 sm:$0xff]  }
 0x4a3   :  { %v8264_v2 = vpop.eup %6648 }
 0x4a4   :  { %v2382_v30 = vpop.xlane.xlu1 %2381  ;;  %v3393_v39 = vpack.c.bf16 %v8264_v2, %v8262_v57  ;;  %v6651_v46 = vpop.eup %6650 }
 0x4a5   :  { %6656 = vrcp.f32 %v2382_v30  ;;  %v2687_v11 = vmul.f32 %v6651_v46, %v8159_v27  ;;  %v6387_v30 = vld [vmem:[#allocation9 + $0x154] ss:$8 sps:$4 sm:$0xff]  }
 0x4a6   :  { %v2508_v23 = vpop.xlane.xlu0 %2507  ;;  %6204 = vmatmul.mubr.bf16.vlgmr.msra.gmra.mrb[80].mxu0 %v3393_v39 }
 0x4a7   :  { %v6653_v53 = vpop.eup %6652  ;;  %6658 = vrcp.f32 %v2508_v23  ;;  %4409 = vmatpush1.bf16.msra.mxu0 %v6370_v13 }
 0x4a8   :  { %v2510_v14 = vpop.xlane.xlu1 %2509  ;;  %v2688_v33 = vmul.f32 %v6653_v53, %v8162_v62  ;;  %4410 = vmatprep.subr.bf16.mxu0 %v6375_v40  ;;  %v6390_v40 = vld [vmem:[#allocation9 + $0x164] ss:$8 sps:$4 sm:$0xff]  }
 0x4a9   :  { %6660 = vrcp.f32 %v2510_v14  ;;  %v6393_v14 = vld [vmem:[#allocation9 + $0x174] ss:$8 sps:$4 sm:$0xff]  }
 0x4aa   :  { %v2689_v7 = vpack.c.bf16 %v2688_v33, %v2687_v11  ;;  %v6391_v33 = vld [vmem:[#allocation9 + $0x170] ss:$8 sps:$4 sm:$0xff]  }
 0x4ab   :  { %4411 = vmatpush1.bf16.msra.mxu0 %v6373_v32  ;;  %v6655_v51 = vpop.eup %6654 }
 0x4ac   :  { %2691 = vrot.lane.b32.xlu0 %v2689_v7, %s6844_s3  ;;  %v2288_v58 = vpop.xlane.xlu1 %2287  ;;  %4412 = vmatprep.subr.bf16.mxu0 %v6378_v37  ;;  %v2467_v27 = vmul.f32 %v6655_v51, %v8136_v63  ;;  %v6396_v7 = vld [vmem:[#allocation9 + $0x184] ss:$8 sps:$4 sm:$0xff]   ;;  %v6399_v51 = vld [vmem:[#allocation9 + $0x194] ss:$8 sps:$4 sm:$0xff]  }
 0x4ad   :  { %6662 = vrcp.f32 %v2288_v58 }
 0x4af   :  { %v6657_v24 = vpop.eup %6656  ;;  %4413 = vmatpush1.bf16.msra.mxu0 %v6376_v0 }
 0x4b0   :  { %v2290_v10 = vpop.xlane.xlu1 %2289  ;;  %v2468_v62 = vmul.f32 %v6657_v24, %v8139_v26  ;;  %4414 = vmatprep.subr.bf16.mxu0 %v6381_v5  ;;  %v6385_v26 = vld [vmem:[#allocation9 + $0x150] ss:$8 sps:$4 sm:$0xff]   ;;  %v6394_v5 = vld [vmem:[#allocation9 + $0x180] ss:$8 sps:$4 sm:$0xff]  }
 0x4b1   :  { %v6659_v12 = vpop.eup %6658  ;;  %6664 = vrcp.f32 %v2290_v10  ;;  %v6402_v10 = vld [vmem:[#allocation9 + $0x1a4] ss:$8 sps:$4 sm:$0xff]  }
 0x4b2   :  { %v2469_v38 = vpack.c.bf16 %v2468_v62, %v2467_v27  ;;  %v2563_v35 = vmul.f32 %v6659_v12, %v8172_v54 }
 0x4b3   :  { %v6661_v20 = vpop.eup %6660  ;;  %4415 = vmatpush1.bf16.msra.mxu0 %v6379_v34  ;;  %v6397_v34 = vld [vmem:[#allocation9 + $0x190] ss:$8 sps:$4 sm:$0xff]  }
 0x4b4   :  { %v2564_v56 = vmul.f32 %v6661_v20, %v8178_v42  ;;  %2471 = vrot.lane.b32.xlu1 %v2469_v38, %s6844_s3  ;;  %v3042_v13 = vpop.xlane.xlu1 %3041  ;;  %4416 = vmatprep.subr.bf16.mxu0 %v6384_v3  ;;  %v6388_v42 = vld [vmem:[#allocation9 + $0x160] ss:$8 sps:$4 sm:$0xff]   ;;  %v6403_v20 = vld [vmem:[#allocation9 + $0x1b0] ss:$8 sps:$4 sm:$0xff]  }
 0x4b5   :  { %6666 = vrcp.f32 %v3042_v13  ;;  %v6400_v3 = vld [vmem:[#allocation9 + $0x1a0] ss:$8 sps:$4 sm:$0xff]  }
 0x4b6   :  { %v2565_v63 = vpack.c.bf16 %v2564_v56, %v2563_v35  ;;  %v6406_v35 = vld [vmem:[#allocation9 + $0x1c0] ss:$8 sps:$4 sm:$0xff]   ;;  %v6415_v56 = vld [vmem:[#allocation9 + $0x1f0] ss:$8 sps:$4 sm:$0xff]  }
 0x4b7   :  { %4417 = vmatpush1.bf16.msra.mxu0 %v6382_v43  ;;  %v6663_v46 = vpop.eup %6662  ;;  %v6408_v43 = vld [vmem:[#allocation9 + $0x1c4] ss:$8 sps:$4 sm:$0xff]  }
 0x4b8   :  { %v3044_v39 = vpop.xlane.xlu1 %3043  ;;  %4418 = vmatprep.subr.bf16.mxu0 %v6387_v30  ;;  %2566 = vst.msk [vmem:[#allocation3 + $0x18] sm:$0xff] %vm1904_vm3, %v2565_v63  ;;  %v2343_v23 = vmul.f32 %v6663_v46, %v8142_v49  ;;  %v8692_v13 = vld [vmem:[#allocation86_spill] sm:$0xff]  ;;  %v8695_v46 = vld [vmem:[#allocation84_spill] sm:$0xff] }
 0x4b9   :  { %6668 = vrcp.f32 %v3044_v39 }
 0x4bb   :  { %v6665_v54 = vpop.eup %6664  ;;  %4419 = vmatpush1.bf16.msra.mxu0 %v6385_v26 }
 0x4bc   :  { %v2344_v53 = vmul.f32 %v6665_v54, %v8145_v25  ;;  %v2822_v32 = vpop.xlane.xlu1 %2821  ;;  %4420 = vmatprep.subr.bf16.mxu0 %v6390_v40  ;;  %v8694_v40 = vld [vmem:[#allocation60_spill] sm:$0xff] }
 0x4bd   :  { %6670 = vrcp.f32 %v2822_v32  ;;  %v8696_v54 = vld [vmem:[#allocation24_spill] sm:$0xff]  ;;  %v6418_v32 = vld [vmem:[#allocation9 + $0x200] ss:$8 sps:$4 sm:$0xff]  }
 0x4be   :  { %v2345_v11 = vpack.c.bf16 %v2344_v53, %v2343_v23 }
 0x4bf   :  { %4421 = vmatpush1.bf16.msra.mxu0 %v6388_v42  ;;  %v6667_v0 = vpop.eup %6666  ;;  %v8697_v42 = vld [vmem:[#allocation85_spill] sm:$0xff] }
 0x4c0   :  { %v2824_v37 = vpop.xlane.xlu1 %2823  ;;  %4422 = vmatprep.subr.bf16.mxu0 %v6393_v14  ;;  %2346 = vst.msk [vmem:[#allocation3 + $0x10] sm:$0xff] %vm1904_vm3, %v2345_v11  ;;  %v3129_v49 = vmul.f32 %v6667_v0, %v8245_v52  ;;  %v6405_v52 = vld [vmem:[#allocation9 + $0x1b4] ss:$8 sps:$4 sm:$0xff]   ;;  %v6421_v11 = vld [vmem:[#allocation9 + $0x210] ss:$8 sps:$4 sm:$0xff]  }
 0x4c1   :  { %6672 = vrcp.f32 %v2824_v37  ;;  %v6429_v37 = vld [vmem:[#allocation9 + $0x234] ss:$8 sps:$4 sm:$0xff]   ;;  %v6432_v0 = vld [vmem:[#allocation9 + $0x244] ss:$8 sps:$4 sm:$0xff]  }
 0x4c3   :  { %v6669_v58 = vpop.eup %6668  ;;  %4423 = vmatpush1.bf16.msra.mxu0 %v6391_v33  ;;  %v6424_v33 = vld [vmem:[#allocation9 + $0x220] ss:$8 sps:$4 sm:$0xff]  }
 0x4c4   :  { %v3130_v25 = vmul.f32 %v6669_v58, %v8248_v22  ;;  %4424 = vmatprep.subr.bf16.mxu0 %v6396_v7  ;;  %v6427_v7 = vld [vmem:[#allocation9 + $0x230] ss:$8 sps:$4 sm:$0xff]   ;;  %v6468_v58 = vld [vmem:[#allocation9 + $0x4] ss:$8 sps:$4 sm:$0xff]  }
 0x4c5   :  { %4365 = vmatprep.subr.bf16.mxu1 %v6468_v58 }
 0x4c6   :  { %v3131_v24 = vpack.c.bf16 %v3130_v25, %v3129_v49  ;;  %v6471_v49 = vld [vmem:[#allocation9 + $0x14] ss:$8 sps:$4 sm:$0xff]   ;;  %v6433_v25 = vld [vmem:[#allocation9 + $0x250] ss:$8 sps:$4 sm:$0xff]  }
 0x4c7   :  { %4425 = vmatpush1.bf16.msra.mxu0 %v6394_v5  ;;  %v6671_v27 = vpop.eup %6670  ;;  %v6466_v5 = vld [vmem:[#allocation9] ss:$8 sps:$4 sm:$0xff]  }
 0x4c8   :  { %4426 = vmatprep.subr.bf16.mxu0 %v6399_v51  ;;  %v2909_v12 = vmul.f32 %v6671_v27, %v8202_v6  ;;  %v6409_v6 = vld [vmem:[#allocation9 + $0x1d0] ss:$8 sps:$4 sm:$0xff]   ;;  %4366 = vmatpush1.bf16.msra.mxu1 %v6466_v5  ;;  %v6472_v27 = vld [vmem:[#allocation9 + $0x20] ss:$8 sps:$4 sm:$0xff]   ;;  %v6462_v5 = vld [vmem:[#allocation9 + $0x2e4] ss:$8 sps:$4 sm:$0xff]  }
 0x4c9   :  { %v6469_v51 = vld [vmem:[#allocation9 + $0x10] ss:$8 sps:$4 sm:$0xff]   ;;  %4367 = vmatprep.subr.bf16.mxu1 %v6471_v49  ;;  %v6528_v49 = vld [vmem:[#allocation9 + $0xb4] ss:$8 sps:$4 sm:$0xff]  }
 0x4cb   :  { %v6673_v62 = vpop.eup %6672  ;;  %2951 = vadd.xlane.f32.xlu0 %v8186_v48  ;;  %4427 = vmatpush1.bf16.msra.mxu0 %v6397_v34  ;;  %v6411_v48 = vld [vmem:[#allocation9 + $0x1d4] ss:$8 sps:$4 sm:$0xff]   ;;  %v6474_v34 = vld [vmem:[#allocation9 + $0x24] ss:$8 sps:$4 sm:$0xff]  }
 0x4cc   :  { %v2910_v38 = vmul.f32 %v6673_v62, %v8206_v55  ;;  %4428 = vmatprep.subr.bf16.mxu0 %v6402_v10  ;;  %v6414_v55 = vld [vmem:[#allocation9 + $0x1e4] ss:$8 sps:$4 sm:$0xff]   ;;  %4368 = vmatpush1.bf16.msra.mxu1 %v6469_v51  ;;  %v6436_v10 = vld [vmem:[#allocation9 + $0x260] ss:$8 sps:$4 sm:$0xff]   ;;  %v6441_v62 = vld [vmem:[#allocation9 + $0x274] ss:$8 sps:$4 sm:$0xff]  }
 0x4cd   :  { %4369 = vmatprep.subr.bf16.mxu1 %v6474_v34  ;;  %v6460_v51 = vld [vmem:[#allocation9 + $0x2e0] ss:$8 sps:$4 sm:$0xff]   ;;  %v6465_v34 = vld [vmem:[#allocation9 + $0x2f4] ss:$8 sps:$4 sm:$0xff]  }
 0x4ce   :  { %v2911_v22 = vpack.c.bf16 %v2910_v38, %v2909_v12  ;;  %v6480_v12 = vld [vmem:[#allocation9 + $0x34] ss:$8 sps:$4 sm:$0xff]   ;;  %v6486_v38 = vld [vmem:[#allocation9 + $0x44] ss:$8 sps:$4 sm:$0xff]  }
 0x4cf   :  { %2729 = vadd.xlane.f32.xlu0 %v8062_v18  ;;  %4429 = vmatpush1.bf16.msra.mxu0 %v6400_v3  ;;  %v6412_v18 = vld [vmem:[#allocation9 + $0x1e0] ss:$8 sps:$4 sm:$0xff]   ;;  %v6478_v3 = vld [vmem:[#allocation9 + $0x30] ss:$8 sps:$4 sm:$0xff]  }
 0x4d0   :  { %4430 = vmatprep.subr.bf16.mxu0 %v6405_v52  ;;  %4370 = vmatpush1.bf16.msra.mxu1 %v6472_v27  ;;  %v6439_v52 = vld [vmem:[#allocation9 + $0x270] ss:$8 sps:$4 sm:$0xff]   ;;  %v6534_v27 = vld [vmem:[#allocation9 + $0xc4] ss:$8 sps:$4 sm:$0xff]  }
 0x4d1   :  { %4371 = vmatprep.subr.bf16.mxu1 %v6480_v12 }
 0x4d3   :  { %2159 = vadd.xlane.f32.xlu0 %v7762_v15  ;;  %4431 = vmatpush1.bf16.msra.mxu0 %v6403_v20  ;;  %v6417_v15 = vld [vmem:[#allocation9 + $0x1f4] ss:$8 sps:$4 sm:$0xff]   ;;  %v6484_v20 = vld [vmem:[#allocation9 + $0x40] ss:$8 sps:$4 sm:$0xff]  }
 0x4d4   :  { %4432 = vmatprep.subr.bf16.mxu0 %v6408_v43  ;;  %4372 = vmatpush1.bf16.msra.mxu1 %v6478_v3  ;;  %v6492_v43 = vld [vmem:[#allocation9 + $0x54] ss:$8 sps:$4 sm:$0xff]  }
 0x4d5   :  { %4373 = vmatprep.subr.bf16.mxu1 %v6486_v38  ;;  %v6477_v38 = vld [vmem:[#allocation9 + $0x304] ss:$8 sps:$4 sm:$0xff]  }
 0x4d7   :  { %1938 = vadd.xlane.f32.xlu0 %v7689_v60  ;;  %4433 = vmatpush1.bf16.msra.mxu0 %v6406_v35  ;;  %v6420_v60 = vld [vmem:[#allocation9 + $0x204] ss:$8 sps:$4 sm:$0xff]  }
 0x4d8   :  { %2949 = vadd.xlane.f32.xlu1 %v8183_v47  ;;  %4434 = vmatprep.subr.bf16.mxu0 %v6411_v48  ;;  %v8693_v47 = vld [vmem:[#allocation83_spill] sm:$0xff]  ;;  %v6442_v48 = vld [vmem:[#allocation9 + $0x280] ss:$8 sps:$4 sm:$0xff]  }
 0x4d9   :  { %4374 = vmatpush1.bf16.msra.mxu1 %v6484_v20 }
 0x4da   :  { %4375 = vmatprep.subr.bf16.mxu1 %v6492_v43 }
 0x4db   :  { %3481 = vadd.xlane.f32.xlu0 %v8225_v29  ;;  %4435 = vmatpush1.bf16.msra.mxu0 %v6409_v6 }
 0x4dc   :  { %2731 = vadd.xlane.f32.xlu1 %v8060_v19  ;;  %4436 = vmatprep.subr.bf16.mxu0 %v6414_v55  ;;  %v6447_v55 = vld [vmem:[#allocation9 + $0x294] ss:$8 sps:$4 sm:$0xff]  }
 0x4df   :  { %3261 = vadd.xlane.f32.xlu0 %v8167_v44  ;;  %4437 = vmatpush1.bf16.msra.mxu0 %v6412_v18 }
 0x4e0   :  { %2161 = vadd.xlane.f32.xlu1 %v8692_v13  ;;  %4438 = vmatprep.subr.bf16.mxu0 %v6417_v15  ;;  %v6490_v15 = vld [vmem:[#allocation9 + $0x50] ss:$8 sps:$4 sm:$0xff]   ;;  %v6498_v13 = vld [vmem:[#allocation9 + $0x64] ss:$8 sps:$4 sm:$0xff]  }
 0x4e1   :  { %4376 = vmatpush1.bf16.msra.mxu1 %v6490_v15 }
 0x4e2   :  { %4377 = vmatprep.subr.bf16.mxu1 %v6498_v13 }
 0x4e3   :  { %4439 = vmatpush1.bf16.msra.mxu0 %v6415_v56 }
 0x4e4   :  { %1940 = vadd.xlane.f32.xlu1 %v8693_v47  ;;  %4451 = vmatprep.subr.bf16.mxu0 %v6420_v60  ;;  %v6445_v60 = vld [vmem:[#allocation9 + $0x290] ss:$8 sps:$4 sm:$0xff]   ;;  %v6450_v47 = vld [vmem:[#allocation9 + $0x2a4] ss:$8 sps:$4 sm:$0xff]  }
 0x4e8   :  { %3483 = vadd.xlane.f32.xlu1 %v8223_v45 }
 0x4ec   :  { %3263 = vadd.xlane.f32.xlu1 %v8170_v59 }
 0x4f5   :  { %3133 = vrot.lane.b32.xlu0 %v3131_v24, %s6844_s3  ;;  %v6438_v24 = vld [vmem:[#allocation9 + $0x264] ss:$8 sps:$4 sm:$0xff]  }
 0x4fd   :  { %2913 = vrot.lane.b32.xlu1 %v2911_v22, %s6844_s3  ;;  %v6444_v22 = vld [vmem:[#allocation9 + $0x284] ss:$8 sps:$4 sm:$0xff]  }
 0x507   :  { %v8298_v19 = vpop.f32.mrb[108].mxu1 }
 0x508   :  { %v6185_v44 = vpop.f32.mrb[109].mxu1 }
 0x509   :  { %v8300_v29 = vpop.f32.mrb[110].mxu1  ;;  %v6496_v44 = vld [vmem:[#allocation9 + $0x60] ss:$8 sps:$4 sm:$0xff]  }
 0x50a   :  { %v6186_v30 = vpop.f32.mrb[111].mxu1  ;;  %4378 = vmatpush1.bf16.msra.mxu1 %v6496_v44  ;;  %v6546_v44 = vld [vmem:[#allocation9 + $0xe4] ss:$8 sps:$4 sm:$0xff]  }
 0x50b   :  { %v6504_v30 = vld [vmem:[#allocation9 + $0x74] ss:$8 sps:$4 sm:$0xff]  }
 0x50c   :  { %4379 = vmatprep.subr.bf16.mxu1 %v6504_v30 }
 0x511   :  { %v8302_v63 = vpop.f32.mrb[72].mxu0 }
 0x512   :  { %v6125_v26 = vpop.f32.mrb[73].mxu0 }
 0x513   :  { %v8304_v39 = vpop.f32.mrb[74].mxu0  ;;  %v6448_v26 = vld [vmem:[#allocation9 + $0x2a0] ss:$8 sps:$4 sm:$0xff]  }
 0x514   :  { %2069 = vadd.xlane.f32.xlu0 %v8694_v40  ;;  %v6126_v45 = vpop.f32.mrb[75].mxu0  ;;  %v6453_v40 = vld [vmem:[#allocation9 + $0x2b4] ss:$8 sps:$4 sm:$0xff]  }
 0x518   :  { %1845 = vadd.xlane.f32.xlu0 %v8695_v46  ;;  %v6502_v46 = vld [vmem:[#allocation9 + $0x70] ss:$8 sps:$4 sm:$0xff]  }
 0x519   :  { %4380 = vmatpush1.bf16.msra.mxu1 %v6502_v46 }
 0x51c   :  { %3389 = vadd.xlane.f32.xlu0 %v8262_v57  ;;  %v6423_v57 = vld [vmem:[#allocation9 + $0x214] ss:$8 sps:$4 sm:$0xff]  }
 0x51e   :  { %v2692_v59 = vpop.permute.xlu0 %2691 }
 0x51f   :  { %2694 = vst.msk [vmem:[#allocation3 + $0x18] sm:$0xff] %vm2033_vm4, %v2692_v59 }
 0x520   :  { %3169 = vadd.xlane.f32.xlu0 %v8229_v28  ;;  %v6426_v28 = vld [vmem:[#allocation9 + $0x224] ss:$8 sps:$4 sm:$0xff]  }
 0x521   :  { %2067 = vadd.xlane.f32.xlu1 %v8696_v54  ;;  %v6510_v54 = vld [vmem:[#allocation9 + $0x84] ss:$8 sps:$4 sm:$0xff]  }
 0x522   :  { %4381 = vmatprep.subr.bf16.mxu1 %v6510_v54 }
 0x525   :  { %1847 = vadd.xlane.f32.xlu1 %v8697_v42 }
 0x526   :  { %v2472_v23 = vpop.permute.xlu1 %2471  ;;  %v3580_v53 = vld [vmem:[#allocation3 + $0x18] sm:$0xff] }
 0x527   :  { %2474 = vst.msk [vmem:[#allocation3 + $0x10] sm:$0xff] %vm2033_vm4, %v2472_v23  ;;  %4440 = vmatprep.mubr.bf16.mxu0 %v3580_v53  ;;  %v6451_v53 = vld [vmem:[#allocation9 + $0x2b0] ss:$8 sps:$4 sm:$0xff]  }
 0x529   :  { %3391 = vadd.xlane.f32.xlu1 %v8264_v2  ;;  %v6430_v2 = vld [vmem:[#allocation9 + $0x240] ss:$8 sps:$4 sm:$0xff]  }
 0x52d   :  { %3171 = vadd.xlane.f32.xlu1 %v8231_v1  ;;  %v6435_v1 = vld [vmem:[#allocation9 + $0x254] ss:$8 sps:$4 sm:$0xff]  }
 0x52e   :  { %v3579_v14 = vld [vmem:[#allocation3 + $0x10] sm:$0xff] }
 0x52f   :  { %4441 = vmatmul.mubr.bf16.vlgmr.msra.gmra.mrb[84].mxu0 %v3579_v14  ;;  %v6508_v14 = vld [vmem:[#allocation9 + $0x80] ss:$8 sps:$4 sm:$0xff]  }
 0x530   :  { %4452 = vmatpush1.bf16.msra.mxu0 %v6418_v32  ;;  %4382 = vmatpush1.bf16.msra.mxu1 %v6508_v14 }
 0x531   :  { %4453 = vmatprep.subr.bf16.mxu0 %v6423_v57  ;;  %v6456_v57 = vld [vmem:[#allocation9 + $0x2c4] ss:$8 sps:$4 sm:$0xff]  }
 0x534   :  { %4454 = vmatpush1.bf16.msra.mxu0 %v6421_v11  ;;  %v6516_v11 = vld [vmem:[#allocation9 + $0x94] ss:$8 sps:$4 sm:$0xff]  }
 0x535   :  { %4455 = vmatprep.subr.bf16.mxu0 %v6426_v28  ;;  %4383 = vmatprep.subr.bf16.mxu1 %v6516_v11 }
 0x538   :  { %4456 = vmatpush1.bf16.msra.mxu0 %v6424_v33  ;;  %v6454_v33 = vld [vmem:[#allocation9 + $0x2c0] ss:$8 sps:$4 sm:$0xff]  }
 0x539   :  { %4457 = vmatprep.subr.bf16.mxu0 %v6429_v37  ;;  %v6459_v37 = vld [vmem:[#allocation9 + $0x2d4] ss:$8 sps:$4 sm:$0xff]  }
 0x53c   :  { %4458 = vmatpush1.bf16.msra.mxu0 %v6427_v7  ;;  %v6514_v7 = vld [vmem:[#allocation9 + $0x90] ss:$8 sps:$4 sm:$0xff]  }
 0x53d   :  { %4459 = vmatprep.subr.bf16.mxu0 %v6432_v0  ;;  %v6522_v0 = vld [vmem:[#allocation9 + $0xa4] ss:$8 sps:$4 sm:$0xff]   ;;  %4384 = vmatpush1.bf16.msra.mxu1 %v6514_v7 }
 0x53e   :  { %4385 = vmatprep.subr.bf16.mxu1 %v6522_v0 }
 0x540   :  { %4460 = vmatpush1.bf16.msra.mxu0 %v6430_v2  ;;  %v6457_v2 = vld [vmem:[#allocation9 + $0x2d0] ss:$8 sps:$4 sm:$0xff]  }
 0x541   :  { %4461 = vmatprep.subr.bf16.mxu0 %v6435_v1  ;;  %v6520_v1 = vld [vmem:[#allocation9 + $0xa0] ss:$8 sps:$4 sm:$0xff]  }
 0x542   :  { %4386 = vmatpush1.bf16.msra.mxu1 %v6520_v1 }
 0x543   :  { %4387 = vmatprep.subr.bf16.mxu1 %v6528_v49 }
 0x544   :  { %4462 = vmatpush1.bf16.msra.mxu0 %v6433_v25 }
 0x545   :  { %4463 = vmatprep.subr.bf16.mxu0 %v6438_v24 }
 0x548   :  { %4464 = vmatpush1.bf16.msra.mxu0 %v6436_v10  ;;  %v6526_v10 = vld [vmem:[#allocation9 + $0xb0] ss:$8 sps:$4 sm:$0xff]  }
 0x549   :  { %4465 = vmatprep.subr.bf16.mxu0 %v6441_v62  ;;  %v6463_v62 = vld [vmem:[#allocation9 + $0x2f0] ss:$8 sps:$4 sm:$0xff]   ;;  %4388 = vmatpush1.bf16.msra.mxu1 %v6526_v10  ;;  %v6475_v10 = vld [vmem:[#allocation9 + $0x300] ss:$8 sps:$4 sm:$0xff]  }
 0x54a   :  { %4389 = vmatprep.subr.bf16.mxu1 %v6534_v27 }
 0x54c   :  { %v8316_v35 = vpop.f32.mrb[112].mxu1  ;;  %4466 = vmatpush1.bf16.msra.mxu0 %v6439_v52  ;;  %v6532_v52 = vld [vmem:[#allocation9 + $0xc0] ss:$8 sps:$4 sm:$0xff]  }
 0x54d   :  { %v6225_v6 = vpop.f32.mrb[113].mxu1  ;;  %4467 = vmatprep.subr.bf16.mxu0 %v6444_v22  ;;  %4390 = vmatpush1.bf16.msra.mxu1 %v6532_v52  ;;  %v6487_v52 = vld [vmem:[#allocation9 + $0x320] ss:$8 sps:$4 sm:$0xff]  }
 0x54e   :  { %v8318_v18 = vpop.f32.mrb[114].mxu1 }
 0x54f   :  { %v6226_v56 = vpop.f32.mrb[115].mxu1 }
 0x550   :  { %4468 = vmatpush1.bf16.msra.mxu0 %v6442_v48  ;;  %v6540_v48 = vld [vmem:[#allocation9 + $0xd4] ss:$8 sps:$4 sm:$0xff]  }
 0x551   :  { %4469 = vmatprep.subr.bf16.mxu0 %v6447_v55  ;;  %v6538_v55 = vld [vmem:[#allocation9 + $0xd0] ss:$8 sps:$4 sm:$0xff]   ;;  %4391 = vmatprep.subr.bf16.mxu1 %v6540_v48 }
 0x552   :  { %4392 = vmatpush1.bf16.msra.mxu1 %v6538_v55  ;;  %v6505_v48 = vld [vmem:[#allocation9 + $0x350] ss:$8 sps:$4 sm:$0xff]   ;;  %v6511_v55 = vld [vmem:[#allocation9 + $0x360] ss:$8 sps:$4 sm:$0xff]  }
 0x553   :  { %4393 = vmatprep.subr.bf16.mxu1 %v6546_v44  ;;  %v6531_v44 = vld [vmem:[#allocation9 + $0x394] ss:$8 sps:$4 sm:$0xff]  }
 0x554   :  { %4470 = vmatpush1.bf16.msra.mxu0 %v6445_v60 }
 0x555   :  { %4471 = vmatprep.subr.bf16.mxu0 %v6450_v47 }
 0x556   :  { %v8320_v45 = vpop.f32.mrb[76].mxu0 }
 0x557   :  { %v6165_v59 = vpop.f32.mrb[77].mxu0 }
 0x558   :  { %v2952_v42 = vpop.xlane.xlu0 %2951  ;;  %v8322_v23 = vpop.f32.mrb[78].mxu0  ;;  %4472 = vmatpush1.bf16.msra.mxu0 %v6448_v26  ;;  %v6544_v26 = vld [vmem:[#allocation9 + $0xe0] ss:$8 sps:$4 sm:$0xff]  }
 0x559   :  { %v6166_v32 = vpop.f32.mrb[79].mxu0  ;;  %4473 = vmatprep.subr.bf16.mxu0 %v6453_v40  ;;  %6674 = vrcp.f32 %v2952_v42  ;;  %4394 = vmatpush1.bf16.msra.mxu1 %v6544_v26  ;;  %v6552_v42 = vld [vmem:[#allocation9 + $0xf4] ss:$8 sps:$4 sm:$0xff]   ;;  %v6537_v26 = vld [vmem:[#allocation9 + $0x3a4] ss:$8 sps:$4 sm:$0xff]  }
 0x55a   :  { %v6550_v32 = vld [vmem:[#allocation9 + $0xf0] ss:$8 sps:$4 sm:$0xff]   ;;  %4395 = vmatprep.subr.bf16.mxu1 %v6552_v42  ;;  %v6549_v42 = vld [vmem:[#allocation9 + $0x3c4] ss:$8 sps:$4 sm:$0xff]  }
 0x55c   :  { %v2730_v28 = vpop.xlane.xlu0 %2729  ;;  %4474 = vmatpush1.bf16.msra.mxu0 %v6451_v53 }
 0x55d   :  { %4475 = vmatprep.subr.bf16.mxu0 %v6456_v57  ;;  %4396 = vmatpush1.bf16.msra.mxu1 %v6550_v32  ;;  %v6547_v32 = vld [vmem:[#allocation9 + $0x3c0] ss:$8 sps:$4 sm:$0xff]  }
 0x560   :  { %v2160_v58 = vpop.xlane.xlu0 %2159  ;;  %4476 = vmatpush1.bf16.msra.mxu0 %v6454_v33 }
 0x561   :  { %4477 = vmatprep.subr.bf16.mxu0 %v6459_v37 }
 0x563   :  { %v6675_v20 = vpop.eup %6674 }
 0x564   :  { %v1939_v25 = vpop.xlane.xlu0 %1938  ;;  %4478 = vmatpush1.bf16.msra.mxu0 %v6457_v2  ;;  %v3006_v15 = vmul.f32 %v6675_v20, %v8304_v39  ;;  %v6493_v20 = vld [vmem:[#allocation9 + $0x330] ss:$8 sps:$4 sm:$0xff]  }
 0x565   :  { %v2950_v24 = vpop.xlane.xlu1 %2949  ;;  %4479 = vmatprep.subr.bf16.mxu0 %v6462_v5 }
 0x566   :  { %6676 = vrcp.f32 %v2950_v24 }
 0x567   :  { %6678 = vrcp.f32 %v2730_v28 }
 0x568   :  { %4480 = vmatpush1.bf16.msra.mxu0 %v6460_v51  ;;  %v3482_v3 = vpop.xlane.xlu0 %3481 }
 0x569   :  { %v2732_v12 = vpop.xlane.xlu1 %2731  ;;  %4481 = vmatprep.subr.bf16.mxu0 %v6465_v34 }
 0x56a   :  { %6680 = vrcp.f32 %v2732_v12 }
 0x56b   :  { %6682 = vrcp.f32 %v2160_v58 }
 0x56c   :  { %4482 = vmatpush1.bf16.msra.mxu0 %v6463_v62  ;;  %v3262_v43 = vpop.xlane.xlu0 %3261  ;;  %v6483_v62 = vld [vmem:[#allocation9 + $0x314] ss:$8 sps:$4 sm:$0xff]  }
 0x56d   :  { %v2162_v22 = vpop.xlane.xlu1 %2161  ;;  %4494 = vmatprep.subr.bf16.mxu0 %v6477_v38  ;;  %v6489_v38 = vld [vmem:[#allocation9 + $0x324] ss:$8 sps:$4 sm:$0xff]  }
 0x56e   :  { %6684 = vrcp.f32 %v2162_v22  ;;  %v6495_v22 = vld [vmem:[#allocation9 + $0x334] ss:$8 sps:$4 sm:$0xff]  }
 0x56f   :  { %6686 = vrcp.f32 %v1939_v25 }
 0x570   :  { %v6677_v6 = vpop.eup %6676  ;;  %v3134_v59 = vpop.permute.xlu0 %3133 }
 0x571   :  { %v3005_v56 = vmul.f32 %v6677_v6, %v8302_v63  ;;  %v1941_v13 = vpop.xlane.xlu1 %1940  ;;  %v6679_v60 = vpop.eup %6678  ;;  %v6513_v6 = vld [vmem:[#allocation9 + $0x364] ss:$8 sps:$4 sm:$0xff]  }
 0x572   :  { %6688 = vrcp.f32 %v1941_v13  ;;  %v2785_v40 = vmul.f32 %v6679_v60, %v8255_v41  ;;  %v6525_v13 = vld [vmem:[#allocation9 + $0x384] ss:$8 sps:$4 sm:$0xff]   ;;  %v6523_v60 = vld [vmem:[#allocation9 + $0x380] ss:$8 sps:$4 sm:$0xff]  }
 0x573   :  { %v3007_v47 = vpack.c.bf16 %v3006_v15, %v3005_v56  ;;  %6690 = vrcp.f32 %v3482_v3  ;;  %v6519_v15 = vld [vmem:[#allocation9 + $0x374] ss:$8 sps:$4 sm:$0xff]   ;;  %v6517_v56 = vld [vmem:[#allocation9 + $0x370] ss:$8 sps:$4 sm:$0xff]  }
 0x574   :  { %v6681_v30 = vpop.eup %6680 }
 0x575   :  { %v2786_v46 = vmul.f32 %v6681_v30, %v8258_v9  ;;  %3008 = vst.msk [vmem:[#allocation3 + $0x28] sm:$0xff] %vm1904_vm3, %v3007_v47  ;;  %v3484_v39 = vpop.xlane.xlu1 %3483  ;;  %v6683_v63 = vpop.eup %6682  ;;  %v6529_v30 = vld [vmem:[#allocation9 + $0x390] ss:$8 sps:$4 sm:$0xff]  }
 0x576   :  { %3136 = vst.msk [vmem:[#allocation3 + $0x28] sm:$0xff] %vm2033_vm4, %v3134_v59  ;;  %6692 = vrcp.f32 %v3484_v39  ;;  %v2247_v41 = vmul.f32 %v6683_v63, %v8108_v17  ;;  %v6543_v59 = vld [vmem:[#allocation9 + $0x3b4] ss:$8 sps:$4 sm:$0xff]   ;;  %v6541_v63 = vld [vmem:[#allocation9 + $0x3b0] ss:$8 sps:$4 sm:$0xff]  }
 0x577   :  { %v2787_v54 = vpack.c.bf16 %v2786_v46, %v2785_v40  ;;  %6694 = vrcp.f32 %v3262_v43  ;;  %v6501_v43 = vld [vmem:[#allocation9 + $0x344] ss:$8 sps:$4 sm:$0xff]   ;;  %v6535_v46 = vld [vmem:[#allocation9 + $0x3a0] ss:$8 sps:$4 sm:$0xff]  }
 0x578   :  { %v6685_v53 = vpop.eup %6684 }
 0x579   :  { %v3264_v57 = vpop.xlane.xlu1 %3263  ;;  %v8330_v14 = vpop.f32.mrb[80].mxu0  ;;  %v2248_v9 = vmul.f32 %v6685_v53, %v8110_v36  ;;  %2788 = vst.msk [vmem:[#allocation3 + $0x20] sm:$0xff] %vm1904_vm3, %v2787_v54 }
 0x57a   :  { %v6687_v11 = vpop.eup %6686  ;;  %6696 = vrcp.f32 %v3264_v57  ;;  %v6205_v28 = vpop.f32.mrb[81].mxu0  ;;  %v6555_v57 = vld [vmem:[#allocation9 + $0x3d4] ss:$8 sps:$4 sm:$0xff]  }
 0x57b   :  { %v8335_v33 = vpop.f32.mrb[82].mxu0  ;;  %v2249_v37 = vpack.c.bf16 %v2248_v9, %v2247_v41  ;;  %v2026_v17 = vmul.f32 %v6687_v11, %v8071_v50  ;;  %v6562_v50 = vld [vmem:[%s8470_s8 + $0x40] sm:$0xff]  }
 0x57c   :  { %v6689_v7 = vpop.eup %6688  ;;  %v6206_v0 = vpop.f32.mrb[83].mxu0  ;;  %5575 = vmatprep.subr.bf16.mxu1 %v6562_v50  ;;  %v6553_v28 = vld [vmem:[#allocation9 + $0x3d0] ss:$8 sps:$4 sm:$0xff]  }
 0x57d   :  { %2251 = vrot.lane.b32.xlu0 %v2249_v37, %s6844_s3  ;;  %v2914_v58 = vpop.permute.xlu1 %2913  ;;  %v3582_v2 = vld [vmem:[#allocation3 + $0x28] sm:$0xff]  ;;  %v2027_v36 = vmul.f32 %v6689_v7, %v8076_v31  ;;  %v6691_v5 = vpop.eup %6690  ;;  %v6558_v37 = vld [vmem:[#allocation9 + $0x3e4] ss:$8 sps:$4 sm:$0xff]  }
 0x57e   :  { %2916 = vst.msk [vmem:[#allocation3 + $0x20] sm:$0xff] %vm2033_vm4, %v2914_v58  ;;  %4483 = vmatprep.mubr.bf16.mxu0 %v3582_v2  ;;  %v3569_v25 = vmul.f32 %v6691_v5, %v8316_v35 }
 0x57f   :  { %v2028_v1 = vpack.c.bf16 %v2027_v36, %v2026_v17  ;;  %v6556_v36 = vld [vmem:[#allocation9 + $0x3e0] ss:$8 sps:$4 sm:$0xff]  }
 0x580   :  { %v6693_v49 = vpop.eup %6692 }
 0x581   :  { %2030 = vrot.lane.b32.xlu1 %v2028_v1, %s6844_s3  ;;  %v3570_v51 = vmul.f32 %v6693_v49, %v8318_v18  ;;  %v6695_v24 = vpop.eup %6694  ;;  %v6481_v18 = vld [vmem:[#allocation9 + $0x310] ss:$8 sps:$4 sm:$0xff]   ;;  %v6561_v1 = vld [vmem:[#allocation9 + $0x3f4] ss:$8 sps:$4 sm:$0xff]  }
 0x582   :  { %v3349_v3 = vmul.f32 %v6695_v24, %v8298_v19  ;;  %v6499_v19 = vld [vmem:[#allocation9 + $0x340] ss:$8 sps:$4 sm:$0xff]  }
 0x583   :  { %v3571_v34 = vpack.c.bf16 %v3570_v51, %v3569_v25 }
 0x584   :  { %v6697_v27 = vpop.eup %6696 }
 0x585   :  { %3573 = vrot.lane.b32.xlu1 %v3571_v34, %s6844_s3  ;;  %v3581_v31 = vld [vmem:[#allocation3 + $0x20] sm:$0xff]  ;;  %v3350_v12 = vmul.f32 %v6697_v27, %v8300_v29 }
 0x586   :  { %4484 = vmatmul.mubr.bf16.vlgmr.msra.gmra.mrb[84].mxu0 %v3581_v31  ;;  %v6507_v29 = vld [vmem:[#allocation9 + $0x354] ss:$8 sps:$4 sm:$0xff]  }
 0x587   :  { %v3351_v35 = vpack.c.bf16 %v3350_v12, %v3349_v3  ;;  %4495 = vmatpush1.bf16.msra.mxu0 %v6475_v10 }
 0x588   :  { %4496 = vmatprep.subr.bf16.mxu0 %v6483_v62 }
 0x589   :  { %3353 = vrot.lane.b32.xlu1 %v3351_v35, %s6844_s3 }
 0x58b   :  { %4497 = vmatpush1.bf16.msra.mxu0 %v6481_v18 }
 0x58c   :  { %4498 = vmatprep.subr.bf16.mxu0 %v6489_v38 }
 0x58f   :  { %4499 = vmatpush1.bf16.msra.mxu0 %v6487_v52  ;;  %v6565_v52 = vld [vmem:[%s8470_s8 + $0x8] sm:$0xff]  }
 0x590   :  { %4500 = vmatprep.subr.bf16.mxu0 %v6495_v22  ;;  %v6566_v22 = vld [vmem:[%s8470_s8 + $0x50] sm:$0xff]  }
 0x593   :  { %4501 = vmatpush1.bf16.msra.mxu0 %v6493_v20 }
 0x594   :  { %4502 = vmatprep.subr.bf16.mxu0 %v6501_v43  ;;  %v6567_v43 = vld [vmem:[%s8470_s8 + $0x10] sm:$0xff]  }
 0x597   :  { %4503 = vmatpush1.bf16.msra.mxu0 %v6499_v19 }
 0x598   :  { %4504 = vmatprep.subr.bf16.mxu0 %v6507_v29  ;;  %v6568_v29 = vld [vmem:[%s8470_s8 + $0x58] sm:$0xff]  }
 0x59b   :  { %4505 = vmatpush1.bf16.msra.mxu0 %v6505_v48  ;;  %v6569_v48 = vld [vmem:[%s8470_s8 + $0x18] sm:$0xff]  }
 0x59c   :  { %4506 = vmatprep.subr.bf16.mxu0 %v6513_v6  ;;  %v6570_v6 = vld [vmem:[%s8470_s8 + $0x60] sm:$0xff]  }
 0x59f   :  { %4507 = vmatpush1.bf16.msra.mxu0 %v6511_v55  ;;  %v6571_v55 = vld [vmem:[%s8470_s8 + $0x20] sm:$0xff]  }
 0x5a0   :  { %4508 = vmatprep.subr.bf16.mxu0 %v6519_v15  ;;  %v6572_v15 = vld [vmem:[%s8470_s8 + $0x68] sm:$0xff]  }
 0x5a1   :  { %v2070_v47 = vpop.xlane.xlu0 %2069 }
 0x5a2   :  { %6698 = vrcp.f32 %v2070_v47  ;;  %v6576_v47 = vld [vmem:[%s8470_s8 + $0x78] sm:$0xff]  }
 0x5a3   :  { %4509 = vmatpush1.bf16.msra.mxu0 %v6517_v56  ;;  %v6573_v56 = vld [vmem:[%s8470_s8 + $0x28] sm:$0xff]  }
 0x5a4   :  { %4510 = vmatprep.subr.bf16.mxu0 %v6525_v13  ;;  %v6574_v13 = vld [vmem:[%s8470_s8 + $0x70] sm:$0xff]  }
 0x5a5   :  { %v1846_v40 = vpop.xlane.xlu0 %1845 }
 0x5a7   :  { %4511 = vmatpush1.bf16.msra.mxu0 %v6523_v60  ;;  %v6575_v60 = vld [vmem:[%s8470_s8 + $0x30] sm:$0xff]  }
 0x5a8   :  { %4512 = vmatprep.subr.bf16.mxu0 %v6531_v44  ;;  %v6577_v44 = vld [vmem:[%s8470_s8 + $0x38] sm:$0xff]  }
 0x5a9   :  { %v3390_v54 = vpop.xlane.xlu0 %3389 }
 0x5ab   :  { %4513 = vmatpush1.bf16.msra.mxu0 %v6529_v30  ;;  %v3713_v30 = vld [vmem:[#allocation11] ss:$8 sm:$0x3] }
 0x5ac   :  { %4514 = vmatprep.subr.bf16.mxu0 %v6537_v26  ;;  %v6699_v11 = vpop.eup %6698 }
 0x5ad   :  { %v3170_v41 = vpop.xlane.xlu0 %3169  ;;  %v2124_v0 = vmul.f32 %v6699_v11, %v8115_v4  ;;  %v6559_v4 = vld [vmem:[#allocation9 + $0x3f0] ss:$8 sps:$4 sm:$0xff]  }
 0x5ae   :  { %v2068_v39 = vpop.xlane.xlu1 %2067 }
 0x5af   :  { %6700 = vrcp.f32 %v2068_v39  ;;  %4515 = vmatpush1.bf16.msra.mxu0 %v6535_v46 }
 0x5b0   :  { %4516 = vmatprep.subr.bf16.mxu0 %v6543_v59  ;;  %6702 = vrcp.f32 %v1846_v40  ;;  %v8698_v59 = vld [vmem:[#allocation77_spill] sm:$0xff] }
 0x5b1   :  { %v3718_v39 = vrot.slane %v3713_v30, %v8698_v59 }
 0x5b2   :  { %v1848_v53 = vpop.xlane.xlu1 %1847 }
 0x5b3   :  { %6704 = vrcp.f32 %v1848_v53  ;;  %4517 = vmatpush1.bf16.msra.mxu0 %v6541_v63 }
 0x5b4   :  { %4518 = vmatprep.subr.bf16.mxu0 %v6549_v42  ;;  %6706 = vrcp.f32 %v3390_v54  ;;  %v8699_v54 = vld [vmem:[#allocation74_spill] sm:$0xff] }
 0x5b5   :  { %v3722_v42 = vrot.slane %v3713_v30, %v8699_v54  ;;  %v6865_v30 = vmov 0.0|0.0  }
 0x5b6   :  { %v3392_v9 = vpop.xlane.xlu1 %3391 }
 0x5b7   :  { %6708 = vrcp.f32 %v3392_v9  ;;  %4519 = vmatpush1.bf16.msra.mxu0 %v6547_v32 }
 0x5b8   :  { %4520 = vmatprep.subr.bf16.mxu0 %v6555_v57  ;;  %6710 = vrcp.f32 %v3170_v41 }
 0x5b9   :  { %v6701_v7 = vpop.eup %6700 }
 0x5ba   :  { %v2123_v58 = vmul.f32 %v6701_v7, %v8113_v8  ;;  %v3172_v2 = vpop.xlane.xlu1 %3171  ;;  %v6703_v17 = vpop.eup %6702 }
 0x5bb   :  { %6712 = vrcp.f32 %v3172_v2  ;;  %4521 = vmatpush1.bf16.msra.mxu0 %v6553_v28  ;;  %v1901_v25 = vmul.f32 %v6703_v17, %v8082_v21 }
 0x5bc   :  { %v2125_v5 = vpack.c.bf16 %v2124_v0, %v2123_v58  ;;  %4522 = vmatprep.subr.bf16.mxu0 %v6558_v37 }
 0x5bd   :  { %v6705_v49 = vpop.eup %6704 }
 0x5be   :  { %v1902_v51 = vmul.f32 %v6705_v49, %v8089_v16  ;;  %2126 = vst.msk [vmem:[#allocation3 + $0x8] sm:$0xff] %vm1904_vm3, %v2125_v5  ;;  %v6707_v24 = vpop.eup %6706 }
 0x5bf   :  { %4523 = vmatpush1.bf16.msra.mxu0 %v6556_v36  ;;  %v3445_v10 = vmul.f32 %v6707_v24, %v8330_v14 }
 0x5c0   :  { %v1903_v34 = vpack.c.bf16 %v1902_v51, %v1901_v25  ;;  %4524 = vmatprep.subr.bf16.mxu0 %v6561_v1 }
 0x5c1   :  { %v6709_v8 = vpop.eup %6708 }
 0x5c2   :  { %v3446_v27 = vmul.f32 %v6709_v8, %v8335_v33  ;;  %1905 = vst.msk [vmem:[#allocation3] sm:$0xff] %vm1904_vm3, %v1903_v34  ;;  %v6711_v62 = vpop.eup %6710  ;;  %v6578_v8 = vld [vmem:[%s8471_s9] sm:$0xff]  }
 0x5c3   :  { %4525 = vmatpush1.bf16.msra.mxu0 %v6559_v4  ;;  %v3225_v16 = vmul.f32 %v6711_v62, %v8320_v45  ;;  %v6563_v45 = vld [vmem:[%s8470_s8] sm:$0xff]   ;;  %v6581_v62 = vld [vmem:[%s8471_s9 + $0x18] sm:$0xff]  }
 0x5c4   :  { %v3447_v50 = vpack.c.bf16 %v3446_v27, %v3445_v10  ;;  %v6579_v10 = vld [vmem:[%s8471_s9 + $0x8] sm:$0xff]   ;;  %v6580_v27 = vld [vmem:[%s8471_s9 + $0x10] sm:$0xff]   ;;  %6262 = vmatprep.subr.bf16.mxu0 %v6865_v30 }
 0x5c5   :  { %v6713_v21 = vpop.eup %6712 }
 0x5c6   :  { %v3226_v31 = vmul.f32 %v6713_v21, %v8322_v23  ;;  %3448 = vst.msk [vmem:[#allocation3 + $0x38] sm:$0xff] %vm1904_vm3, %v3447_v50  ;;  %v6564_v23 = vld [vmem:[%s8470_s8 + $0x48] sm:$0xff]   ;;  %v4583_v21 = vld [vmem:[#allocation11 + $0x1] ss:$0 sm:$0xff] }
 0x5c8   :  { %v3227_v3 = vpack.c.bf16 %v3226_v31, %v3225_v16 }
 0x5ca   :  { %3228 = vst.msk [vmem:[#allocation3 + $0x30] sm:$0xff] %vm1904_vm3, %v3227_v3 }
 0x5ef   :  { %v2252_v12 = vpop.permute.xlu0 %2251 }
 0x5f0   :  { %2254 = vst.msk [vmem:[#allocation3 + $0x8] sm:$0xff] %vm2033_vm4, %v2252_v12 }
 0x5f3   :  { %v2031_v14 = vpop.permute.xlu1 %2030 }
 0x5f4   :  { %2034 = vst.msk [vmem:[#allocation3] sm:$0xff] %vm2033_vm4, %v2031_v14 }
 0x5f7   :  { %v3574_v33 = vpop.permute.xlu1 %3573  ;;  %v3578_v35 = vld [vmem:[#allocation3 + $0x8] sm:$0xff] }
 0x5f8   :  { %3576 = vst.msk [vmem:[#allocation3 + $0x38] sm:$0xff] %vm2033_vm4, %v3574_v33  ;;  %4397 = vmatprep.mubr.bf16.mxu1 %v3578_v35 }
 0x5fb   :  { %v3354_v18 = vpop.permute.xlu1 %3353  ;;  %v3577_v38 = vld [vmem:[#allocation3] sm:$0xff] }
 0x5fc   :  { %3356 = vst.msk [vmem:[#allocation3 + $0x30] sm:$0xff] %vm2033_vm4, %v3354_v18  ;;  %4398 = vmatmul.mubr.bf16.vlgmr.msra.gmra.mrb[116].mxu1 %v3577_v38 }
 0x5fd   :  { %5576 = vmatpush3.bf16.msra.mxu1 %v6563_v45 }
 0x5fe   :  { %5577 = vmatprep.subr.bf16.mxu1 %v6564_v23 }
 0x5ff   :  { %v3584_v20 = vld [vmem:[#allocation3 + $0x38] sm:$0xff] }
 0x600   :  { %4526 = vmatprep.mubr.bf16.mxu0 %v3584_v20  ;;  %v6583_v20 = vld [vmem:[%s8471_s9 + $0x28] sm:$0xff]  }
 0x601   :  { %5578 = vmatpush3.bf16.msra.mxu1 %v6565_v52 }
 0x602   :  { %5579 = vmatprep.subr.bf16.mxu1 %v6566_v22  ;;  %v6582_v22 = vld [vmem:[%s8471_s9 + $0x20] sm:$0xff]  }
 0x603   :  { %v3583_v19 = vld [vmem:[#allocation3 + $0x30] sm:$0xff] }
 0x604   :  { %4527 = vmatmul.mubr.bf16.vlgmr.msra.gmra.mrb[84].mxu0 %v3583_v19 }
 0x605   :  { %5580 = vmatpush3.bf16.msra.mxu1 %v6567_v43  ;;  %6251 = vmatprep.mubr.msk.f32.mxu0 %vm6848_vm0, %v8576_v61  ;;  %v4736_v43 = vld [vmem:[#allocation11 + $0x2] ss:$0 sm:$0xff] }
 0x606   :  { %5581 = vmatprep.subr.bf16.mxu1 %v6568_v29 }
 0x609   :  { %5582 = vmatpush3.bf16.msra.mxu1 %v6569_v48 }
 0x60a   :  { %5583 = vmatprep.subr.bf16.mxu1 %v6570_v6 }
 0x60d   :  { %5584 = vmatpush3.bf16.msra.mxu1 %v6571_v55 }
 0x60e   :  { %5585 = vmatprep.subr.bf16.mxu1 %v6572_v15 }
 0x611   :  { %5586 = vmatpush3.bf16.msra.mxu1 %v6573_v56 }
 0x612   :  { %5587 = vmatprep.subr.bf16.mxu1 %v6574_v13 }
 0x615   :  { %5588 = vmatpush3.bf16.msra.mxu1 %v6575_v60 }
 0x616   :  { %5589 = vmatprep.subr.bf16.mxu1 %v6576_v47 }
 0x619   :  { %5590 = vmatpush3.bf16.msra.mxu1 %v6577_v44 }
 0x61a   :  { %6227 = vmatprep.subr.bf16.mxu1 %v8576_v61 }
 0x6cf   :  { %v4399_v26 = vpop.f32.mrb[116].mxu1 }
 0x6d0   :  { %v4401_v40 = vpop.f32.mrb[117].mxu1  ;;  %v4400_v53 = vadd.f32 %v4399_v26, %v3718_v39  ;;  %v6584_v26 = vld [vmem:[%s8471_s9 + $0x30] sm:$0xff]  }
 0x6d1   :  { %v4403_v46 = vpop.f32.mrb[118].mxu1  ;;  %v4402_v32 = vadd.f32 %v4401_v40, %v3722_v42  ;;  %v4816_v40 = vld [vmem:[#allocation11 + $0x3] ss:$0 sm:$0xff] }
 0x6d2   :  { %v4405_v63 = vpop.f32.mrb[119].mxu1  ;;  %v4404_v41 = vadd.f32 %v4403_v46, %v3718_v39 }
 0x6d3   :  { %v4406_v28 = vadd.f32 %v4405_v63, %v3722_v42 }
 0x6d7   :  { %v4528_v57 = vpop.f32.mrb[84].mxu0 }
 0x6d8   :  { %v6266_v9 = vadd.f32 %v4528_v57, %v4400_v53  ;;  %v4530_v11 = vpop.f32.mrb[85].mxu0 }
 0x6d9   :  { %v6268_v37 = vadd.f32 %v4530_v11, %v4402_v32  ;;  %v4532_v7 = vpop.f32.mrb[86].mxu0  ;;  %v4880_v11 = vld [vmem:[#allocation4] sm:$0xff] }
 0x6da   :  { %v4541_v0 = vmul.f32 0.1, %v6266_v9  ;;  %v6270_v58 = vadd.f32 %v4532_v7, %v4404_v41  ;;  %v4534_v2 = vpop.f32.mrb[87].mxu0  ;;  %vm4537_vm5 = vcmp.gt.f32.partialorder %v6266_v9, 0.0 }
 0x6db   :  { %v4542_v17 = vmul.f32 0.1, %v6268_v37  ;;  %v6272_v36 = vadd.f32 %v4534_v2, %v4406_v28  ;;  %vm4538_vm6 = vcmp.gt.f32.partialorder %v6268_v37, 0.0 }
 0x6dc   :  { %vm4539_vm7 = vcmp.gt.f32.partialorder %v6270_v58, 0.0  ;;  %v4543_v5 = vmul.f32 0.1, %v6270_v58  ;;  %v4545_v49 = vsel %vm4537_vm5, %v6266_v9, %v4541_v0 }
 0x6dd   :  { %vm4540_vm8 = vcmp.gt.f32.partialorder %v6272_v36, 0.0  ;;  %v4544_v1 = vmul.f32 0.1, %v6272_v36  ;;  %v4546_v24 = vsel %vm4538_vm6, %v6268_v37, %v4542_v17 }
 0x6de   :  { %v4547_v25 = vsel %vm4539_vm7, %v6270_v58, %v4543_v5 }
 0x6df   :  { %v4549_v51 = vpack.c.bf16 %v4547_v25, %v4545_v49  ;;  %v4548_v4 = vsel %vm4540_vm8, %v6272_v36, %v4544_v1 }
 0x6e0   :  { %v4550_v34 = vpack.c.bf16 %v4548_v4, %v4546_v24  ;;  %v8700_v4 = vld [vmem:[#allocation57_spill] sm:$0xff] }
 0x6e1   :  { %vm5029_vm1 = vcmp.eq.s32.totalorder %v8700_v4, 7 }
 0x6e2   :  { %4712 = vmatprep.mubr.bf16.mxu1 %v4550_v34 }
 0x6e3   :  { %4713 = vmatmul.mubr.bf16.vlgmr.msra.gmra.mrb[120].mxu1 %v4549_v51  ;;  %v4960_v51 = vld [vmem:[#allocation11 + $0x4] ss:$0 sm:$0xff] }
 0x6e4   :  { %6228 = vmatpush3.bf16.msra.mxu1 %v6578_v8  ;;  %6235 = vmatprep.mubr.msk.bf16.mxu1 %vm6848_vm0, %v8576_v61 }
 0x6e5   :  { %6229 = vmatprep.subr.bf16.mxu1 %v8576_v61 }
 0x6e8   :  { %6230 = vmatpush3.bf16.msra.mxu1 %v6579_v10 }
 0x6e9   :  { %6231 = vmatprep.subr.bf16.mxu1 %v8576_v61 }
 0x6ec   :  { %6232 = vmatpush3.bf16.msra.mxu1 %v6580_v27 }
 0x6ed   :  { %6233 = vmatprep.subr.bf16.mxu1 %v8576_v61 }
 0x6f0   :  { %6234 = vmatpush3.bf16.msra.mxu1 %v6581_v62 }
 0x6f1   :  { %6239 = vmatprep.subr.bf16.mxu1 %v8576_v61 }
 0x7b6   :  { %v5591_v50 = vpop.f32.mrb[120].mxu1 }
 0x7b7   :  { %v5592_v16 = vpop.f32.mrb[121].mxu1 }
 0x7b8   :  { %v5593_v31 = vadd.f32 %v5592_v16, %v5591_v50  ;;  %v5594_v3 = vpop.f32.mrb[122].mxu1 }
 0x7b9   :  { %v5595_v12 = vpop.f32.mrb[123].mxu1 }
 0x7ba   :  { %v4715_v14 = vadd.f32 %v5593_v31, %v4583_v21  ;;  %v5596_v33 = vadd.f32 %v5595_v12, %v5594_v3 }
 0x7bc   :  { %v4723_v35 = vmul.f32 0.1, %v4715_v14  ;;  %v4718_v45 = vadd.f32 %v5596_v33, %v4583_v21  ;;  %vm4721_vm9 = vcmp.gt.f32.partialorder %v4715_v14, 0.0 }
 0x7be   :  { %vm4722_vm10 = vcmp.gt.f32.partialorder %v4718_v45, 0.0  ;;  %v4724_v23 = vmul.f32 0.1, %v4718_v45  ;;  %v4725_v18 = vsel %vm4721_vm9, %v4715_v14, %v4723_v35 }
 0x7c0   :  { %v4726_v38 = vsel %vm4722_vm10, %v4718_v45, %v4724_v23 }
 0x7c1   :  { %v4727_v52 = vpack.c.bf16 %v4726_v38, %v4725_v18 }
 0x7c3   :  { %6236 = vmatmul.mubr.msk.bf16.vlgmr.msra.gmra.mrb[124].mxu1 %vm1904_vm3, %v4727_v52 }
 0x7c4   :  { %6243 = vmatprep.mubr.msk.bf16.mxu1 %vm6848_vm0, %v8576_v61  ;;  %6240 = vmatpush3.bf16.msra.mxu1 %v6582_v22 }
 0x7c5   :  { %6241 = vmatprep.subr.bf16.mxu1 %v8576_v61 }
 0x7c8   :  { %6242 = vmatpush3.bf16.msra.mxu1 %v6583_v20 }
 0x7c9   :  { %6254 = vmatprep.subr.bf16.mxu1 %v8576_v61 }
 0x896   :  { %v4798_v19 = vpop.f32.mrb[124].mxu1 }
 0x897   :  { %v4799_v29 = vadd.f32 %v4798_v19, %v4736_v43  ;;  %v6237_v48 = vpop.f32.mrb[125].mxu1 }
 0x898   :  { %v4801_v6 = vpop.f32.mrb[126].mxu1 }
 0x899   :  { %v4807_v55 = vmul.f32 0.1, %v4799_v29  ;;  %v4802_v15 = vadd.f32 %v4801_v6, %v4736_v43  ;;  %v6238_v56 = vpop.f32.mrb[127].mxu1  ;;  %vm4805_vm11 = vcmp.gt.f32.partialorder %v4799_v29, 0.0 }
 0x89b   :  { %vm4806_vm12 = vcmp.gt.f32.partialorder %v4802_v15, 0.0  ;;  %v4808_v13 = vmul.f32 0.1, %v4802_v15  ;;  %v4809_v60 = vsel %vm4805_vm11, %v4799_v29, %v4807_v55 }
 0x89d   :  { %v4810_v47 = vsel %vm4806_vm12, %v4802_v15, %v4808_v13 }
 0x89e   :  { %v4811_v44 = vpack.c.bf16 %v4810_v47, %v4809_v60 }
 0x8a0   :  { %6244 = vmatmul.mubr.msk.bf16.vlgmr.msra.gmra.mrb[128].mxu1 %vm4829_vm13, %v4811_v44 }
 0x8a1   :  { %6258 = vmatprep.mubr.msk.bf16.mxu1 %vm6848_vm0, %v8576_v61  ;;  %6255 = vmatpush3.bf16.msra.mxu1 %v6584_v26  ;;  %vm4881_vm0 = vcmask 130048  }
 0x8a2   :  { %6256 = vmatprep.subr.bf16.mxu1 %v8576_v61  ;;  %v6585_v61 = vld [vmem:[%s8471_s9 + $0x38] sm:$0xff]  }
 0x8a5   :  { %6257 = vmatpush3.bf16.msra.mxu1 %v6585_v61 }
 0x973   :  { %v4867_v46 = vpop.f32.mrb[128].mxu1 }
 0x974   :  { %v4868_v59 = vadd.f32 %v4867_v46, %v4816_v40  ;;  %v6245_v39 = vpop.f32.mrb[129].mxu1 }
 0x975   :  { %v4870_v63 = vpop.f32.mrb[130].mxu1 }
 0x976   :  { %v4876_v54 = vmul.f32 0.1, %v4868_v59  ;;  %v4871_v42 = vadd.f32 %v4870_v63, %v4816_v40  ;;  %v6246_v53 = vpop.f32.mrb[131].mxu1  ;;  %vm4874_vm14 = vcmp.gt.f32.partialorder %v4868_v59, 0.0 }
 0x978   :  { %vm4875_vm15 = vcmp.gt.f32.partialorder %v4871_v42, 0.0  ;;  %v4877_v32 = vmul.f32 0.1, %v4871_v42  ;;  %v4878_v57 = vsel %vm4874_vm14, %v4868_v59, %v4876_v54 }
 0x97a   :  { %v4879_v41 = vsel %vm4875_vm15, %v4871_v42, %v4877_v32 }
 0x97b   :  { %v6263_v9 = vpack.c.bf16 %v4879_v41, %v4878_v57 }
 0x97d   :  { %6264 = vmatpush3.bf16.msra.mxu0 %v6263_v9 }
 0x980   :  { %6252 = vmatmul.mubr.msk.f32.vlgmr.msra.gmra.mrb[88].mxu0 %vm4881_vm0, %v4880_v11 }
 0xa53   :  { %v4951_v28 = vpop.f32.mrb[88].mxu0 }
 0xa54   :  { %v4955_v37 = vpack.c.bf16 %v4951_v28, %v4951_v28  ;;  %v5016_v7 = vmul.f32 %v4951_v28, %v4951_v28  ;;  %v6253_v0 = vpop.f32.mrb[89].mxu0 }
 0xa56   :  { %6259 = vmatmul.mubr.msk.bf16.vlgmr.msra.gmra.mrb[132].mxu1 %vm4829_vm13, %v4955_v37  ;;  %v5017_v58 = vsel %vm4829_vm13, %v5016_v7, 0.0 }
 0xa57   :  { %5018 = vadd.xlane.f32.xlu0 %v5017_v58 }
 0xae4   :  { %v5019_v2 = vpop.xlane.xlu0 %5018 }
 0xae5   :  { %v5020_v17 = vrot.slane %v5019_v2, 4 }
 0xae7   :  { %v5021_v36 = vadd.f32 %v5020_v17, %v5019_v2 }
 0xae9   :  { %v5022_v5 = vrot.slane %v5021_v36, 2 }
 0xaeb   :  { %v5023_v1 = vadd.f32 %v5022_v5, %v5021_v36 }
 0xaed   :  { %v5024_v49 = vrot.slane %v5023_v1, 1 }
 0xaef   :  { %v5025_v25 = vadd.f32 %v5024_v49, %v5023_v1 }
 0xaf1   :  { %v5026_v34 = vmul.f32 0.015625, %v5025_v25 }
 0xb29   :  { %v5010_v24 = vpop.f32.mrb[132].mxu1 }
 0xb2a   :  { %v5011_v8 = vadd.f32 %v5010_v24, %v4960_v51  ;;  %v6260_v10 = vpop.f32.mrb[133].mxu1 }
 0xb2b   :  { %v5013_v27 = vpop.f32.mrb[134].mxu1 }
 0xb2c   :  { %v5030_v62 = vsel %vm5029_vm1, %v5026_v34, %v5011_v8  ;;  %v6261_v50 = vpop.f32.mrb[135].mxu1 }
 0xb2d   :  { %5031 = vst [vmem:[%s8473_s11] sm:$0xff] %v5030_v62 }
 0xb2e   :  { %5036 = vsyncpa [#allocation5], 1 }
 0xb2f   :  { %5037 = vsyncpa [#allocation7], 1 }
 0xb30   :  { %5038 = vsyncpa [#allocation10], 1 }

</bundles_post_ra>
